<compile_context>
chip_gen: v7x
topology: tpu7x:2x2x1
jax: 0.10.0
libtpu: 0.0.40
codegen_flags: <defaults>
</compile_context>

<pallas_src>
import functools

import jax
import jax.numpy as jnp
import numpy as np
from jax.experimental import pallas as pl
from jax.experimental.pallas import tpu as pltpu

# ---------------- model dimensions (small, forward-consistent) ----------------
B = 2            # batch
BP = 8           # batch padded to the f32 sublane tile
T = 8            # caption length (seq)
IMG = 16         # image spatial size
CIN = 3          # RGB
COLK = 32        # im2col contraction dim, padded 9*CIN=27 -> 32
CMID = 128       # stand-in conv channels
FEAT = 512       # CNN feature dim (hardcoded 512 in the module's fc_input)
EMB = 128        # embedding_dim
HID = 128        # hidden_dim
VOCAB = 256      # vocab_size


def _vmem_spec():
    return pl.BlockSpec(memory_space=pltpu.MemorySpace.VMEM)


def _smem_spec():
    return pl.BlockSpec(memory_space=pltpu.MemorySpace.SMEM)


def _any_spec():
    return pl.BlockSpec(memory_space=pl.ANY)


def _sigmoid_fast(x):
    # exp (EUP) + approximate reciprocal (EUP) instead of an exact divide:
    # shortens the only truly serial chain (h -> gates -> c -> h) in the kernel.
    return pl.reciprocal(1.0 + jnp.exp(-x), approx=True)


# ----------------------------- fused Pallas kernel -----------------------------
def fused_kernel(seq_len, b_real, bp, hid,
                 cap_ref, cols_ref, w_conv_ref, b_conv_ref, pool_ref,
                 w_feat_ref, b_feat_ref, emb_tbl_ref,
                 w_in_feat_ref, w_in_emb_ref, b_in_ref,
                 w_ih_ref, b_lstm_ref, w_hh_hbm, w_fc_hbm, b_fc_ref,
                 out_ref,
                 emb_scr, hconv_scr, gx_scr, hs_scr, w_hh_vmem, w_fc_vmem, dma_sem):
    """conv3x3+ReLU+GAP+linear -> embedding gather -> split fc_input -> LSTM -> fc."""
    # ---- kick off the late-used weight DMAs; they overlap conv/proj compute ----
    hh_cp = pltpu.make_async_copy(w_hh_hbm, w_hh_vmem, dma_sem.at[0])
    fc_cp = pltpu.make_async_copy(w_fc_hbm, w_fc_vmem, dma_sem.at[1])
    hh_cp.start()
    fc_cp.start()

    # ---- in-kernel embedding gather (time-major, batch padded to bp) ----
    # SMEM scalar reads happen before any DMA wait (sst->sld forwarding friendly).
    emb_scr[...] = jnp.zeros_like(emb_scr)
    for t in range(seq_len):
        for b in range(b_real):
            tok = cap_ref[b * seq_len + t]                       # SMEM scalar
            row = t * bp + b
            emb_scr[row:row + 1, :] = emb_tbl_ref[pl.ds(tok, 1), :]

    # ---- CNN stand-in: conv3x3 as im2col matmul (K padded to 32) + ReLU ----
    hconv_scr[...] = jnp.maximum(
        jnp.dot(cols_ref[...], w_conv_ref[...],
                preferred_element_type=jnp.float32) + b_conv_ref[...], 0.0)

    # ---- global average pool (batch-padded pool matmul) + feature projection ----
    pooled = jnp.dot(pool_ref[...], hconv_scr[...],
                     preferred_element_type=jnp.float32)                  # (BP, CMID)
    w_feat = w_feat_ref[...].astype(jnp.float32)                          # bf16 -> f32
    feat = jnp.dot(pooled, w_feat,
                   preferred_element_type=jnp.float32) + b_feat_ref[...]  # (BP, FEAT)

    # ---- fc_input, split: feature half once per batch row, emb half over T*BP rows ----
    w_in_feat = w_in_feat_ref[...].astype(jnp.float32)
    w_in_emb = w_in_emb_ref[...].astype(jnp.float32)
    w_ih = w_ih_ref[...].astype(jnp.float32)
    feat_proj = (jnp.dot(feat, w_in_feat,
                         preferred_element_type=jnp.float32) + b_in_ref[...])   # (BP, EMB)
    emb_proj = jnp.dot(emb_scr[...], w_in_emb,
                       preferred_element_type=jnp.float32)                      # (T*BP, EMB)

    # ---- hoisted non-recurrent LSTM input transform (one big MXU matmul) ----
    gx_scr[...] = jnp.dot(emb_proj, w_ih,
                          preferred_element_type=jnp.float32)                   # (T*BP, 4H)
    # loop-invariant: feature gate contribution + combined LSTM bias (b_in counted once
    # via feat_proj), broadcast once
    gfb = (jnp.dot(feat_proj, w_ih, preferred_element_type=jnp.float32)
           + b_lstm_ref[...])                                                   # (BP, 4H)

    # ---- serial LSTM recurrence: only h @ w_hh + elementwise on the critical path ----
    hh_cp.wait()                                # w_hh DMA hidden behind the work above
    h = jnp.zeros((bp, hid), jnp.float32)
    c = jnp.zeros((bp, hid), jnp.float32)
    for t in range(seq_len):                                   # static unroll (T small)
        gates = (gx_scr[t * bp:(t + 1) * bp, :] + gfb
                 + jnp.dot(h, w_hh_vmem[...], preferred_element_type=jnp.float32))
        # PyTorch LSTM gate order: i, f, g, o
        i_g = _sigmoid_fast(gates[:, 0 * hid:1 * hid])
        f_g = _sigmoid_fast(gates[:, 1 * hid:2 * hid])
        g_g = jnp.tanh(gates[:, 2 * hid:3 * hid])
        o_g = _sigmoid_fast(gates[:, 3 * hid:4 * hid])
        c = f_g * c + i_g * g_g
        h = o_g * jnp.tanh(c)
        hs_scr[t * bp:(t + 1) * bp, :] = h                     # full (8, HID) tile store

    # ---- batched output fc: one matmul, one lane-dense full-tile store ----
    fc_cp.wait()                                # w_fc DMA also hidden
    w_fc = w_fc_vmem[...].astype(jnp.float32)
    out_ref[...] = (jnp.dot(hs_scr[...], w_fc,
                            preferred_element_type=jnp.float32) + b_fc_ref[...])


# ------------------------------ wrapper -----------------------------------------
def run_fused(cols, cap_flat, p):
    w_in_feat = p["w_in"][:FEAT, :]                                # (512, EMB) bf16
    w_in_emb = p["w_in"][FEAT:, :]                                 # (EMB, EMB) bf16
    w_conv_pad = jnp.pad(p["w_conv"], ((0, COLK - 9 * CIN), (0, 0)))  # (32, CMID)

    in_specs = ([_smem_spec()]                  # captions (token ids)
                + [_vmem_spec()] * 12           # cols .. b_lstm
                + [_any_spec(), _any_spec()]    # w_hh, w_fc: manual overlapped DMA
                + [_vmem_spec()])               # b_fc

    return pl.pallas_call(
        functools.partial(fused_kernel, T, B, BP, HID),
        out_shape=jax.ShapeDtypeStruct((T * BP, VOCAB), jnp.float32),
        in_specs=in_specs,
        out_specs=_vmem_spec(),
        scratch_shapes=[
            pltpu.VMEM((T * BP, EMB), jnp.float32),           # gathered embeddings
            pltpu.VMEM((B * IMG * IMG, CMID), jnp.float32),   # conv+ReLU activations
            pltpu.VMEM((T * BP, 4 * HID), jnp.float32),       # hoisted input gates
            pltpu.VMEM((T * BP, HID), jnp.float32),           # all h_t for batched fc
            pltpu.VMEM((HID, 4 * HID), jnp.float32),          # w_hh landing buffer
            pltpu.VMEM((HID, VOCAB), jnp.bfloat16),           # w_fc landing buffer
            pltpu.SemaphoreType.DMA((2,)),
        ],
    )(cap_flat, cols, w_conv_pad, p["b_conv"], p["pool"],
      p["w_feat"], p["b_feat"], p["embedding"],
      w_in_feat, w_in_emb, p["b_in"],
      p["w_ih"], p["b_lstm"], p["w_hh"], p["w_fc"], p["b_fc"])


# ------------------------------ glue (plain JAX) --------------------------------
def im2col_3x3(x_nhwc):
    b, h, w, c = x_nhwc.shape
    xp = jnp.pad(x_nhwc, ((0, 0), (1, 1), (1, 1), (0, 0)))
    patches = [xp[:, dy:dy + h, dx:dx + w, :] for dy in range(3) for dx in range(3)]
    cols = jnp.concatenate(patches, axis=-1)                # (B, H, W, 9*C)
    return cols.reshape(b * h * w, 9 * c)


def make_pool_matrix():
    hw = IMG * IMG
    pool = jnp.repeat(jnp.eye(B, dtype=jnp.float32), hw, axis=1) / hw   # (B, B*H*W)
    return jnp.pad(pool, ((0, BP - B), (0, 0)))                          # (BP, B*H*W)


@jax.jit
def image_captioning_forward(images_nchw, captions, p):
    # ---- CNN path inputs: im2col, contraction dim padded 27 -> 32 ----
    x_nhwc = jnp.transpose(images_nchw, (0, 2, 3, 1))
    cols = im2col_3x3(x_nhwc)                               # (B*H*W, 27)
    cols = jnp.pad(cols, ((0, 0), (0, COLK - 9 * CIN)))     # (B*H*W, 32)

    # ---- caption token ids go straight to SMEM; gather happens in-kernel ----
    cap_flat = captions.reshape(-1).astype(jnp.int32)       # (B*T,), row-major (b, t)

    logits_tm = run_fused(cols, cap_flat, p)                # (T*BP, V)
    logits = logits_tm.reshape(T, BP, VOCAB)[:, :B, :]      # drop batch padding
    return jnp.transpose(logits, (1, 0, 2))                 # (B, T, V)


# ------------------------------ pure-JAX reference ------------------------------
@jax.jit
def reference_forward(images_nchw, captions, p):
    f32 = jnp.float32
    x_nhwc = jnp.transpose(images_nchw, (0, 2, 3, 1))
    cols = im2col_3x3(x_nhwc)
    h = jnp.maximum(cols @ p["w_conv"] + p["b_conv"], 0.0)           # (B*H*W, CMID)
    pooled = h.reshape(B, IMG * IMG, CMID).mean(axis=1)              # GAP, (B, CMID)
    features = pooled @ p["w_feat"].astype(f32) + p["b_feat"]        # (B, 512)

    emb = jnp.take(p["embedding"], captions, axis=0)
    feats_rep = jnp.broadcast_to(features[:, None, :], (B, T, FEAT))
    inputs = jnp.concatenate([feats_rep, emb], axis=2)
    proj = inputs @ p["w_in"].astype(f32) + p["b_in"]                # (B, T, E)

    w_ih = p["w_ih"].astype(f32)
    w_hh = p["w_hh"]
    w_fc = p["w_fc"].astype(f32)
    hst = jnp.zeros((B, HID), f32)
    cst = jnp.zeros((B, HID), f32)
    outs = []
    for t in range(T):
        gates = proj[:, t, :] @ w_ih + hst @ w_hh + p["b_lstm"]
        i_g = 1.0 / (1.0 + jnp.exp(-gates[:, 0 * HID:1 * HID]))
        f_g = 1.0 / (1.0 + jnp.exp(-gates[:, 1 * HID:2 * HID]))
        g_g = jnp.tanh(gates[:, 2 * HID:3 * HID])
        o_g = 1.0 / (1.0 + jnp.exp(-gates[:, 3 * HID:4 * HID]))
        cst = f_g * cst + i_g * g_g
        hst = o_g * jnp.tanh(cst)
        outs.append(hst @ w_fc + p["b_fc"])
    return jnp.stack(outs, axis=1)                          # (B, T, V)


# ------------------------------ params ------------------------------------------
def init_params(key):
    ks = jax.random.split(key, 12)
    f32 = lambda k, shape, s: (s * jax.random.normal(k, shape)).astype(jnp.float32)
    bf16 = lambda k, shape, s: (s * jax.random.normal(k, shape)).astype(jnp.bfloat16)
    return {
        # CNN stand-in (conv kept f32 -- tiny; feature projection weight in bf16)
        "w_conv": f32(ks[0], (9 * CIN, CMID), 0.1),
        "b_conv": f32(ks[1], (1, CMID), 0.1),
        "w_feat": bf16(ks[2], (CMID, FEAT), 0.1),
        "b_feat": f32(ks[3], (1, FEAT), 0.1),
        "pool": make_pool_matrix(),
        # embedding (table stays f32; it is the gather source)
        "embedding": f32(ks[4], (VOCAB, EMB), 1.0),
        # fc_input (stored pre-transposed: (in, out)); split inside the wrapper
        "w_in": bf16(ks[5], (FEAT + EMB, EMB), 0.1),
        "b_in": f32(ks[6], (1, EMB), 0.1),
        # LSTM (gate order i, f, g, o; stored as (in, 4H); bias = b_ih + b_hh)
        # w_hh kept f32 to protect the 8-step recurrence (its DMA is overlapped anyway).
        "w_ih": bf16(ks[7], (EMB, 4 * HID), 0.1),
        "w_hh": f32(ks[8], (HID, 4 * HID), 0.1),
        "b_lstm": f32(ks[9], (1, 4 * HID), 0.1),
        # fc
        "w_fc": bf16(ks[10], (HID, VOCAB), 0.1),
        "b_fc": f32(ks[11], (1, VOCAB), 0.1),
    }


# ------------------------------ main ---------------------------------------------
if __name__ == "__main__":
    key = jax.random.PRNGKey(0)
    k_img, k_cap, k_par = jax.random.split(key, 3)

    images = jax.random.normal(k_img, (B, CIN, IMG, IMG), dtype=jnp.float32)  # NCHW
    captions = jax.random.randint(k_cap, (B, T), 0, VOCAB, dtype=jnp.int32)
    params = init_params(k_par)

    out = image_captioning_forward(images, captions, params)
    out = jax.block_until_ready(out)
    assert out.shape == (B, T, VOCAB) and out.dtype == jnp.float32

    ref = jax.block_until_ready(reference_forward(images, captions, params))
    max_diff = float(np.max(np.abs(np.asarray(out) - np.asarray(ref))))
    # tolerance slightly loosened vs pure-f32 because the kernel uses the approximate
    # EUP reciprocal inside the sigmoids on the serial LSTM path.
    assert np.allclose(np.asarray(out), np.asarray(ref), atol=5e-3, rtol=5e-3), (
        "Pallas output diverged from JAX reference; max abs diff = %g" % max_diff)

    print("KERNEL_OK")
</pallas_src>

<mosaic_0001>
module attributes {stable_mosaic.version = 11 : i64} {
  func.func @fused_kernel(%arg0: memref<16xi32, #tpu.memory_space<smem>>, %arg1: memref<512x32xf32, #tpu.memory_space<vmem>>, %arg2: memref<32x128xf32, #tpu.memory_space<vmem>>, %arg3: memref<1x128xf32, #tpu.memory_space<vmem>>, %arg4: memref<8x512xf32, #tpu.memory_space<vmem>>, %arg5: memref<128x512xbf16, #tpu.memory_space<vmem>>, %arg6: memref<1x512xf32, #tpu.memory_space<vmem>>, %arg7: memref<256x128xf32, #tpu.memory_space<vmem>>, %arg8: memref<512x128xbf16, #tpu.memory_space<vmem>>, %arg9: memref<128x128xbf16, #tpu.memory_space<vmem>>, %arg10: memref<1x128xf32, #tpu.memory_space<vmem>>, %arg11: memref<128x512xbf16, #tpu.memory_space<vmem>>, %arg12: memref<1x512xf32, #tpu.memory_space<vmem>>, %arg13: memref<128x512xf32, #tpu.memory_space<any>>, %arg14: memref<128x256xbf16, #tpu.memory_space<any>>, %arg15: memref<1x256xf32, #tpu.memory_space<vmem>>, %arg16: memref<64x256xf32, #tpu.memory_space<vmem>>, %arg17: memref<64x128xf32, #tpu.memory_space<vmem>>, %arg18: memref<512x128xf32, #tpu.memory_space<vmem>>, %arg19: memref<64x512xf32, #tpu.memory_space<vmem>>, %arg20: memref<64x128xf32, #tpu.memory_space<vmem>>, %arg21: memref<128x512xf32, #tpu.memory_space<vmem>>, %arg22: memref<128x256xbf16, #tpu.memory_space<vmem>>, %arg23: memref<2x!tpu.dma_semaphore, #tpu.memory_space<semaphore_mem>>) attributes {dimension_semantics = [], scalar_prefetch = 0 : i64, scratch_operands = 7 : i64, tpu.core_type = #tpu.core_type<tc>} {
    %c0_i32 = arith.constant 0 : i32
    %0 = tpu.memref_slice %arg23[%c0_i32] : memref<2x!tpu.dma_semaphore, #tpu.memory_space<semaphore_mem>> -> memref<1x!tpu.dma_semaphore, #tpu.memory_space<semaphore_mem>>
    %1 = tpu.memref_squeeze %0 : memref<1x!tpu.dma_semaphore, #tpu.memory_space<semaphore_mem>> -> memref<!tpu.dma_semaphore, #tpu.memory_space<semaphore_mem>>
    tpu.enqueue_dma source(%arg13 : memref<128x512xf32, #tpu.memory_space<any>>) target(%arg21 : memref<128x512xf32, #tpu.memory_space<vmem>>) target_semaphore(%1 : memref<!tpu.dma_semaphore, #tpu.memory_space<semaphore_mem>>)
    %c1_i32 = arith.constant 1 : i32
    %2 = tpu.memref_slice %arg23[%c1_i32] : memref<2x!tpu.dma_semaphore, #tpu.memory_space<semaphore_mem>> -> memref<1x!tpu.dma_semaphore, #tpu.memory_space<semaphore_mem>>
    %3 = tpu.memref_squeeze %2 : memref<1x!tpu.dma_semaphore, #tpu.memory_space<semaphore_mem>> -> memref<!tpu.dma_semaphore, #tpu.memory_space<semaphore_mem>>
    tpu.enqueue_dma source(%arg14 : memref<128x256xbf16, #tpu.memory_space<any>>) target(%arg22 : memref<128x256xbf16, #tpu.memory_space<vmem>>) target_semaphore(%3 : memref<!tpu.dma_semaphore, #tpu.memory_space<semaphore_mem>>)
    %cst = arith.constant 0.000000e+00 : f32
    %4 = vector.broadcast %cst : f32 to vector<64x128xf32>
    %c0 = arith.constant 0 : index
    %c0_0 = arith.constant 0 : index
    %5 = vector.load %arg17[%c0, %c0_0] : memref<64x128xf32, #tpu.memory_space<vmem>>, vector<64x128xf32>
    tpu.vector_store %arg17[%c0, %c0_0], %4 {strides = array<i32>} : memref<64x128xf32, #tpu.memory_space<vmem>>, vector<64x128xf32>,
    %c0_1 = arith.constant 0 : index
    %6 = memref.load %arg0[%c0_1] : memref<16xi32, #tpu.memory_space<smem>>
    %7 = arith.index_cast %6 : i32 to index
    %c0_2 = arith.constant 0 : index
    %8 = vector.load %arg7[%7, %c0_2] : memref<256x128xf32, #tpu.memory_space<vmem>>, vector<1x128xf32>
    %c0_3 = arith.constant 0 : index
    %c0_4 = arith.constant 0 : index
    %9 = vector.load %arg17[%c0_3, %c0_4] : memref<64x128xf32, #tpu.memory_space<vmem>>, vector<1x128xf32>
    tpu.vector_store %arg17[%c0_3, %c0_4], %8 {strides = array<i32>} : memref<64x128xf32, #tpu.memory_space<vmem>>, vector<1x128xf32>,
    %c8 = arith.constant 8 : index
    %10 = memref.load %arg0[%c8] : memref<16xi32, #tpu.memory_space<smem>>
    %11 = arith.index_cast %10 : i32 to index
    %c0_5 = arith.constant 0 : index
    %12 = vector.load %arg7[%11, %c0_5] : memref<256x128xf32, #tpu.memory_space<vmem>>, vector<1x128xf32>
    %c1 = arith.constant 1 : index
    %c0_6 = arith.constant 0 : index
    %13 = vector.load %arg17[%c1, %c0_6] : memref<64x128xf32, #tpu.memory_space<vmem>>, vector<1x128xf32>
    tpu.vector_store %arg17[%c1, %c0_6], %12 {strides = array<i32>} : memref<64x128xf32, #tpu.memory_space<vmem>>, vector<1x128xf32>,
    %c1_7 = arith.constant 1 : index
    %14 = memref.load %arg0[%c1_7] : memref<16xi32, #tpu.memory_space<smem>>
    %15 = arith.index_cast %14 : i32 to index
    %c0_8 = arith.constant 0 : index
    %16 = vector.load %arg7[%15, %c0_8] : memref<256x128xf32, #tpu.memory_space<vmem>>, vector<1x128xf32>
    %c8_9 = arith.constant 8 : index
    %c0_10 = arith.constant 0 : index
    %17 = vector.load %arg17[%c8_9, %c0_10] : memref<64x128xf32, #tpu.memory_space<vmem>>, vector<1x128xf32>
    tpu.vector_store %arg17[%c8_9, %c0_10], %16 {strides = array<i32>} : memref<64x128xf32, #tpu.memory_space<vmem>>, vector<1x128xf32>,
    %c9 = arith.constant 9 : index
    %18 = memref.load %arg0[%c9] : memref<16xi32, #tpu.memory_space<smem>>
    %19 = arith.index_cast %18 : i32 to index
    %c0_11 = arith.constant 0 : index
    %20 = vector.load %arg7[%19, %c0_11] : memref<256x128xf32, #tpu.memory_space<vmem>>, vector<1x128xf32>
    %c9_12 = arith.constant 9 : index
    %c0_13 = arith.constant 0 : index
    %21 = vector.load %arg17[%c9_12, %c0_13] : memref<64x128xf32, #tpu.memory_space<vmem>>, vector<1x128xf32>
    tpu.vector_store %arg17[%c9_12, %c0_13], %20 {strides = array<i32>} : memref<64x128xf32, #tpu.memory_space<vmem>>, vector<1x128xf32>,
    %c2 = arith.constant 2 : index
    %22 = memref.load %arg0[%c2] : memref<16xi32, #tpu.memory_space<smem>>
    %23 = arith.index_cast %22 : i32 to index
    %c0_14 = arith.constant 0 : index
    %24 = vector.load %arg7[%23, %c0_14] : memref<256x128xf32, #tpu.memory_space<vmem>>, vector<1x128xf32>
    %c16 = arith.constant 16 : index
    %c0_15 = arith.constant 0 : index
    %25 = vector.load %arg17[%c16, %c0_15] : memref<64x128xf32, #tpu.memory_space<vmem>>, vector<1x128xf32>
    tpu.vector_store %arg17[%c16, %c0_15], %24 {strides = array<i32>} : memref<64x128xf32, #tpu.memory_space<vmem>>, vector<1x128xf32>,
    %c10 = arith.constant 10 : index
    %26 = memref.load %arg0[%c10] : memref<16xi32, #tpu.memory_space<smem>>
    %27 = arith.index_cast %26 : i32 to index
    %c0_16 = arith.constant 0 : index
    %28 = vector.load %arg7[%27, %c0_16] : memref<256x128xf32, #tpu.memory_space<vmem>>, vector<1x128xf32>
    %c17 = arith.constant 17 : index
    %c0_17 = arith.constant 0 : index
    %29 = vector.load %arg17[%c17, %c0_17] : memref<64x128xf32, #tpu.memory_space<vmem>>, vector<1x128xf32>
    tpu.vector_store %arg17[%c17, %c0_17], %28 {strides = array<i32>} : memref<64x128xf32, #tpu.memory_space<vmem>>, vector<1x128xf32>,
    %c3 = arith.constant 3 : index
    %30 = memref.load %arg0[%c3] : memref<16xi32, #tpu.memory_space<smem>>
    %31 = arith.index_cast %30 : i32 to index
    %c0_18 = arith.constant 0 : index
    %32 = vector.load %arg7[%31, %c0_18] : memref<256x128xf32, #tpu.memory_space<vmem>>, vector<1x128xf32>
    %c24 = arith.constant 24 : index
    %c0_19 = arith.constant 0 : index
    %33 = vector.load %arg17[%c24, %c0_19] : memref<64x128xf32, #tpu.memory_space<vmem>>, vector<1x128xf32>
    tpu.vector_store %arg17[%c24, %c0_19], %32 {strides = array<i32>} : memref<64x128xf32, #tpu.memory_space<vmem>>, vector<1x128xf32>,
    %c11 = arith.constant 11 : index
    %34 = memref.load %arg0[%c11] : memref<16xi32, #tpu.memory_space<smem>>
    %35 = arith.index_cast %34 : i32 to index
    %c0_20 = arith.constant 0 : index
    %36 = vector.load %arg7[%35, %c0_20] : memref<256x128xf32, #tpu.memory_space<vmem>>, vector<1x128xf32>
    %c25 = arith.constant 25 : index
    %c0_21 = arith.constant 0 : index
    %37 = vector.load %arg17[%c25, %c0_21] : memref<64x128xf32, #tpu.memory_space<vmem>>, vector<1x128xf32>
    tpu.vector_store %arg17[%c25, %c0_21], %36 {strides = array<i32>} : memref<64x128xf32, #tpu.memory_space<vmem>>, vector<1x128xf32>,
    %c4 = arith.constant 4 : index
    %38 = memref.load %arg0[%c4] : memref<16xi32, #tpu.memory_space<smem>>
    %39 = arith.index_cast %38 : i32 to index
    %c0_22 = arith.constant 0 : index
    %40 = vector.load %arg7[%39, %c0_22] : memref<256x128xf32, #tpu.memory_space<vmem>>, vector<1x128xf32>
    %c32 = arith.constant 32 : index
    %c0_23 = arith.constant 0 : index
    %41 = vector.load %arg17[%c32, %c0_23] : memref<64x128xf32, #tpu.memory_space<vmem>>, vector<1x128xf32>
    tpu.vector_store %arg17[%c32, %c0_23], %40 {strides = array<i32>} : memref<64x128xf32, #tpu.memory_space<vmem>>, vector<1x128xf32>,
    %c12 = arith.constant 12 : index
    %42 = memref.load %arg0[%c12] : memref<16xi32, #tpu.memory_space<smem>>
    %43 = arith.index_cast %42 : i32 to index
    %c0_24 = arith.constant 0 : index
    %44 = vector.load %arg7[%43, %c0_24] : memref<256x128xf32, #tpu.memory_space<vmem>>, vector<1x128xf32>
    %c33 = arith.constant 33 : index
    %c0_25 = arith.constant 0 : index
    %45 = vector.load %arg17[%c33, %c0_25] : memref<64x128xf32, #tpu.memory_space<vmem>>, vector<1x128xf32>
    tpu.vector_store %arg17[%c33, %c0_25], %44 {strides = array<i32>} : memref<64x128xf32, #tpu.memory_space<vmem>>, vector<1x128xf32>,
    %c5 = arith.constant 5 : index
    %46 = memref.load %arg0[%c5] : memref<16xi32, #tpu.memory_space<smem>>
    %47 = arith.index_cast %46 : i32 to index
    %c0_26 = arith.constant 0 : index
    %48 = vector.load %arg7[%47, %c0_26] : memref<256x128xf32, #tpu.memory_space<vmem>>, vector<1x128xf32>
    %c40 = arith.constant 40 : index
    %c0_27 = arith.constant 0 : index
    %49 = vector.load %arg17[%c40, %c0_27] : memref<64x128xf32, #tpu.memory_space<vmem>>, vector<1x128xf32>
    tpu.vector_store %arg17[%c40, %c0_27], %48 {strides = array<i32>} : memref<64x128xf32, #tpu.memory_space<vmem>>, vector<1x128xf32>,
    %c13 = arith.constant 13 : index
    %50 = memref.load %arg0[%c13] : memref<16xi32, #tpu.memory_space<smem>>
    %51 = arith.index_cast %50 : i32 to index
    %c0_28 = arith.constant 0 : index
    %52 = vector.load %arg7[%51, %c0_28] : memref<256x128xf32, #tpu.memory_space<vmem>>, vector<1x128xf32>
    %c41 = arith.constant 41 : index
    %c0_29 = arith.constant 0 : index
    %53 = vector.load %arg17[%c41, %c0_29] : memref<64x128xf32, #tpu.memory_space<vmem>>, vector<1x128xf32>
    tpu.vector_store %arg17[%c41, %c0_29], %52 {strides = array<i32>} : memref<64x128xf32, #tpu.memory_space<vmem>>, vector<1x128xf32>,
    %c6 = arith.constant 6 : index
    %54 = memref.load %arg0[%c6] : memref<16xi32, #tpu.memory_space<smem>>
    %55 = arith.index_cast %54 : i32 to index
    %c0_30 = arith.constant 0 : index
    %56 = vector.load %arg7[%55, %c0_30] : memref<256x128xf32, #tpu.memory_space<vmem>>, vector<1x128xf32>
    %c48 = arith.constant 48 : index
    %c0_31 = arith.constant 0 : index
    %57 = vector.load %arg17[%c48, %c0_31] : memref<64x128xf32, #tpu.memory_space<vmem>>, vector<1x128xf32>
    tpu.vector_store %arg17[%c48, %c0_31], %56 {strides = array<i32>} : memref<64x128xf32, #tpu.memory_space<vmem>>, vector<1x128xf32>,
    %c14 = arith.constant 14 : index
    %58 = memref.load %arg0[%c14] : memref<16xi32, #tpu.memory_space<smem>>
    %59 = arith.index_cast %58 : i32 to index
    %c0_32 = arith.constant 0 : index
    %60 = vector.load %arg7[%59, %c0_32] : memref<256x128xf32, #tpu.memory_space<vmem>>, vector<1x128xf32>
    %c49 = arith.constant 49 : index
    %c0_33 = arith.constant 0 : index
    %61 = vector.load %arg17[%c49, %c0_33] : memref<64x128xf32, #tpu.memory_space<vmem>>, vector<1x128xf32>
    tpu.vector_store %arg17[%c49, %c0_33], %60 {strides = array<i32>} : memref<64x128xf32, #tpu.memory_space<vmem>>, vector<1x128xf32>,
    %c7 = arith.constant 7 : index
    %62 = memref.load %arg0[%c7] : memref<16xi32, #tpu.memory_space<smem>>
    %63 = arith.index_cast %62 : i32 to index
    %c0_34 = arith.constant 0 : index
    %64 = vector.load %arg7[%63, %c0_34] : memref<256x128xf32, #tpu.memory_space<vmem>>, vector<1x128xf32>
    %c56 = arith.constant 56 : index
    %c0_35 = arith.constant 0 : index
    %65 = vector.load %arg17[%c56, %c0_35] : memref<64x128xf32, #tpu.memory_space<vmem>>, vector<1x128xf32>
    tpu.vector_store %arg17[%c56, %c0_35], %64 {strides = array<i32>} : memref<64x128xf32, #tpu.memory_space<vmem>>, vector<1x128xf32>,
    %c15 = arith.constant 15 : index
    %66 = memref.load %arg0[%c15] : memref<16xi32, #tpu.memory_space<smem>>
    %67 = arith.index_cast %66 : i32 to index
    %c0_36 = arith.constant 0 : index
    %68 = vector.load %arg7[%67, %c0_36] : memref<256x128xf32, #tpu.memory_space<vmem>>, vector<1x128xf32>
    %c57 = arith.constant 57 : index
    %c0_37 = arith.constant 0 : index
    %69 = vector.load %arg17[%c57, %c0_37] : memref<64x128xf32, #tpu.memory_space<vmem>>, vector<1x128xf32>
    tpu.vector_store %arg17[%c57, %c0_37], %68 {strides = array<i32>} : memref<64x128xf32, #tpu.memory_space<vmem>>, vector<1x128xf32>,
    %c0_38 = arith.constant 0 : index
    %c0_39 = arith.constant 0 : index
    %70 = vector.load %arg1[%c0_38, %c0_39] : memref<512x32xf32, #tpu.memory_space<vmem>>, vector<512x32xf32>
    %c0_40 = arith.constant 0 : index
    %c0_41 = arith.constant 0 : index
    %71 = vector.load %arg2[%c0_40, %c0_41] : memref<32x128xf32, #tpu.memory_space<vmem>>, vector<32x128xf32>
    %cst_42 = arith.constant dense<0.000000e+00> : vector<512x128xf32>
    %72 = tpu.matmul %70, %71, %cst_42 {dimension_numbers = #tpu.dot_dimension_numbers<[1], [0], [0], [1], [0, 0, 1, 1], [], []>} : vector<512x32xf32>, vector<32x128xf32>, vector<512x128xf32> -> vector<512x128xf32>
    %c0_43 = arith.constant 0 : index
    %c0_44 = arith.constant 0 : index
    %73 = vector.load %arg3[%c0_43, %c0_44] : memref<1x128xf32, #tpu.memory_space<vmem>>, vector<1x128xf32>
    %74 = vector.broadcast %73 : vector<1x128xf32> to vector<512x128xf32>
    %75 = arith.addf %72, %74 : vector<512x128xf32>
    %cst_45 = arith.constant 0.000000e+00 : f32
    %76 = vector.broadcast %cst_45 : f32 to vector<512x128xf32>
    %77 = arith.maximumf %75, %76 : vector<512x128xf32>
    %c0_46 = arith.constant 0 : index
    %c0_47 = arith.constant 0 : index
    %78 = vector.load %arg18[%c0_46, %c0_47] : memref<512x128xf32, #tpu.memory_space<vmem>>, vector<512x128xf32>
    tpu.vector_store %arg18[%c0_46, %c0_47], %77 {strides = array<i32>} : memref<512x128xf32, #tpu.memory_space<vmem>>, vector<512x128xf32>,
    %c0_48 = arith.constant 0 : index
    %c0_49 = arith.constant 0 : index
    %79 = vector.load %arg4[%c0_48, %c0_49] : memref<8x512xf32, #tpu.memory_space<vmem>>, vector<8x512xf32>
    %c0_50 = arith.constant 0 : index
    %c0_51 = arith.constant 0 : index
    %80 = vector.load %arg18[%c0_50, %c0_51] : memref<512x128xf32, #tpu.memory_space<vmem>>, vector<512x128xf32>
    %cst_52 = arith.constant dense<0.000000e+00> : vector<8x128xf32>
    %81 = tpu.matmul %79, %80, %cst_52 {dimension_numbers = #tpu.dot_dimension_numbers<[1], [0], [0], [1], [0, 0, 1, 1], [], []>} : vector<8x512xf32>, vector<512x128xf32>, vector<8x128xf32> -> vector<8x128xf32>
    %c0_53 = arith.constant 0 : index
    %c0_54 = arith.constant 0 : index
    %82 = vector.load %arg5[%c0_53, %c0_54] : memref<128x512xbf16, #tpu.memory_space<vmem>>, vector<128x512xbf16>
    %83 = arith.extf %82 : vector<128x512xbf16> to vector<128x512xf32>
    %cst_55 = arith.constant dense<0.000000e+00> : vector<8x512xf32>
    %84 = tpu.matmul %81, %83, %cst_55 {dimension_numbers = #tpu.dot_dimension_numbers<[1], [0], [0], [1], [0, 0, 1, 1], [], []>} : vector<8x128xf32>, vector<128x512xf32>, vector<8x512xf32> -> vector<8x512xf32>
    %c0_56 = arith.constant 0 : index
    %c0_57 = arith.constant 0 : index
    %85 = vector.load %arg6[%c0_56, %c0_57] : memref<1x512xf32, #tpu.memory_space<vmem>>, vector<1x512xf32>
    %86 = vector.broadcast %85 : vector<1x512xf32> to vector<8x512xf32>
    %87 = arith.addf %84, %86 : vector<8x512xf32>
    %c0_58 = arith.constant 0 : index
    %c0_59 = arith.constant 0 : index
    %88 = vector.load %arg8[%c0_58, %c0_59] : memref<512x128xbf16, #tpu.memory_space<vmem>>, vector<512x128xbf16>
    %89 = arith.extf %88 : vector<512x128xbf16> to vector<512x128xf32>
    %c0_60 = arith.constant 0 : index
    %c0_61 = arith.constant 0 : index
    %90 = vector.load %arg9[%c0_60, %c0_61] : memref<128x128xbf16, #tpu.memory_space<vmem>>, vector<128x128xbf16>
    %91 = arith.extf %90 : vector<128x128xbf16> to vector<128x128xf32>
    %c0_62 = arith.constant 0 : index
    %c0_63 = arith.constant 0 : index
    %92 = vector.load %arg11[%c0_62, %c0_63] : memref<128x512xbf16, #tpu.memory_space<vmem>>, vector<128x512xbf16>
    %93 = arith.extf %92 : vector<128x512xbf16> to vector<128x512xf32>
    %cst_64 = arith.constant dense<0.000000e+00> : vector<8x128xf32>
    %94 = tpu.matmul %87, %89, %cst_64 {dimension_numbers = #tpu.dot_dimension_numbers<[1], [0], [0], [1], [0, 0, 1, 1], [], []>} : vector<8x512xf32>, vector<512x128xf32>, vector<8x128xf32> -> vector<8x128xf32>
    %c0_65 = arith.constant 0 : index
    %c0_66 = arith.constant 0 : index
    %95 = vector.load %arg10[%c0_65, %c0_66] : memref<1x128xf32, #tpu.memory_space<vmem>>, vector<1x128xf32>
    %96 = vector.broadcast %95 : vector<1x128xf32> to vector<8x128xf32>
    %97 = arith.addf %94, %96 : vector<8x128xf32>
    %c0_67 = arith.constant 0 : index
    %c0_68 = arith.constant 0 : index
    %98 = vector.load %arg17[%c0_67, %c0_68] : memref<64x128xf32, #tpu.memory_space<vmem>>, vector<64x128xf32>
    %cst_69 = arith.constant dense<0.000000e+00> : vector<64x128xf32>
    %99 = tpu.matmul %98, %91, %cst_69 {dimension_numbers = #tpu.dot_dimension_numbers<[1], [0], [0], [1], [0, 0, 1, 1], [], []>} : vector<64x128xf32>, vector<128x128xf32>, vector<64x128xf32> -> vector<64x128xf32>
    %cst_70 = arith.constant dense<0.000000e+00> : vector<64x512xf32>
    %100 = tpu.matmul %99, %93, %cst_70 {dimension_numbers = #tpu.dot_dimension_numbers<[1], [0], [0], [1], [0, 0, 1, 1], [], []>} : vector<64x128xf32>, vector<128x512xf32>, vector<64x512xf32> -> vector<64x512xf32>
    %c0_71 = arith.constant 0 : index
    %c0_72 = arith.constant 0 : index
    %101 = vector.load %arg19[%c0_71, %c0_72] : memref<64x512xf32, #tpu.memory_space<vmem>>, vector<64x512xf32>
    tpu.vector_store %arg19[%c0_71, %c0_72], %100 {strides = array<i32>} : memref<64x512xf32, #tpu.memory_space<vmem>>, vector<64x512xf32>,
    %cst_73 = arith.constant dense<0.000000e+00> : vector<8x512xf32>
    %102 = tpu.matmul %97, %93, %cst_73 {dimension_numbers = #tpu.dot_dimension_numbers<[1], [0], [0], [1], [0, 0, 1, 1], [], []>} : vector<8x128xf32>, vector<128x512xf32>, vector<8x512xf32> -> vector<8x512xf32>
    %c0_74 = arith.constant 0 : index
    %c0_75 = arith.constant 0 : index
    %103 = vector.load %arg12[%c0_74, %c0_75] : memref<1x512xf32, #tpu.memory_space<vmem>>, vector<1x512xf32>
    %104 = vector.broadcast %103 : vector<1x512xf32> to vector<8x512xf32>
    %105 = arith.addf %102, %104 : vector<8x512xf32>
    %c0_i32_76 = arith.constant 0 : i32
    %106 = tpu.memref_slice %arg23[%c0_i32_76] : memref<2x!tpu.dma_semaphore, #tpu.memory_space<semaphore_mem>> -> memref<1x!tpu.dma_semaphore, #tpu.memory_space<semaphore_mem>>
    %107 = tpu.memref_squeeze %106 : memref<1x!tpu.dma_semaphore, #tpu.memory_space<semaphore_mem>> -> memref<!tpu.dma_semaphore, #tpu.memory_space<semaphore_mem>>
    tpu.wait_dma2 semaphore(%107 : memref<!tpu.dma_semaphore, #tpu.memory_space<semaphore_mem>>) src(%arg13 : memref<128x512xf32, #tpu.memory_space<any>>) dst(%arg21 : memref<128x512xf32, #tpu.memory_space<vmem>>)
    %cst_77 = arith.constant 0.000000e+00 : f32
    %108 = vector.broadcast %cst_77 : f32 to vector<8x128xf32>
    %cst_78 = arith.constant 0.000000e+00 : f32
    %109 = vector.broadcast %cst_78 : f32 to vector<8x128xf32>
    %c0_79 = arith.constant 0 : index
    %c0_80 = arith.constant 0 : index
    %110 = vector.load %arg19[%c0_79, %c0_80] : memref<64x512xf32, #tpu.memory_space<vmem>>, vector<8x512xf32>
    %111 = arith.addf %110, %105 : vector<8x512xf32>
    %c0_81 = arith.constant 0 : index
    %c0_82 = arith.constant 0 : index
    %112 = vector.load %arg21[%c0_81, %c0_82] : memref<128x512xf32, #tpu.memory_space<vmem>>, vector<128x512xf32>
    %cst_83 = arith.constant dense<0.000000e+00> : vector<8x512xf32>
    %113 = tpu.matmul %108, %112, %cst_83 {dimension_numbers = #tpu.dot_dimension_numbers<[1], [0], [0], [1], [0, 0, 1, 1], [], []>} : vector<8x128xf32>, vector<128x512xf32>, vector<8x512xf32> -> vector<8x512xf32>
    %114 = arith.addf %111, %113 : vector<8x512xf32>
    %115 = vector.extract_strided_slice %114 {offsets = [0, 0], sizes = [8, 128], strides = [1, 1]} : vector<8x512xf32> to vector<8x128xf32>
    %cst_84 = arith.constant 0.000000e+00 : f32
    %116 = vector.broadcast %cst_84 : f32 to vector<8x128xf32>
    %117 = arith.subf %116, %115 : vector<8x128xf32>
    %118 = math.exp %117 : vector<8x128xf32>
    %cst_85 = arith.constant 1.000000e+00 : f32
    %119 = vector.broadcast %cst_85 : f32 to vector<8x128xf32>
    %120 = arith.addf %119, %118 : vector<8x128xf32>
    %121 = tpu.reciprocal %120 {approx = true} : vector<8x128xf32> -> vector<8x128xf32>
    %122 = vector.extract_strided_slice %114 {offsets = [0, 128], sizes = [8, 128], strides = [1, 1]} : vector<8x512xf32> to vector<8x128xf32>
    %cst_86 = arith.constant 0.000000e+00 : f32
    %123 = vector.broadcast %cst_86 : f32 to vector<8x128xf32>
    %124 = arith.subf %123, %122 : vector<8x128xf32>
    %125 = math.exp %124 : vector<8x128xf32>
    %cst_87 = arith.constant 1.000000e+00 : f32
    %126 = vector.broadcast %cst_87 : f32 to vector<8x128xf32>
    %127 = arith.addf %126, %125 : vector<8x128xf32>
    %128 = tpu.reciprocal %127 {approx = true} : vector<8x128xf32> -> vector<8x128xf32>
    %129 = vector.extract_strided_slice %114 {offsets = [0, 256], sizes = [8, 128], strides = [1, 1]} : vector<8x512xf32> to vector<8x128xf32>
    %130 = math.tanh %129 : vector<8x128xf32>
    %131 = vector.extract_strided_slice %114 {offsets = [0, 384], sizes = [8, 128], strides = [1, 1]} : vector<8x512xf32> to vector<8x128xf32>
    %cst_88 = arith.constant 0.000000e+00 : f32
    %132 = vector.broadcast %cst_88 : f32 to vector<8x128xf32>
    %133 = arith.subf %132, %131 : vector<8x128xf32>
    %134 = math.exp %133 : vector<8x128xf32>
    %cst_89 = arith.constant 1.000000e+00 : f32
    %135 = vector.broadcast %cst_89 : f32 to vector<8x128xf32>
    %136 = arith.addf %135, %134 : vector<8x128xf32>
    %137 = tpu.reciprocal %136 {approx = true} : vector<8x128xf32> -> vector<8x128xf32>
    %138 = arith.mulf %128, %109 : vector<8x128xf32>
    %139 = arith.mulf %121, %130 : vector<8x128xf32>
    %140 = arith.addf %138, %139 : vector<8x128xf32>
    %141 = math.tanh %140 : vector<8x128xf32>
    %142 = arith.mulf %137, %141 : vector<8x128xf32>
    %c0_90 = arith.constant 0 : index
    %c0_91 = arith.constant 0 : index
    %143 = vector.load %arg20[%c0_90, %c0_91] : memref<64x128xf32, #tpu.memory_space<vmem>>, vector<8x128xf32>
    tpu.vector_store %arg20[%c0_90, %c0_91], %142 {strides = array<i32>} : memref<64x128xf32, #tpu.memory_space<vmem>>, vector<8x128xf32>,
    %c8_92 = arith.constant 8 : index
    %c0_93 = arith.constant 0 : index
    %144 = vector.load %arg19[%c8_92, %c0_93] : memref<64x512xf32, #tpu.memory_space<vmem>>, vector<8x512xf32>
    %145 = arith.addf %144, %105 : vector<8x512xf32>
    %c0_94 = arith.constant 0 : index
    %c0_95 = arith.constant 0 : index
    %146 = vector.load %arg21[%c0_94, %c0_95] : memref<128x512xf32, #tpu.memory_space<vmem>>, vector<128x512xf32>
    %cst_96 = arith.constant dense<0.000000e+00> : vector<8x512xf32>
    %147 = tpu.matmul %142, %146, %cst_96 {dimension_numbers = #tpu.dot_dimension_numbers<[1], [0], [0], [1], [0, 0, 1, 1], [], []>} : vector<8x128xf32>, vector<128x512xf32>, vector<8x512xf32> -> vector<8x512xf32>
    %148 = arith.addf %145, %147 : vector<8x512xf32>
    %149 = vector.extract_strided_slice %148 {offsets = [0, 0], sizes = [8, 128], strides = [1, 1]} : vector<8x512xf32> to vector<8x128xf32>
    %cst_97 = arith.constant 0.000000e+00 : f32
    %150 = vector.broadcast %cst_97 : f32 to vector<8x128xf32>
    %151 = arith.subf %150, %149 : vector<8x128xf32>
    %152 = math.exp %151 : vector<8x128xf32>
    %cst_98 = arith.constant 1.000000e+00 : f32
    %153 = vector.broadcast %cst_98 : f32 to vector<8x128xf32>
    %154 = arith.addf %153, %152 : vector<8x128xf32>
    %155 = tpu.reciprocal %154 {approx = true} : vector<8x128xf32> -> vector<8x128xf32>
    %156 = vector.extract_strided_slice %148 {offsets = [0, 128], sizes = [8, 128], strides = [1, 1]} : vector<8x512xf32> to vector<8x128xf32>
    %cst_99 = arith.constant 0.000000e+00 : f32
    %157 = vector.broadcast %cst_99 : f32 to vector<8x128xf32>
    %158 = arith.subf %157, %156 : vector<8x128xf32>
    %159 = math.exp %158 : vector<8x128xf32>
    %cst_100 = arith.constant 1.000000e+00 : f32
    %160 = vector.broadcast %cst_100 : f32 to vector<8x128xf32>
    %161 = arith.addf %160, %159 : vector<8x128xf32>
    %162 = tpu.reciprocal %161 {approx = true} : vector<8x128xf32> -> vector<8x128xf32>
    %163 = vector.extract_strided_slice %148 {offsets = [0, 256], sizes = [8, 128], strides = [1, 1]} : vector<8x512xf32> to vector<8x128xf32>
    %164 = math.tanh %163 : vector<8x128xf32>
    %165 = vector.extract_strided_slice %148 {offsets = [0, 384], sizes = [8, 128], strides = [1, 1]} : vector<8x512xf32> to vector<8x128xf32>
    %cst_101 = arith.constant 0.000000e+00 : f32
    %166 = vector.broadcast %cst_101 : f32 to vector<8x128xf32>
    %167 = arith.subf %166, %165 : vector<8x128xf32>
    %168 = math.exp %167 : vector<8x128xf32>
    %cst_102 = arith.constant 1.000000e+00 : f32
    %169 = vector.broadcast %cst_102 : f32 to vector<8x128xf32>
    %170 = arith.addf %169, %168 : vector<8x128xf32>
    %171 = tpu.reciprocal %170 {approx = true} : vector<8x128xf32> -> vector<8x128xf32>
    %172 = arith.mulf %162, %140 : vector<8x128xf32>
    %173 = arith.mulf %155, %164 : vector<8x128xf32>
    %174 = arith.addf %172, %173 : vector<8x128xf32>
    %175 = math.tanh %174 : vector<8x128xf32>
    %176 = arith.mulf %171, %175 : vector<8x128xf32>
    %c8_103 = arith.constant 8 : index
    %c0_104 = arith.constant 0 : index
    %177 = vector.load %arg20[%c8_103, %c0_104] : memref<64x128xf32, #tpu.memory_space<vmem>>, vector<8x128xf32>
    tpu.vector_store %arg20[%c8_103, %c0_104], %176 {strides = array<i32>} : memref<64x128xf32, #tpu.memory_space<vmem>>, vector<8x128xf32>,
    %c16_105 = arith.constant 16 : index
    %c0_106 = arith.constant 0 : index
    %178 = vector.load %arg19[%c16_105, %c0_106] : memref<64x512xf32, #tpu.memory_space<vmem>>, vector<8x512xf32>
    %179 = arith.addf %178, %105 : vector<8x512xf32>
    %c0_107 = arith.constant 0 : index
    %c0_108 = arith.constant 0 : index
    %180 = vector.load %arg21[%c0_107, %c0_108] : memref<128x512xf32, #tpu.memory_space<vmem>>, vector<128x512xf32>
    %cst_109 = arith.constant dense<0.000000e+00> : vector<8x512xf32>
    %181 = tpu.matmul %176, %180, %cst_109 {dimension_numbers = #tpu.dot_dimension_numbers<[1], [0], [0], [1], [0, 0, 1, 1], [], []>} : vector<8x128xf32>, vector<128x512xf32>, vector<8x512xf32> -> vector<8x512xf32>
    %182 = arith.addf %179, %181 : vector<8x512xf32>
    %183 = vector.extract_strided_slice %182 {offsets = [0, 0], sizes = [8, 128], strides = [1, 1]} : vector<8x512xf32> to vector<8x128xf32>
    %cst_110 = arith.constant 0.000000e+00 : f32
    %184 = vector.broadcast %cst_110 : f32 to vector<8x128xf32>
    %185 = arith.subf %184, %183 : vector<8x128xf32>
    %186 = math.exp %185 : vector<8x128xf32>
    %cst_111 = arith.constant 1.000000e+00 : f32
    %187 = vector.broadcast %cst_111 : f32 to vector<8x128xf32>
    %188 = arith.addf %187, %186 : vector<8x128xf32>
    %189 = tpu.reciprocal %188 {approx = true} : vector<8x128xf32> -> vector<8x128xf32>
    %190 = vector.extract_strided_slice %182 {offsets = [0, 128], sizes = [8, 128], strides = [1, 1]} : vector<8x512xf32> to vector<8x128xf32>
    %cst_112 = arith.constant 0.000000e+00 : f32
    %191 = vector.broadcast %cst_112 : f32 to vector<8x128xf32>
    %192 = arith.subf %191, %190 : vector<8x128xf32>
    %193 = math.exp %192 : vector<8x128xf32>
    %cst_113 = arith.constant 1.000000e+00 : f32
    %194 = vector.broadcast %cst_113 : f32 to vector<8x128xf32>
    %195 = arith.addf %194, %193 : vector<8x128xf32>
    %196 = tpu.reciprocal %195 {approx = true} : vector<8x128xf32> -> vector<8x128xf32>
    %197 = vector.extract_strided_slice %182 {offsets = [0, 256], sizes = [8, 128], strides = [1, 1]} : vector<8x512xf32> to vector<8x128xf32>
    %198 = math.tanh %197 : vector<8x128xf32>
    %199 = vector.extract_strided_slice %182 {offsets = [0, 384], sizes = [8, 128], strides = [1, 1]} : vector<8x512xf32> to vector<8x128xf32>
    %cst_114 = arith.constant 0.000000e+00 : f32
    %200 = vector.broadcast %cst_114 : f32 to vector<8x128xf32>
    %201 = arith.subf %200, %199 : vector<8x128xf32>
    %202 = math.exp %201 : vector<8x128xf32>
    %cst_115 = arith.constant 1.000000e+00 : f32
    %203 = vector.broadcast %cst_115 : f32 to vector<8x128xf32>
    %204 = arith.addf %203, %202 : vector<8x128xf32>
    %205 = tpu.reciprocal %204 {approx = true} : vector<8x128xf32> -> vector<8x128xf32>
    %206 = arith.mulf %196, %174 : vector<8x128xf32>
    %207 = arith.mulf %189, %198 : vector<8x128xf32>
    %208 = arith.addf %206, %207 : vector<8x128xf32>
    %209 = math.tanh %208 : vector<8x128xf32>
    %210 = arith.mulf %205, %209 : vector<8x128xf32>
    %c16_116 = arith.constant 16 : index
    %c0_117 = arith.constant 0 : index
    %211 = vector.load %arg20[%c16_116, %c0_117] : memref<64x128xf32, #tpu.memory_space<vmem>>, vector<8x128xf32>
    tpu.vector_store %arg20[%c16_116, %c0_117], %210 {strides = array<i32>} : memref<64x128xf32, #tpu.memory_space<vmem>>, vector<8x128xf32>,
    %c24_118 = arith.constant 24 : index
    %c0_119 = arith.constant 0 : index
    %212 = vector.load %arg19[%c24_118, %c0_119] : memref<64x512xf32, #tpu.memory_space<vmem>>, vector<8x512xf32>
    %213 = arith.addf %212, %105 : vector<8x512xf32>
    %c0_120 = arith.constant 0 : index
    %c0_121 = arith.constant 0 : index
    %214 = vector.load %arg21[%c0_120, %c0_121] : memref<128x512xf32, #tpu.memory_space<vmem>>, vector<128x512xf32>
    %cst_122 = arith.constant dense<0.000000e+00> : vector<8x512xf32>
    %215 = tpu.matmul %210, %214, %cst_122 {dimension_numbers = #tpu.dot_dimension_numbers<[1], [0], [0], [1], [0, 0, 1, 1], [], []>} : vector<8x128xf32>, vector<128x512xf32>, vector<8x512xf32> -> vector<8x512xf32>
    %216 = arith.addf %213, %215 : vector<8x512xf32>
    %217 = vector.extract_strided_slice %216 {offsets = [0, 0], sizes = [8, 128], strides = [1, 1]} : vector<8x512xf32> to vector<8x128xf32>
    %cst_123 = arith.constant 0.000000e+00 : f32
    %218 = vector.broadcast %cst_123 : f32 to vector<8x128xf32>
    %219 = arith.subf %218, %217 : vector<8x128xf32>
    %220 = math.exp %219 : vector<8x128xf32>
    %cst_124 = arith.constant 1.000000e+00 : f32
    %221 = vector.broadcast %cst_124 : f32 to vector<8x128xf32>
    %222 = arith.addf %221, %220 : vector<8x128xf32>
    %223 = tpu.reciprocal %222 {approx = true} : vector<8x128xf32> -> vector<8x128xf32>
    %224 = vector.extract_strided_slice %216 {offsets = [0, 128], sizes = [8, 128], strides = [1, 1]} : vector<8x512xf32> to vector<8x128xf32>
    %cst_125 = arith.constant 0.000000e+00 : f32
    %225 = vector.broadcast %cst_125 : f32 to vector<8x128xf32>
    %226 = arith.subf %225, %224 : vector<8x128xf32>
    %227 = math.exp %226 : vector<8x128xf32>
    %cst_126 = arith.constant 1.000000e+00 : f32
    %228 = vector.broadcast %cst_126 : f32 to vector<8x128xf32>
    %229 = arith.addf %228, %227 : vector<8x128xf32>
    %230 = tpu.reciprocal %229 {approx = true} : vector<8x128xf32> -> vector<8x128xf32>
    %231 = vector.extract_strided_slice %216 {offsets = [0, 256], sizes = [8, 128], strides = [1, 1]} : vector<8x512xf32> to vector<8x128xf32>
    %232 = math.tanh %231 : vector<8x128xf32>
    %233 = vector.extract_strided_slice %216 {offsets = [0, 384], sizes = [8, 128], strides = [1, 1]} : vector<8x512xf32> to vector<8x128xf32>
    %cst_127 = arith.constant 0.000000e+00 : f32
    %234 = vector.broadcast %cst_127 : f32 to vector<8x128xf32>
    %235 = arith.subf %234, %233 : vector<8x128xf32>
    %236 = math.exp %235 : vector<8x128xf32>
    %cst_128 = arith.constant 1.000000e+00 : f32
    %237 = vector.broadcast %cst_128 : f32 to vector<8x128xf32>
    %238 = arith.addf %237, %236 : vector<8x128xf32>
    %239 = tpu.reciprocal %238 {approx = true} : vector<8x128xf32> -> vector<8x128xf32>
    %240 = arith.mulf %230, %208 : vector<8x128xf32>
    %241 = arith.mulf %223, %232 : vector<8x128xf32>
    %242 = arith.addf %240, %241 : vector<8x128xf32>
    %243 = math.tanh %242 : vector<8x128xf32>
    %244 = arith.mulf %239, %243 : vector<8x128xf32>
    %c24_129 = arith.constant 24 : index
    %c0_130 = arith.constant 0 : index
    %245 = vector.load %arg20[%c24_129, %c0_130] : memref<64x128xf32, #tpu.memory_space<vmem>>, vector<8x128xf32>
    tpu.vector_store %arg20[%c24_129, %c0_130], %244 {strides = array<i32>} : memref<64x128xf32, #tpu.memory_space<vmem>>, vector<8x128xf32>,
    %c32_131 = arith.constant 32 : index
    %c0_132 = arith.constant 0 : index
    %246 = vector.load %arg19[%c32_131, %c0_132] : memref<64x512xf32, #tpu.memory_space<vmem>>, vector<8x512xf32>
    %247 = arith.addf %246, %105 : vector<8x512xf32>
    %c0_133 = arith.constant 0 : index
    %c0_134 = arith.constant 0 : index
    %248 = vector.load %arg21[%c0_133, %c0_134] : memref<128x512xf32, #tpu.memory_space<vmem>>, vector<128x512xf32>
    %cst_135 = arith.constant dense<0.000000e+00> : vector<8x512xf32>
    %249 = tpu.matmul %244, %248, %cst_135 {dimension_numbers = #tpu.dot_dimension_numbers<[1], [0], [0], [1], [0, 0, 1, 1], [], []>} : vector<8x128xf32>, vector<128x512xf32>, vector<8x512xf32> -> vector<8x512xf32>
    %250 = arith.addf %247, %249 : vector<8x512xf32>
    %251 = vector.extract_strided_slice %250 {offsets = [0, 0], sizes = [8, 128], strides = [1, 1]} : vector<8x512xf32> to vector<8x128xf32>
    %cst_136 = arith.constant 0.000000e+00 : f32
    %252 = vector.broadcast %cst_136 : f32 to vector<8x128xf32>
    %253 = arith.subf %252, %251 : vector<8x128xf32>
    %254 = math.exp %253 : vector<8x128xf32>
    %cst_137 = arith.constant 1.000000e+00 : f32
    %255 = vector.broadcast %cst_137 : f32 to vector<8x128xf32>
    %256 = arith.addf %255, %254 : vector<8x128xf32>
    %257 = tpu.reciprocal %256 {approx = true} : vector<8x128xf32> -> vector<8x128xf32>
    %258 = vector.extract_strided_slice %250 {offsets = [0, 128], sizes = [8, 128], strides = [1, 1]} : vector<8x512xf32> to vector<8x128xf32>
    %cst_138 = arith.constant 0.000000e+00 : f32
    %259 = vector.broadcast %cst_138 : f32 to vector<8x128xf32>
    %260 = arith.subf %259, %258 : vector<8x128xf32>
    %261 = math.exp %260 : vector<8x128xf32>
    %cst_139 = arith.constant 1.000000e+00 : f32
    %262 = vector.broadcast %cst_139 : f32 to vector<8x128xf32>
    %263 = arith.addf %262, %261 : vector<8x128xf32>
    %264 = tpu.reciprocal %263 {approx = true} : vector<8x128xf32> -> vector<8x128xf32>
    %265 = vector.extract_strided_slice %250 {offsets = [0, 256], sizes = [8, 128], strides = [1, 1]} : vector<8x512xf32> to vector<8x128xf32>
    %266 = math.tanh %265 : vector<8x128xf32>
    %267 = vector.extract_strided_slice %250 {offsets = [0, 384], sizes = [8, 128], strides = [1, 1]} : vector<8x512xf32> to vector<8x128xf32>
    %cst_140 = arith.constant 0.000000e+00 : f32
    %268 = vector.broadcast %cst_140 : f32 to vector<8x128xf32>
    %269 = arith.subf %268, %267 : vector<8x128xf32>
    %270 = math.exp %269 : vector<8x128xf32>
    %cst_141 = arith.constant 1.000000e+00 : f32
    %271 = vector.broadcast %cst_141 : f32 to vector<8x128xf32>
    %272 = arith.addf %271, %270 : vector<8x128xf32>
    %273 = tpu.reciprocal %272 {approx = true} : vector<8x128xf32> -> vector<8x128xf32>
    %274 = arith.mulf %264, %242 : vector<8x128xf32>
    %275 = arith.mulf %257, %266 : vector<8x128xf32>
    %276 = arith.addf %274, %275 : vector<8x128xf32>
    %277 = math.tanh %276 : vector<8x128xf32>
    %278 = arith.mulf %273, %277 : vector<8x128xf32>
    %c32_142 = arith.constant 32 : index
    %c0_143 = arith.constant 0 : index
    %279 = vector.load %arg20[%c32_142, %c0_143] : memref<64x128xf32, #tpu.memory_space<vmem>>, vector<8x128xf32>
    tpu.vector_store %arg20[%c32_142, %c0_143], %278 {strides = array<i32>} : memref<64x128xf32, #tpu.memory_space<vmem>>, vector<8x128xf32>,
    %c40_144 = arith.constant 40 : index
    %c0_145 = arith.constant 0 : index
    %280 = vector.load %arg19[%c40_144, %c0_145] : memref<64x512xf32, #tpu.memory_space<vmem>>, vector<8x512xf32>
    %281 = arith.addf %280, %105 : vector<8x512xf32>
    %c0_146 = arith.constant 0 : index
    %c0_147 = arith.constant 0 : index
    %282 = vector.load %arg21[%c0_146, %c0_147] : memref<128x512xf32, #tpu.memory_space<vmem>>, vector<128x512xf32>
    %cst_148 = arith.constant dense<0.000000e+00> : vector<8x512xf32>
    %283 = tpu.matmul %278, %282, %cst_148 {dimension_numbers = #tpu.dot_dimension_numbers<[1], [0], [0], [1], [0, 0, 1, 1], [], []>} : vector<8x128xf32>, vector<128x512xf32>, vector<8x512xf32> -> vector<8x512xf32>
    %284 = arith.addf %281, %283 : vector<8x512xf32>
    %285 = vector.extract_strided_slice %284 {offsets = [0, 0], sizes = [8, 128], strides = [1, 1]} : vector<8x512xf32> to vector<8x128xf32>
    %cst_149 = arith.constant 0.000000e+00 : f32
    %286 = vector.broadcast %cst_149 : f32 to vector<8x128xf32>
    %287 = arith.subf %286, %285 : vector<8x128xf32>
    %288 = math.exp %287 : vector<8x128xf32>
    %cst_150 = arith.constant 1.000000e+00 : f32
    %289 = vector.broadcast %cst_150 : f32 to vector<8x128xf32>
    %290 = arith.addf %289, %288 : vector<8x128xf32>
    %291 = tpu.reciprocal %290 {approx = true} : vector<8x128xf32> -> vector<8x128xf32>
    %292 = vector.extract_strided_slice %284 {offsets = [0, 128], sizes = [8, 128], strides = [1, 1]} : vector<8x512xf32> to vector<8x128xf32>
    %cst_151 = arith.constant 0.000000e+00 : f32
    %293 = vector.broadcast %cst_151 : f32 to vector<8x128xf32>
    %294 = arith.subf %293, %292 : vector<8x128xf32>
    %295 = math.exp %294 : vector<8x128xf32>
    %cst_152 = arith.constant 1.000000e+00 : f32
    %296 = vector.broadcast %cst_152 : f32 to vector<8x128xf32>
    %297 = arith.addf %296, %295 : vector<8x128xf32>
    %298 = tpu.reciprocal %297 {approx = true} : vector<8x128xf32> -> vector<8x128xf32>
    %299 = vector.extract_strided_slice %284 {offsets = [0, 256], sizes = [8, 128], strides = [1, 1]} : vector<8x512xf32> to vector<8x128xf32>
    %300 = math.tanh %299 : vector<8x128xf32>
    %301 = vector.extract_strided_slice %284 {offsets = [0, 384], sizes = [8, 128], strides = [1, 1]} : vector<8x512xf32> to vector<8x128xf32>
    %cst_153 = arith.constant 0.000000e+00 : f32
    %302 = vector.broadcast %cst_153 : f32 to vector<8x128xf32>
    %303 = arith.subf %302, %301 : vector<8x128xf32>
    %304 = math.exp %303 : vector<8x128xf32>
    %cst_154 = arith.constant 1.000000e+00 : f32
    %305 = vector.broadcast %cst_154 : f32 to vector<8x128xf32>
    %306 = arith.addf %305, %304 : vector<8x128xf32>
    %307 = tpu.reciprocal %306 {approx = true} : vector<8x128xf32> -> vector<8x128xf32>
    %308 = arith.mulf %298, %276 : vector<8x128xf32>
    %309 = arith.mulf %291, %300 : vector<8x128xf32>
    %310 = arith.addf %308, %309 : vector<8x128xf32>
    %311 = math.tanh %310 : vector<8x128xf32>
    %312 = arith.mulf %307, %311 : vector<8x128xf32>
    %c40_155 = arith.constant 40 : index
    %c0_156 = arith.constant 0 : index
    %313 = vector.load %arg20[%c40_155, %c0_156] : memref<64x128xf32, #tpu.memory_space<vmem>>, vector<8x128xf32>
    tpu.vector_store %arg20[%c40_155, %c0_156], %312 {strides = array<i32>} : memref<64x128xf32, #tpu.memory_space<vmem>>, vector<8x128xf32>,
    %c48_157 = arith.constant 48 : index
    %c0_158 = arith.constant 0 : index
    %314 = vector.load %arg19[%c48_157, %c0_158] : memref<64x512xf32, #tpu.memory_space<vmem>>, vector<8x512xf32>
    %315 = arith.addf %314, %105 : vector<8x512xf32>
    %c0_159 = arith.constant 0 : index
    %c0_160 = arith.constant 0 : index
    %316 = vector.load %arg21[%c0_159, %c0_160] : memref<128x512xf32, #tpu.memory_space<vmem>>, vector<128x512xf32>
    %cst_161 = arith.constant dense<0.000000e+00> : vector<8x512xf32>
    %317 = tpu.matmul %312, %316, %cst_161 {dimension_numbers = #tpu.dot_dimension_numbers<[1], [0], [0], [1], [0, 0, 1, 1], [], []>} : vector<8x128xf32>, vector<128x512xf32>, vector<8x512xf32> -> vector<8x512xf32>
    %318 = arith.addf %315, %317 : vector<8x512xf32>
    %319 = vector.extract_strided_slice %318 {offsets = [0, 0], sizes = [8, 128], strides = [1, 1]} : vector<8x512xf32> to vector<8x128xf32>
    %cst_162 = arith.constant 0.000000e+00 : f32
    %320 = vector.broadcast %cst_162 : f32 to vector<8x128xf32>
    %321 = arith.subf %320, %319 : vector<8x128xf32>
    %322 = math.exp %321 : vector<8x128xf32>
    %cst_163 = arith.constant 1.000000e+00 : f32
    %323 = vector.broadcast %cst_163 : f32 to vector<8x128xf32>
    %324 = arith.addf %323, %322 : vector<8x128xf32>
    %325 = tpu.reciprocal %324 {approx = true} : vector<8x128xf32> -> vector<8x128xf32>
    %326 = vector.extract_strided_slice %318 {offsets = [0, 128], sizes = [8, 128], strides = [1, 1]} : vector<8x512xf32> to vector<8x128xf32>
    %cst_164 = arith.constant 0.000000e+00 : f32
    %327 = vector.broadcast %cst_164 : f32 to vector<8x128xf32>
    %328 = arith.subf %327, %326 : vector<8x128xf32>
    %329 = math.exp %328 : vector<8x128xf32>
    %cst_165 = arith.constant 1.000000e+00 : f32
    %330 = vector.broadcast %cst_165 : f32 to vector<8x128xf32>
    %331 = arith.addf %330, %329 : vector<8x128xf32>
    %332 = tpu.reciprocal %331 {approx = true} : vector<8x128xf32> -> vector<8x128xf32>
    %333 = vector.extract_strided_slice %318 {offsets = [0, 256], sizes = [8, 128], strides = [1, 1]} : vector<8x512xf32> to vector<8x128xf32>
    %334 = math.tanh %333 : vector<8x128xf32>
    %335 = vector.extract_strided_slice %318 {offsets = [0, 384], sizes = [8, 128], strides = [1, 1]} : vector<8x512xf32> to vector<8x128xf32>
    %cst_166 = arith.constant 0.000000e+00 : f32
    %336 = vector.broadcast %cst_166 : f32 to vector<8x128xf32>
    %337 = arith.subf %336, %335 : vector<8x128xf32>
    %338 = math.exp %337 : vector<8x128xf32>
    %cst_167 = arith.constant 1.000000e+00 : f32
    %339 = vector.broadcast %cst_167 : f32 to vector<8x128xf32>
    %340 = arith.addf %339, %338 : vector<8x128xf32>
    %341 = tpu.reciprocal %340 {approx = true} : vector<8x128xf32> -> vector<8x128xf32>
    %342 = arith.mulf %332, %310 : vector<8x128xf32>
    %343 = arith.mulf %325, %334 : vector<8x128xf32>
    %344 = arith.addf %342, %343 : vector<8x128xf32>
    %345 = math.tanh %344 : vector<8x128xf32>
    %346 = arith.mulf %341, %345 : vector<8x128xf32>
    %c48_168 = arith.constant 48 : index
    %c0_169 = arith.constant 0 : index
    %347 = vector.load %arg20[%c48_168, %c0_169] : memref<64x128xf32, #tpu.memory_space<vmem>>, vector<8x128xf32>
    tpu.vector_store %arg20[%c48_168, %c0_169], %346 {strides = array<i32>} : memref<64x128xf32, #tpu.memory_space<vmem>>, vector<8x128xf32>,
    %c56_170 = arith.constant 56 : index
    %c0_171 = arith.constant 0 : index
    %348 = vector.load %arg19[%c56_170, %c0_171] : memref<64x512xf32, #tpu.memory_space<vmem>>, vector<8x512xf32>
    %349 = arith.addf %348, %105 : vector<8x512xf32>
    %c0_172 = arith.constant 0 : index
    %c0_173 = arith.constant 0 : index
    %350 = vector.load %arg21[%c0_172, %c0_173] : memref<128x512xf32, #tpu.memory_space<vmem>>, vector<128x512xf32>
    %cst_174 = arith.constant dense<0.000000e+00> : vector<8x512xf32>
    %351 = tpu.matmul %346, %350, %cst_174 {dimension_numbers = #tpu.dot_dimension_numbers<[1], [0], [0], [1], [0, 0, 1, 1], [], []>} : vector<8x128xf32>, vector<128x512xf32>, vector<8x512xf32> -> vector<8x512xf32>
    %352 = arith.addf %349, %351 : vector<8x512xf32>
    %353 = vector.extract_strided_slice %352 {offsets = [0, 0], sizes = [8, 128], strides = [1, 1]} : vector<8x512xf32> to vector<8x128xf32>
    %cst_175 = arith.constant 0.000000e+00 : f32
    %354 = vector.broadcast %cst_175 : f32 to vector<8x128xf32>
    %355 = arith.subf %354, %353 : vector<8x128xf32>
    %356 = math.exp %355 : vector<8x128xf32>
    %cst_176 = arith.constant 1.000000e+00 : f32
    %357 = vector.broadcast %cst_176 : f32 to vector<8x128xf32>
    %358 = arith.addf %357, %356 : vector<8x128xf32>
    %359 = tpu.reciprocal %358 {approx = true} : vector<8x128xf32> -> vector<8x128xf32>
    %360 = vector.extract_strided_slice %352 {offsets = [0, 128], sizes = [8, 128], strides = [1, 1]} : vector<8x512xf32> to vector<8x128xf32>
    %cst_177 = arith.constant 0.000000e+00 : f32
    %361 = vector.broadcast %cst_177 : f32 to vector<8x128xf32>
    %362 = arith.subf %361, %360 : vector<8x128xf32>
    %363 = math.exp %362 : vector<8x128xf32>
    %cst_178 = arith.constant 1.000000e+00 : f32
    %364 = vector.broadcast %cst_178 : f32 to vector<8x128xf32>
    %365 = arith.addf %364, %363 : vector<8x128xf32>
    %366 = tpu.reciprocal %365 {approx = true} : vector<8x128xf32> -> vector<8x128xf32>
    %367 = vector.extract_strided_slice %352 {offsets = [0, 256], sizes = [8, 128], strides = [1, 1]} : vector<8x512xf32> to vector<8x128xf32>
    %368 = math.tanh %367 : vector<8x128xf32>
    %369 = vector.extract_strided_slice %352 {offsets = [0, 384], sizes = [8, 128], strides = [1, 1]} : vector<8x512xf32> to vector<8x128xf32>
    %cst_179 = arith.constant 0.000000e+00 : f32
    %370 = vector.broadcast %cst_179 : f32 to vector<8x128xf32>
    %371 = arith.subf %370, %369 : vector<8x128xf32>
    %372 = math.exp %371 : vector<8x128xf32>
    %cst_180 = arith.constant 1.000000e+00 : f32
    %373 = vector.broadcast %cst_180 : f32 to vector<8x128xf32>
    %374 = arith.addf %373, %372 : vector<8x128xf32>
    %375 = tpu.reciprocal %374 {approx = true} : vector<8x128xf32> -> vector<8x128xf32>
    %376 = arith.mulf %366, %344 : vector<8x128xf32>
    %377 = arith.mulf %359, %368 : vector<8x128xf32>
    %378 = arith.addf %376, %377 : vector<8x128xf32>
    %379 = math.tanh %378 : vector<8x128xf32>
    %380 = arith.mulf %375, %379 : vector<8x128xf32>
    %c56_181 = arith.constant 56 : index
    %c0_182 = arith.constant 0 : index
    %381 = vector.load %arg20[%c56_181, %c0_182] : memref<64x128xf32, #tpu.memory_space<vmem>>, vector<8x128xf32>
    tpu.vector_store %arg20[%c56_181, %c0_182], %380 {strides = array<i32>} : memref<64x128xf32, #tpu.memory_space<vmem>>, vector<8x128xf32>,
    %c1_i32_183 = arith.constant 1 : i32
    %382 = tpu.memref_slice %arg23[%c1_i32_183] : memref<2x!tpu.dma_semaphore, #tpu.memory_space<semaphore_mem>> -> memref<1x!tpu.dma_semaphore, #tpu.memory_space<semaphore_mem>>
    %383 = tpu.memref_squeeze %382 : memref<1x!tpu.dma_semaphore, #tpu.memory_space<semaphore_mem>> -> memref<!tpu.dma_semaphore, #tpu.memory_space<semaphore_mem>>
    tpu.wait_dma2 semaphore(%383 : memref<!tpu.dma_semaphore, #tpu.memory_space<semaphore_mem>>) src(%arg14 : memref<128x256xbf16, #tpu.memory_space<any>>) dst(%arg22 : memref<128x256xbf16, #tpu.memory_space<vmem>>)
    %c0_184 = arith.constant 0 : index
    %c0_185 = arith.constant 0 : index
    %384 = vector.load %arg22[%c0_184, %c0_185] : memref<128x256xbf16, #tpu.memory_space<vmem>>, vector<128x256xbf16>
    %385 = arith.extf %384 : vector<128x256xbf16> to vector<128x256xf32>
    %c0_186 = arith.constant 0 : index
    %c0_187 = arith.constant 0 : index
    %386 = vector.load %arg20[%c0_186, %c0_187] : memref<64x128xf32, #tpu.memory_space<vmem>>, vector<64x128xf32>
    %cst_188 = arith.constant dense<0.000000e+00> : vector<64x256xf32>
    %387 = tpu.matmul %386, %385, %cst_188 {dimension_numbers = #tpu.dot_dimension_numbers<[1], [0], [0], [1], [0, 0, 1, 1], [], []>} : vector<64x128xf32>, vector<128x256xf32>, vector<64x256xf32> -> vector<64x256xf32>
    %c0_189 = arith.constant 0 : index
    %c0_190 = arith.constant 0 : index
    %388 = vector.load %arg15[%c0_189, %c0_190] : memref<1x256xf32, #tpu.memory_space<vmem>>, vector<1x256xf32>
    %389 = vector.broadcast %388 : vector<1x256xf32> to vector<64x256xf32>
    %390 = arith.addf %387, %389 : vector<64x256xf32>
    %c0_191 = arith.constant 0 : index
    %c0_192 = arith.constant 0 : index
    %391 = vector.load %arg16[%c0_191, %c0_192] : memref<64x256xf32, #tpu.memory_space<vmem>>, vector<64x256xf32>
    tpu.vector_store %arg16[%c0_191, %c0_192], %390 {strides = array<i32>} : memref<64x256xf32, #tpu.memory_space<vmem>>, vector<64x256xf32>,
    return
  }
}

</mosaic_0001>

<bundles_post_ra>
// kernel: image_captioning_forward.1
= control target key start
LH: loop header
LB: loop body
LE: loop exit
PB: predicated region body
PF: predicated region fallthrough
CT: control target
= control target key end

     0   :  { %s8815_s0 = inlined_call_operand.vmem [shape: s32[16], index: 0, kind: input, shape index: {}]   ;;  %s8816_s1 = inlined_call_operand.vmem [shape: f32[512,32], index: 1, kind: input, shape index: {}]   ;;  %s8817_s2 = inlined_call_operand.vmem [shape: f32[32,128], index: 2, kind: input, shape index: {}]   ;;  %s8818_s3 = inlined_call_operand.vmem [shape: f32[1,128], index: 3, kind: input, shape index: {}]   ;;  %s8819_s4 = inlined_call_operand.vmem [shape: f32[8,512], index: 4, kind: input, shape index: {}]   ;;  %s8820_s5 = inlined_call_operand.vmem [shape: bf16[128,512], index: 5, kind: input, shape index: {}]   ;;  %s8821_s6 = inlined_call_operand.vmem [shape: f32[1,512], index: 6, kind: input, shape index: {}]   ;;  %s8822_s7 = inlined_call_operand.vmem [shape: f32[256,128], index: 7, kind: input, shape index: {}]   ;;  %s8823_s8 = inlined_call_operand.vmem [shape: bf16[512,128], index: 8, kind: input, shape index: {}]   ;;  %s8824_s9 = inlined_call_operand.vmem [shape: bf16[128,128], index: 9, kind: input, shape index: {}]   ;;  %s8825_s10 = inlined_call_operand.vmem [shape: f32[1,128], index: 10, kind: input, shape index: {}]   ;;  %s8826_s11 = inlined_call_operand.vmem [shape: bf16[128,512], index: 11, kind: input, shape index: {}]   ;;  %s8827_s12 = inlined_call_operand.vmem [shape: f32[1,512], index: 12, kind: input, shape index: {}]   ;;  %s8828_s13 = inlined_call_operand.vmem [shape: f32[128,512], index: 13, kind: input, shape index: {}]   ;;  %s8829_s14 = inlined_call_operand.vmem [shape: bf16[128,256], index: 14, kind: input, shape index: {}]   ;;  %s8830_s15 = inlined_call_operand.vmem [shape: f32[1,256], index: 15, kind: input, shape index: {}]   ;;  %s8831_s16 = inlined_call_operand.vmem [shape: f32[64,256], index: 16, kind: output, shape index: {}]  }
   0x1   :  { %8836 = sst [smem:[#allocation61_spill]] %s8815_s0 }
   0x2   :  { %21 = vsyncpa [#allocation10], 0  ;;  %s8837_s23 = sld [smem:[#allocation61_spill]] }
   0x8   :  { %s28_s24 = sshll.u32 %s8837_s23, 4  ;;  %s29_s24 = int_to_ptr.vmem [resolvable:$true] %s28_s24 }
   0x9   :  { %s6798_s25 = scalar_lea.vmem %s29_s24, 16  ;;  %p6803_p1 = scmp.lt.s32.totalorder %s29_s24, %s29_s24 }
   0xa   :  { %p6799_p0 = scmp.ne.s32.totalorder %s29_s24, %s6798_s25  ;;  %p6804_p2 = scmp.lt.s32.totalorder %s6798_s25, %s6798_s25 }
   0xc   :  { %p6805_p3 = por %p6804_p2, %p6803_p1 }
   0xe   :  { %p6806_p4 = pnand %p6805_p3, %p6799_p0 }
  0x10   :  { %6809 = shalt.err (!%p6806_p4)
}
  0x11   :  { %s6816_s26 = smov [#allocation9]  }
  0x12   :  { %31 = dma.vmem_to_smem %s29_s24, 16, %s6816_s26, [#allocation10]  }
  0x13   :  { %6810 = dma.done.wait [#allocation10], 16  }
  0x14   :  { %6811 = vsyncadd [#allocation10], 4294967280 }
  0x15   :  { %61 = sfence }
  0x16   :  { %v6909_v0 = vld [vmem:[%s8828_s13] sm:$0xff]  ;;  %v6914_v1 = vld [vmem:[%s8828_s13 + $0x8] sm:$0xff]  ;;  %v6919_v2 = vld [vmem:[%s8828_s13 + $0x10] sm:$0xff] }
  0x17   :  { %v6924_v3 = vld [vmem:[%s8828_s13 + $0x18] sm:$0xff]  ;;  %v6929_v4 = vld [vmem:[%s8828_s13 + $0x20] sm:$0xff]  ;;  %v6934_v5 = vld [vmem:[%s8828_s13 + $0x28] sm:$0xff] }
  0x18   :  { %v6939_v6 = vld [vmem:[%s8828_s13 + $0x30] sm:$0xff]  ;;  %v6944_v7 = vld [vmem:[%s8828_s13 + $0x38] sm:$0xff]  ;;  %v6949_v8 = vld [vmem:[%s8828_s13 + $0x40] sm:$0xff] }
  0x19   :  { %v6954_v9 = vld [vmem:[%s8828_s13 + $0x48] sm:$0xff]  ;;  %v6959_v10 = vld [vmem:[%s8828_s13 + $0x50] sm:$0xff]  ;;  %v6964_v11 = vld [vmem:[%s8828_s13 + $0x58] sm:$0xff] }
  0x1a   :  { %v6969_v12 = vld [vmem:[%s8828_s13 + $0x60] sm:$0xff]  ;;  %v6974_v13 = vld [vmem:[%s8828_s13 + $0x68] sm:$0xff]  ;;  %v6979_v14 = vld [vmem:[%s8828_s13 + $0x70] sm:$0xff] }
  0x1b   :  { %v6984_v15 = vld [vmem:[%s8828_s13 + $0x78] sm:$0xff]  ;;  %v6989_v16 = vld [vmem:[%s8828_s13 + $0x80] sm:$0xff]  ;;  %v6994_v17 = vld [vmem:[%s8828_s13 + $0x88] sm:$0xff] }
  0x1c   :  { %8838 = vst [vmem:[#allocation16_spill] sm:$0xff] %v6989_v16  ;;  %v6999_v18 = vld [vmem:[%s8828_s13 + $0x90] sm:$0xff]  ;;  %v7004_v19 = vld [vmem:[%s8828_s13 + $0x98] sm:$0xff]  ;;  %v7009_v20 = vld [vmem:[%s8828_s13 + $0xa0] sm:$0xff] }
  0x1d   :  { %8839 = vst [vmem:[#allocation17_spill] sm:$0xff] %v6999_v18  ;;  %8840 = vst [vmem:[#allocation18_spill] sm:$0xff] %v7009_v20  ;;  %v7014_v21 = vld [vmem:[%s8828_s13 + $0xa8] sm:$0xff]  ;;  %v7019_v22 = vld [vmem:[%s8828_s13 + $0xb0] sm:$0xff] }
  0x1e   :  { %8841 = vst [vmem:[#allocation19_spill] sm:$0xff] %v7019_v22  ;;  %v7024_v23 = vld [vmem:[%s8828_s13 + $0xb8] sm:$0xff]  ;;  %v7029_v24 = vld [vmem:[%s8828_s13 + $0xc0] sm:$0xff]  ;;  %v7034_v25 = vld [vmem:[%s8828_s13 + $0xc8] sm:$0xff] }
  0x1f   :  { %8842 = vst [vmem:[#allocation20_spill] sm:$0xff] %v7024_v23  ;;  %8843 = vst [vmem:[#allocation21_spill] sm:$0xff] %v7029_v24  ;;  %v7039_v26 = vld [vmem:[%s8828_s13 + $0xd0] sm:$0xff]  ;;  %v7044_v27 = vld [vmem:[%s8828_s13 + $0xd8] sm:$0xff] }
  0x20   :  { %8844 = vst [vmem:[#allocation22_spill] sm:$0xff] %v7034_v25  ;;  %8845 = vst [vmem:[#allocation23_spill] sm:$0xff] %v7039_v26  ;;  %v7049_v28 = vld [vmem:[%s8828_s13 + $0xe0] sm:$0xff]  ;;  %v7054_v29 = vld [vmem:[%s8828_s13 + $0xe8] sm:$0xff] }
  0x21   :  { %8846 = vst [vmem:[#allocation24_spill] sm:$0xff] %v7044_v27  ;;  %8847 = vst [vmem:[#allocation25_spill] sm:$0xff] %v7049_v28  ;;  %v7059_v30 = vld [vmem:[%s8828_s13 + $0xf0] sm:$0xff]  ;;  %v7064_v31 = vld [vmem:[%s8828_s13 + $0xf8] sm:$0xff] }
  0x22   :  { %8848 = vst [vmem:[#allocation26_spill] sm:$0xff] %v7054_v29  ;;  %8849 = vst [vmem:[#allocation27_spill] sm:$0xff] %v7059_v30  ;;  %v7069_v32 = vld [vmem:[%s8828_s13 + $0x100] sm:$0xff]  ;;  %v7074_v33 = vld [vmem:[%s8828_s13 + $0x108] sm:$0xff] }
  0x23   :  { %8850 = vst [vmem:[#allocation28_spill] sm:$0xff] %v7064_v31  ;;  %8851 = vst [vmem:[#allocation29_spill] sm:$0xff] %v7069_v32  ;;  %v7079_v34 = vld [vmem:[%s8828_s13 + $0x110] sm:$0xff]  ;;  %v7084_v35 = vld [vmem:[%s8828_s13 + $0x118] sm:$0xff] }
  0x24   :  { %8852 = vst [vmem:[#allocation30_spill] sm:$0xff] %v7074_v33  ;;  %8853 = vst [vmem:[#allocation31_spill] sm:$0xff] %v7079_v34  ;;  %v7089_v36 = vld [vmem:[%s8828_s13 + $0x120] sm:$0xff]  ;;  %v7094_v37 = vld [vmem:[%s8828_s13 + $0x128] sm:$0xff] }
  0x25   :  { %8854 = vst [vmem:[#allocation32_spill] sm:$0xff] %v7084_v35  ;;  %8855 = vst [vmem:[#allocation33_spill] sm:$0xff] %v7089_v36  ;;  %v7099_v38 = vld [vmem:[%s8828_s13 + $0x130] sm:$0xff]  ;;  %v7104_v39 = vld [vmem:[%s8828_s13 + $0x138] sm:$0xff] }
  0x26   :  { %8856 = vst [vmem:[#allocation34_spill] sm:$0xff] %v7094_v37  ;;  %8857 = vst [vmem:[#allocation35_spill] sm:$0xff] %v7099_v38  ;;  %v7109_v40 = vld [vmem:[%s8828_s13 + $0x140] sm:$0xff]  ;;  %v7114_v41 = vld [vmem:[%s8828_s13 + $0x148] sm:$0xff] }
  0x27   :  { %8858 = vst [vmem:[#allocation36_spill] sm:$0xff] %v7104_v39  ;;  %8859 = vst [vmem:[#allocation37_spill] sm:$0xff] %v7109_v40  ;;  %v7119_v42 = vld [vmem:[%s8828_s13 + $0x150] sm:$0xff]  ;;  %v7124_v43 = vld [vmem:[%s8828_s13 + $0x158] sm:$0xff] }
  0x28   :  { %8860 = vst [vmem:[#allocation38_spill] sm:$0xff] %v7114_v41  ;;  %8861 = vst [vmem:[#allocation39_spill] sm:$0xff] %v7119_v42  ;;  %v7129_v44 = vld [vmem:[%s8828_s13 + $0x160] sm:$0xff]  ;;  %v7134_v45 = vld [vmem:[%s8828_s13 + $0x168] sm:$0xff] }
  0x29   :  { %8862 = vst [vmem:[#allocation40_spill] sm:$0xff] %v7124_v43  ;;  %8863 = vst [vmem:[#allocation41_spill] sm:$0xff] %v7129_v44  ;;  %v7139_v46 = vld [vmem:[%s8828_s13 + $0x170] sm:$0xff]  ;;  %v7144_v47 = vld [vmem:[%s8828_s13 + $0x178] sm:$0xff] }
  0x2a   :  { %8864 = vst [vmem:[#allocation42_spill] sm:$0xff] %v7134_v45  ;;  %8865 = vst [vmem:[#allocation43_spill] sm:$0xff] %v7139_v46  ;;  %v7149_v48 = vld [vmem:[%s8828_s13 + $0x180] sm:$0xff]  ;;  %v7154_v49 = vld [vmem:[%s8828_s13 + $0x188] sm:$0xff] }
  0x2b   :  { %8866 = vst [vmem:[#allocation44_spill] sm:$0xff] %v7144_v47  ;;  %8867 = vst [vmem:[#allocation45_spill] sm:$0xff] %v7149_v48  ;;  %v7159_v50 = vld [vmem:[%s8828_s13 + $0x190] sm:$0xff]  ;;  %v7164_v51 = vld [vmem:[%s8828_s13 + $0x198] sm:$0xff] }
  0x2c   :  { %8868 = vst [vmem:[#allocation46_spill] sm:$0xff] %v7154_v49  ;;  %8869 = vst [vmem:[#allocation47_spill] sm:$0xff] %v7159_v50  ;;  %v7169_v52 = vld [vmem:[%s8828_s13 + $0x1a0] sm:$0xff]  ;;  %v7174_v53 = vld [vmem:[%s8828_s13 + $0x1a8] sm:$0xff] }
  0x2d   :  { %8870 = vst [vmem:[#allocation48_spill] sm:$0xff] %v7164_v51  ;;  %8871 = vst [vmem:[#allocation49_spill] sm:$0xff] %v7169_v52  ;;  %v7179_v54 = vld [vmem:[%s8828_s13 + $0x1b0] sm:$0xff]  ;;  %v7184_v55 = vld [vmem:[%s8828_s13 + $0x1b8] sm:$0xff] }
  0x2e   :  { %8872 = vst [vmem:[#allocation50_spill] sm:$0xff] %v7174_v53  ;;  %8873 = vst [vmem:[#allocation51_spill] sm:$0xff] %v7179_v54  ;;  %v7189_v56 = vld [vmem:[%s8828_s13 + $0x1c0] sm:$0xff]  ;;  %v7194_v57 = vld [vmem:[%s8828_s13 + $0x1c8] sm:$0xff] }
  0x2f   :  { %8874 = vst [vmem:[#allocation52_spill] sm:$0xff] %v7184_v55  ;;  %8875 = vst [vmem:[#allocation53_spill] sm:$0xff] %v7189_v56  ;;  %v7199_v58 = vld [vmem:[%s8828_s13 + $0x1d0] sm:$0xff]  ;;  %v7204_v59 = vld [vmem:[%s8828_s13 + $0x1d8] sm:$0xff] }
  0x30   :  { %8876 = vst [vmem:[#allocation54_spill] sm:$0xff] %v7194_v57  ;;  %8877 = vst [vmem:[#allocation55_spill] sm:$0xff] %v7199_v58  ;;  %v7209_v60 = vld [vmem:[%s8828_s13 + $0x1e0] sm:$0xff]  ;;  %v7214_v61 = vld [vmem:[%s8828_s13 + $0x1e8] sm:$0xff] }
  0x31   :  { %8878 = vst [vmem:[#allocation56_spill] sm:$0xff] %v7204_v59  ;;  %8879 = vst [vmem:[#allocation57_spill] sm:$0xff] %v7209_v60  ;;  %v7219_v62 = vld [vmem:[%s8828_s13 + $0x1f0] sm:$0xff]  ;;  %v7224_v63 = vld [vmem:[%s8828_s13 + $0x1f8] sm:$0xff] }
  0x32   :  { %8880 = vst [vmem:[#allocation58_spill] sm:$0xff] %v7214_v61  ;;  %8881 = vst [vmem:[#allocation59_spill] sm:$0xff] %v7219_v62 }
  0x33   :  { %8882 = vst [vmem:[#allocation60_spill] sm:$0xff] %v7224_v63 }
  0x34   :  { %229 = vsyncadd [#allocation8], 8192  ;;  %v248_v58 = vld [vmem:[%s8829_s14] sm:$0xf]  ;;  %v250_v60 = vld [vmem:[%s8829_s14 + $0x8] sm:$0xf] }
  0x35   :  { %249 = vst [vmem:[#allocation7] sm:$0xf] %v248_v58  ;;  %251 = vst [vmem:[#allocation7 + $0x4] sm:$0xf] %v250_v60  ;;  %v252_v62 = vld [vmem:[%s8829_s14 + $0x4] sm:$0xf] }
  0x36   :  { %v254_v56 = vld [vmem:[%s8829_s14 + $0xc] sm:$0xff]   ;;  %v258_v63 = vld [vmem:[%s8829_s14 + $0x18] sm:$0xf]  ;;  %253 = vst [vmem:[#allocation7 + $0x8] sm:$0xf] %v252_v62  ;;  %v262_v60 = vld [vmem:[%s8829_s14 + $0x1c] sm:$0xff]  }
  0x37   :  { %255 = vst [vmem:[#allocation7 + $0xc] sm:$0xff] %v254_v56   ;;  %259 = vst [vmem:[#allocation7 + $0x14] sm:$0xf] %v258_v63  ;;  %v260_v58 = vld [vmem:[%s8829_s14 + $0x14] sm:$0xf]  ;;  %v270_v62 = vld [vmem:[%s8829_s14 + $0x2c] sm:$0xff]  }
  0x38   :  { %v266_v59 = vld [vmem:[%s8829_s14 + $0x28] sm:$0xf]  ;;  %261 = vst [vmem:[#allocation7 + $0x18] sm:$0xf] %v260_v58  ;;  %263 = vst [vmem:[#allocation7 + $0x1c] sm:$0xff] %v262_v60  }
  0x39   :  { %267 = vst [vmem:[#allocation7 + $0x24] sm:$0xf] %v266_v59  ;;  %v268_v56 = vld [vmem:[%s8829_s14 + $0x24] sm:$0xf]  ;;  %v274_v63 = vld [vmem:[%s8829_s14 + $0x38] sm:$0xf] }
  0x3a   :  { %269 = vst [vmem:[#allocation7 + $0x28] sm:$0xf] %v268_v56  ;;  %271 = vst [vmem:[#allocation7 + $0x2c] sm:$0xff] %v270_v62   ;;  %v276_v58 = vld [vmem:[%s8829_s14 + $0x34] sm:$0xf]  ;;  %v278_v59 = vld [vmem:[%s8829_s14 + $0x3c] sm:$0xff]  }
  0x3b   :  { %275 = vst [vmem:[#allocation7 + $0x34] sm:$0xf] %v274_v63  ;;  %v282_v60 = vld [vmem:[%s8829_s14 + $0x48] sm:$0xf]  ;;  %277 = vst [vmem:[#allocation7 + $0x38] sm:$0xf] %v276_v58 }
  0x3c   :  { %279 = vst [vmem:[#allocation7 + $0x3c] sm:$0xff] %v278_v59   ;;  %283 = vst [vmem:[#allocation7 + $0x44] sm:$0xf] %v282_v60  ;;  %v284_v56 = vld [vmem:[%s8829_s14 + $0x44] sm:$0xf]  ;;  %v286_v62 = vld [vmem:[%s8829_s14 + $0x4c] sm:$0xff]  }
  0x3d   :  { %v290_v63 = vld [vmem:[%s8829_s14 + $0x58] sm:$0xf]  ;;  %285 = vst [vmem:[#allocation7 + $0x48] sm:$0xf] %v284_v56  ;;  %287 = vst [vmem:[#allocation7 + $0x4c] sm:$0xff] %v286_v62   ;;  %v294_v59 = vld [vmem:[%s8829_s14 + $0x5c] sm:$0xff]  }
  0x3e   :  { %291 = vst [vmem:[#allocation7 + $0x54] sm:$0xf] %v290_v63  ;;  %v292_v58 = vld [vmem:[%s8829_s14 + $0x54] sm:$0xf]  ;;  %v298_v60 = vld [vmem:[%s8829_s14 + $0x68] sm:$0xf] }
  0x3f   :  { %293 = vst [vmem:[#allocation7 + $0x58] sm:$0xf] %v292_v58  ;;  %295 = vst [vmem:[#allocation7 + $0x5c] sm:$0xff] %v294_v59   ;;  %v300_v56 = vld [vmem:[%s8829_s14 + $0x64] sm:$0xf]  ;;  %v302_v62 = vld [vmem:[%s8829_s14 + $0x6c] sm:$0xff]  }
  0x40   :  { %299 = vst [vmem:[#allocation7 + $0x64] sm:$0xf] %v298_v60  ;;  %v306_v63 = vld [vmem:[%s8829_s14 + $0x78] sm:$0xf]  ;;  %301 = vst [vmem:[#allocation7 + $0x68] sm:$0xf] %v300_v56 }
  0x41   :  { %303 = vst [vmem:[#allocation7 + $0x6c] sm:$0xff] %v302_v62   ;;  %307 = vst [vmem:[#allocation7 + $0x74] sm:$0xf] %v306_v63  ;;  %v308_v58 = vld [vmem:[%s8829_s14 + $0x74] sm:$0xf] }
  0x42   :  { %v310_v59 = vld [vmem:[%s8829_s14 + $0x7c] sm:$0xf]  ;;  %309 = vst [vmem:[#allocation7 + $0x78] sm:$0xf] %v308_v58 }
  0x43   :  { %311 = vst [vmem:[#allocation7 + $0x7c] sm:$0xf] %v310_v59 }
  0x44   :  { %406 = vsyncadd [#allocation8 + $0x1], 2048  ;;  %v543_v60 = vld [vmem:[%s8817_s2] sm:$0xff]  ;;  %v544_v56 = vld [vmem:[%s8817_s2 + $0x8] sm:$0xff]  ;;  %vm554_vm0 = vcmask 261120   ;;  %s415_s0 = sld [smem:[#allocation9]] }
  0x45   :  { %v5508_v62 = vpack.c.bf16 %v544_v56, %v543_v60  ;;  %v545_v63 = vld [vmem:[%s8817_s2 + $0x10] sm:$0xff]  ;;  %v546_v58 = vld [vmem:[%s8817_s2 + $0x18] sm:$0xff]  ;;  %v479_v59 = vld [vmem:[%s8816_s1] sm:$0xff]  ;;  %s4848_s17 = sld [smem:[#allocation9 + $0x1]]  ;;  %s4853_s19 = sld [smem:[#allocation9 + $0xb]] }
  0x46   :  { %v5512_v54 = vpack.c.bf16 %v546_v58, %v545_v63  ;;  %5368 = vmatprep.mubr.msk.f32.mxu0 %vm554_vm0, %v479_v59  ;;  %v480_v60 = vld [vmem:[%s8816_s1 + $0x8] sm:$0xff]  ;;  %v481_v56 = vld [vmem:[%s8816_s1 + $0x10] sm:$0xff]  ;;  %v482_v63 = vld [vmem:[%s8816_s1 + $0x18] sm:$0xff]  ;;  %s4849_s18 = sld [smem:[#allocation9 + $0x9]]  ;;  %s4854_s30 = sld [smem:[#allocation9 + $0x4]] }
  0x47   :  { %5509 = vmatprep.subr.bf16.mxu0 %v5508_v62  ;;  %v485_v58 = vld [vmem:[%s8816_s1 + $0x30] sm:$0xff]  ;;  %v486_v59 = vld [vmem:[%s8816_s1 + $0x38] sm:$0xff]  ;;  %s4859_s13 = sld [smem:[#allocation9 + $0xe]]  ;;  %s4860_s28 = sld [smem:[#allocation9 + $0x7]]  ;;  %v4927_v22 = vld [vmem:[%s8825_s10] ss:$0 sm:$0xff] }
  0x48   :  { %5511 = vmatpush3.bf16.msra.mxu0 %v5508_v62  ;;  %v484_v62 = vld [vmem:[%s8816_s1 + $0x28] sm:$0xff]  ;;  %v1263_v48 = vld [vmem:[%s8819_s4 + $0x18] sm:$0xff]  ;;  %v8141_v32 = vld [vmem:[%s8826_s11 + $0xc4] ss:$16 sps:$4 sm:$0xff]  }
  0x49   :  { %5513 = vmatprep.subr.bf16.mxu0 %v5512_v54  ;;  %1462 = vmatprep.mubr.f32.mxu1 %v1263_v48  ;;  %v8136_v36 = vld [vmem:[%s8826_s11 + $0xa8] ss:$16 sps:$4 sm:$0xff]   ;;  %v8147_v39 = vld [vmem:[%s8826_s11 + $0xcc] ss:$16 sps:$4 sm:$0xff]   ;;  %v8153_v35 = vld [vmem:[%s8826_s11 + $0xc0] ss:$16 sps:$4 sm:$0xff]  }
  0x4a   :  { %s416_s24 = scalar_lea.vmem %s8822_s7, %s415_s0  ;;  %s4850_s0 = sld [smem:[#allocation9 + $0x2]]  ;;  %v8160_v30 = vld [vmem:[%s8826_s11 + $0xc8] ss:$16 sps:$4 sm:$0xff]   ;;  %v8168_v26 = vld [vmem:[%s8826_s11 + $0xe4] ss:$16 sps:$4 sm:$0xff]  }
  0x4b   :  { %v8173_v37 = vld [vmem:[%s8826_s11 + $0xe0] ss:$16 sps:$4 sm:$0xff]   ;;  %v8178_v33 = vld [vmem:[%s8826_s11 + $0xec] ss:$16 sps:$4 sm:$0xff]   ;;  %v8183_v28 = vld [vmem:[%s8826_s11 + $0xe8] ss:$16 sps:$4 sm:$0xff]  }
  0x4c   :  { %5515 = vmatpush3.bf16.msra.mxu0 %v5512_v54  ;;  %v483_v54 = vld [vmem:[%s8816_s1 + $0x20] sm:$0xff]  ;;  %s428_s2 = scalar_lea.vmem %s8822_s7, %s4849_s18  ;;  %s448_s21 = scalar_lea.vmem %s8822_s7, %s4854_s30 }
  0x4f   :  { %5369 = vmatmul.mubr.msk.f32.vlgmr.msra.gmra.mrb[0].mxu0 %vm554_vm0, %v480_v60  ;;  %v487_v60 = vld [vmem:[%s8816_s1 + $0x40] sm:$0xff] }
  0x50   :  { %5371 = vmatprep.mubr.msk.f32.mxu0 %vm554_vm0, %v481_v56  ;;  %v488_v56 = vld [vmem:[%s8816_s1 + $0x48] sm:$0xff] }
  0x53   :  { %5372 = vmatmul.mubr.msk.f32.gmra.mrb[2].mxu0 %vm554_vm0, %v482_v63  ;;  %v489_v63 = vld [vmem:[%s8816_s1 + $0x50] sm:$0xff] }
  0x54   :  { %5374 = vmatprep.mubr.msk.f32.mxu0 %vm554_vm0, %v483_v54  ;;  %v490_v54 = vld [vmem:[%s8816_s1 + $0x58] sm:$0xff] }
  0x57   :  { %5375 = vmatmul.mubr.msk.f32.gmra.mrb[4].mxu0 %vm554_vm0, %v484_v62  ;;  %v491_v62 = vld [vmem:[%s8816_s1 + $0x60] sm:$0xff] }
  0x58   :  { %5377 = vmatprep.mubr.msk.f32.mxu0 %vm554_vm0, %v485_v58  ;;  %v492_v58 = vld [vmem:[%s8816_s1 + $0x68] sm:$0xff] }
  0x5b   :  { %5378 = vmatmul.mubr.msk.f32.gmra.mrb[6].mxu0 %vm554_vm0, %v486_v59  ;;  %v493_v59 = vld [vmem:[%s8816_s1 + $0x70] sm:$0xff] }
  0x5c   :  { %5380 = vmatprep.mubr.msk.f32.mxu0 %vm554_vm0, %v487_v60  ;;  %v494_v60 = vld [vmem:[%s8816_s1 + $0x78] sm:$0xff] }
  0x5f   :  { %5381 = vmatmul.mubr.msk.f32.gmra.mrb[8].mxu0 %vm554_vm0, %v488_v56  ;;  %v495_v56 = vld [vmem:[%s8816_s1 + $0x80] sm:$0xff] }
  0x60   :  { %5383 = vmatprep.mubr.msk.f32.mxu0 %vm554_vm0, %v489_v63  ;;  %v496_v63 = vld [vmem:[%s8816_s1 + $0x88] sm:$0xff] }
  0x63   :  { %5384 = vmatmul.mubr.msk.f32.gmra.mrb[10].mxu0 %vm554_vm0, %v490_v54  ;;  %v497_v54 = vld [vmem:[%s8816_s1 + $0x90] sm:$0xff] }
  0x64   :  { %5386 = vmatprep.mubr.msk.f32.mxu0 %vm554_vm0, %v491_v62  ;;  %v498_v62 = vld [vmem:[%s8816_s1 + $0x98] sm:$0xff] }
  0x67   :  { %5387 = vmatmul.mubr.msk.f32.gmra.mrb[12].mxu0 %vm554_vm0, %v492_v58  ;;  %v499_v58 = vld [vmem:[%s8816_s1 + $0xa0] sm:$0xff] }
  0x68   :  { %5389 = vmatprep.mubr.msk.f32.mxu0 %vm554_vm0, %v493_v59  ;;  %v500_v59 = vld [vmem:[%s8816_s1 + $0xa8] sm:$0xff] }
  0x6b   :  { %5390 = vmatmul.mubr.msk.f32.gmra.mrb[14].mxu0 %vm554_vm0, %v494_v60  ;;  %v501_v60 = vld [vmem:[%s8816_s1 + $0xb0] sm:$0xff] }
  0x6c   :  { %5392 = vmatprep.mubr.msk.f32.mxu0 %vm554_vm0, %v495_v56  ;;  %v502_v56 = vld [vmem:[%s8816_s1 + $0xb8] sm:$0xff] }
  0x6f   :  { %5393 = vmatmul.mubr.msk.f32.gmra.mrb[16].mxu0 %vm554_vm0, %v496_v63  ;;  %v503_v63 = vld [vmem:[%s8816_s1 + $0xc0] sm:$0xff] }
  0x70   :  { %5395 = vmatprep.mubr.msk.f32.mxu0 %vm554_vm0, %v497_v54  ;;  %v504_v54 = vld [vmem:[%s8816_s1 + $0xc8] sm:$0xff] }
  0x73   :  { %5396 = vmatmul.mubr.msk.f32.gmra.mrb[18].mxu0 %vm554_vm0, %v498_v62  ;;  %v505_v62 = vld [vmem:[%s8816_s1 + $0xd0] sm:$0xff] }
  0x74   :  { %5398 = vmatprep.mubr.msk.f32.mxu0 %vm554_vm0, %v499_v58  ;;  %v506_v58 = vld [vmem:[%s8816_s1 + $0xd8] sm:$0xff] }
  0x77   :  { %5399 = vmatmul.mubr.msk.f32.gmra.mrb[20].mxu0 %vm554_vm0, %v500_v59  ;;  %v507_v59 = vld [vmem:[%s8816_s1 + $0xe0] sm:$0xff] }
  0x78   :  { %5401 = vmatprep.mubr.msk.f32.mxu0 %vm554_vm0, %v501_v60  ;;  %v508_v60 = vld [vmem:[%s8816_s1 + $0xe8] sm:$0xff] }
  0x7b   :  { %5402 = vmatmul.mubr.msk.f32.gmra.mrb[22].mxu0 %vm554_vm0, %v502_v56  ;;  %v509_v56 = vld [vmem:[%s8816_s1 + $0xf0] sm:$0xff] }
  0x7c   :  { %5404 = vmatprep.mubr.msk.f32.mxu0 %vm554_vm0, %v503_v63  ;;  %v510_v63 = vld [vmem:[%s8816_s1 + $0xf8] sm:$0xff] }
  0x7f   :  { %5405 = vmatmul.mubr.msk.f32.gmra.mrb[24].mxu0 %vm554_vm0, %v504_v54  ;;  %v511_v54 = vld [vmem:[%s8816_s1 + $0x100] sm:$0xff] }
  0x80   :  { %5407 = vmatprep.mubr.msk.f32.mxu0 %vm554_vm0, %v505_v62  ;;  %v512_v62 = vld [vmem:[%s8816_s1 + $0x108] sm:$0xff] }
  0x83   :  { %5408 = vmatmul.mubr.msk.f32.gmra.mrb[26].mxu0 %vm554_vm0, %v506_v58  ;;  %v513_v58 = vld [vmem:[%s8816_s1 + $0x110] sm:$0xff] }
  0x84   :  { %5410 = vmatprep.mubr.msk.f32.mxu0 %vm554_vm0, %v507_v59  ;;  %v514_v59 = vld [vmem:[%s8816_s1 + $0x118] sm:$0xff] }
  0x87   :  { %5411 = vmatmul.mubr.msk.f32.gmra.mrb[28].mxu0 %vm554_vm0, %v508_v60  ;;  %v515_v60 = vld [vmem:[%s8816_s1 + $0x120] sm:$0xff] }
  0x88   :  { %5413 = vmatprep.mubr.msk.f32.mxu0 %vm554_vm0, %v509_v56  ;;  %v516_v56 = vld [vmem:[%s8816_s1 + $0x128] sm:$0xff] }
  0x8b   :  { %5414 = vmatmul.mubr.msk.f32.gmra.mrb[30].mxu0 %vm554_vm0, %v510_v63  ;;  %v517_v63 = vld [vmem:[%s8816_s1 + $0x130] sm:$0xff] }
  0x8c   :  { %5416 = vmatprep.mubr.msk.f32.mxu0 %vm554_vm0, %v511_v54  ;;  %v518_v54 = vld [vmem:[%s8816_s1 + $0x138] sm:$0xff] }
  0x8f   :  { %5417 = vmatmul.mubr.msk.f32.gmra.mrb[32].mxu0 %vm554_vm0, %v512_v62  ;;  %v519_v62 = vld [vmem:[%s8816_s1 + $0x140] sm:$0xff] }
  0x90   :  { %5419 = vmatprep.mubr.msk.f32.mxu0 %vm554_vm0, %v513_v58  ;;  %v520_v58 = vld [vmem:[%s8816_s1 + $0x148] sm:$0xff] }
  0x93   :  { %5420 = vmatmul.mubr.msk.f32.gmra.mrb[34].mxu0 %vm554_vm0, %v514_v59  ;;  %v521_v59 = vld [vmem:[%s8816_s1 + $0x150] sm:$0xff] }
  0x94   :  { %5422 = vmatprep.mubr.msk.f32.mxu0 %vm554_vm0, %v515_v60  ;;  %v522_v60 = vld [vmem:[%s8816_s1 + $0x158] sm:$0xff] }
  0x97   :  { %5423 = vmatmul.mubr.msk.f32.gmra.mrb[36].mxu0 %vm554_vm0, %v516_v56  ;;  %v523_v56 = vld [vmem:[%s8816_s1 + $0x160] sm:$0xff] }
  0x98   :  { %5425 = vmatprep.mubr.msk.f32.mxu0 %vm554_vm0, %v517_v63  ;;  %v524_v63 = vld [vmem:[%s8816_s1 + $0x168] sm:$0xff] }
  0x9b   :  { %5426 = vmatmul.mubr.msk.f32.gmra.mrb[38].mxu0 %vm554_vm0, %v518_v54  ;;  %v525_v54 = vld [vmem:[%s8816_s1 + $0x170] sm:$0xff] }
  0x9c   :  { %5428 = vmatprep.mubr.msk.f32.mxu0 %vm554_vm0, %v519_v62  ;;  %v526_v62 = vld [vmem:[%s8816_s1 + $0x178] sm:$0xff] }
  0x9f   :  { %5429 = vmatmul.mubr.msk.f32.gmra.mrb[40].mxu0 %vm554_vm0, %v520_v58  ;;  %v527_v58 = vld [vmem:[%s8816_s1 + $0x180] sm:$0xff] }
  0xa0   :  { %5431 = vmatprep.mubr.msk.f32.mxu0 %vm554_vm0, %v521_v59  ;;  %v528_v59 = vld [vmem:[%s8816_s1 + $0x188] sm:$0xff] }
  0xa3   :  { %5432 = vmatmul.mubr.msk.f32.gmra.mrb[42].mxu0 %vm554_vm0, %v522_v60  ;;  %v529_v60 = vld [vmem:[%s8816_s1 + $0x190] sm:$0xff] }
  0xa4   :  { %5434 = vmatprep.mubr.msk.f32.mxu0 %vm554_vm0, %v523_v56  ;;  %v530_v56 = vld [vmem:[%s8816_s1 + $0x198] sm:$0xff] }
  0xa7   :  { %5435 = vmatmul.mubr.msk.f32.gmra.mrb[44].mxu0 %vm554_vm0, %v524_v63  ;;  %v531_v63 = vld [vmem:[%s8816_s1 + $0x1a0] sm:$0xff] }
  0xa8   :  { %5437 = vmatprep.mubr.msk.f32.mxu0 %vm554_vm0, %v525_v54  ;;  %v532_v54 = vld [vmem:[%s8816_s1 + $0x1a8] sm:$0xff] }
  0xab   :  { %5438 = vmatmul.mubr.msk.f32.gmra.mrb[46].mxu0 %vm554_vm0, %v526_v62  ;;  %v533_v62 = vld [vmem:[%s8816_s1 + $0x1b0] sm:$0xff] }
  0xac   :  { %5440 = vmatprep.mubr.msk.f32.mxu0 %vm554_vm0, %v527_v58  ;;  %v534_v58 = vld [vmem:[%s8816_s1 + $0x1b8] sm:$0xff] }
  0xaf   :  { %5441 = vmatmul.mubr.msk.f32.gmra.mrb[48].mxu0 %vm554_vm0, %v528_v59  ;;  %v535_v59 = vld [vmem:[%s8816_s1 + $0x1c0] sm:$0xff] }
  0xb0   :  { %5443 = vmatprep.mubr.msk.f32.mxu0 %vm554_vm0, %v529_v60  ;;  %v536_v60 = vld [vmem:[%s8816_s1 + $0x1c8] sm:$0xff] }
  0xb3   :  { %5444 = vmatmul.mubr.msk.f32.gmra.mrb[50].mxu0 %vm554_vm0, %v530_v56  ;;  %v537_v56 = vld [vmem:[%s8816_s1 + $0x1d0] sm:$0xff] }
  0xb4   :  { %5446 = vmatprep.mubr.msk.f32.mxu0 %vm554_vm0, %v531_v63  ;;  %v538_v63 = vld [vmem:[%s8816_s1 + $0x1d8] sm:$0xff] }
  0xb7   :  { %5447 = vmatmul.mubr.msk.f32.gmra.mrb[52].mxu0 %vm554_vm0, %v532_v54  ;;  %v539_v54 = vld [vmem:[%s8816_s1 + $0x1e0] sm:$0xff] }
  0xb8   :  { %5449 = vmatprep.mubr.msk.f32.mxu0 %vm554_vm0, %v533_v62  ;;  %v540_v62 = vld [vmem:[%s8816_s1 + $0x1e8] sm:$0xff] }
  0xbb   :  { %5450 = vmatmul.mubr.msk.f32.gmra.mrb[54].mxu0 %vm554_vm0, %v534_v58  ;;  %v541_v58 = vld [vmem:[%s8816_s1 + $0x1f0] sm:$0xff] }
  0xbc   :  { %5452 = vmatprep.mubr.msk.f32.mxu0 %vm554_vm0, %v535_v59  ;;  %v542_v59 = vld [vmem:[%s8816_s1 + $0x1f8] sm:$0xff]  ;;  %s4847_s1 = sld [smem:[#allocation9 + $0x8]] }
  0xbf   :  { %5453 = vmatmul.mubr.msk.f32.gmra.mrb[56].mxu0 %vm554_vm0, %v536_v60  ;;  %v7572_v60 = vld [vmem:[%s8818_s3] ss:$0 sm:$0xff]  ;;  %s4852_s3 = sld [smem:[#allocation9 + $0x3]] }
  0xc0   :  { %5455 = vmatprep.mubr.msk.f32.mxu0 %vm554_vm0, %v537_v56 }
  0xc2   :  { %s420_s27 = scalar_lea.vmem %s8822_s7, %s4847_s1  ;;  %s4851_s1 = sld [smem:[#allocation9 + $0xa]] }
  0xc3   :  { %5456 = vmatmul.mubr.msk.f32.gmra.mrb[58].mxu0 %vm554_vm0, %v538_v63 }
  0xc4   :  { %5458 = vmatprep.mubr.msk.f32.mxu0 %vm554_vm0, %v539_v54 }
  0xc5   :  { %s440_s14 = scalar_lea.vmem %s8822_s7, %s4852_s3  ;;  %s472_s3 = scalar_lea.vmem %s8822_s7, %s4860_s28 }
  0xc7   :  { %5459 = vmatmul.mubr.msk.f32.gmra.mrb[60].mxu0 %vm554_vm0, %v540_v62 }
  0xc8   :  { %5461 = vmatprep.mubr.msk.f32.mxu0 %vm554_vm0, %v541_v58 }
  0xcb   :  { %5462 = vmatmul.mubr.msk.f32.gmra.mrb[62].mxu0 %vm554_vm0, %v542_v59  ;;  %v1261_v59 = vld [vmem:[%s8819_s4 + $0x8] sm:$0xff] }
  0xcc   :  { %1392 = vmatprep.mubr.f32.mxu0 %v1261_v59 }
 0x122   :  { %v5370_v56 = vpop.f32.mrb[0].mxu0 }
 0x123   :  { %v819_v63 = vadd.f32 %v5370_v56, %v7572_v60  ;;  %v813_v54 = vpop.f32.mrb[1].mxu0 }
 0x124   :  { %v814_v50 = vadd.f32 %v7572_v60, %v813_v54 }
 0x125   :  { %v1133_v62 = vmax.f32 %v819_v63, 0.0 }
 0x126   :  { %v1132_v61 = vmax.f32 %v814_v50, 0.0  ;;  %v5373_v58 = vpop.f32.mrb[2].mxu0 }
 0x127   :  { %v829_v57 = vadd.f32 %v5373_v58, %v7572_v60  ;;  %v823_v52 = vpop.f32.mrb[3].mxu0 }
 0x128   :  { %v7583_v55 = vpack.c.bf16 %v1133_v62, %v1132_v61  ;;  %v824_v56 = vadd.f32 %v7572_v60, %v823_v52 }
 0x129   :  { %v1135_v63 = vmax.f32 %v829_v57, 0.0 }
 0x12a   :  { %v1134_v50 = vmax.f32 %v824_v56, 0.0  ;;  %v5376_v54 = vpop.f32.mrb[4].mxu0 }
 0x12b   :  { %v839_v58 = vadd.f32 %v5376_v54, %v7572_v60  ;;  %v833_v51 = vpop.f32.mrb[5].mxu0 }
 0x12c   :  { %v7587_v46 = vpack.c.bf16 %v1135_v63, %v1134_v50  ;;  %v834_v42 = vadd.f32 %v7572_v60, %v833_v51 }
 0x12d   :  { %v1137_v53 = vmax.f32 %v839_v58, 0.0 }
 0x12e   :  { %v1136_v49 = vmax.f32 %v834_v42, 0.0  ;;  %v5379_v44 = vpop.f32.mrb[6].mxu0 }
 0x12f   :  { %v849_v61 = vadd.f32 %v5379_v44, %v7572_v60  ;;  %v843_v62 = vpop.f32.mrb[7].mxu0 }
 0x130   :  { %v7591_v40 = vpack.c.bf16 %v1137_v53, %v1136_v49  ;;  %v844_v48 = vadd.f32 %v7572_v60, %v843_v62 }
 0x131   :  { %v1139_v52 = vmax.f32 %v849_v61, 0.0 }
 0x132   :  { %v1138_v57 = vmax.f32 %v844_v48, 0.0  ;;  %v5382_v59 = vpop.f32.mrb[8].mxu0 }
 0x133   :  { %v859_v56 = vadd.f32 %v5382_v59, %v7572_v60  ;;  %v853_v54 = vpop.f32.mrb[9].mxu0 }
 0x134   :  { %v7595_v63 = vpack.c.bf16 %v1139_v52, %v1138_v57  ;;  %v854_v51 = vadd.f32 %v7572_v60, %v853_v54 }
 0x135   :  { %v1141_v50 = vmax.f32 %v859_v56, 0.0 }
 0x136   :  { %v1140_v42 = vmax.f32 %v854_v51, 0.0  ;;  %v5385_v58 = vpop.f32.mrb[10].mxu0 }
 0x137   :  { %v869_v44 = vadd.f32 %v5385_v58, %v7572_v60  ;;  %v863_v47 = vpop.f32.mrb[11].mxu0 }
 0x138   :  { %v7599_v49 = vpack.c.bf16 %v1141_v50, %v1140_v42  ;;  %v864_v53 = vadd.f32 %v7572_v60, %v863_v47 }
 0x139   :  { %v1143_v61 = vmax.f32 %v869_v44, 0.0 }
 0x13a   :  { %v1142_v62 = vmax.f32 %v864_v53, 0.0  ;;  %v5388_v48 = vpop.f32.mrb[12].mxu0 }
 0x13b   :  { %v879_v59 = vadd.f32 %v5388_v48, %v7572_v60  ;;  %v873_v43 = vpop.f32.mrb[13].mxu0 }
 0x13c   :  { %v7603_v52 = vpack.c.bf16 %v1143_v61, %v1142_v62  ;;  %v874_v57 = vadd.f32 %v7572_v60, %v873_v43 }
 0x13d   :  { %v1145_v56 = vmax.f32 %v879_v59, 0.0 }
 0x13e   :  { %v1144_v54 = vmax.f32 %v874_v57, 0.0  ;;  %v5391_v51 = vpop.f32.mrb[14].mxu0 }
 0x13f   :  { %v889_v58 = vadd.f32 %v5391_v51, %v7572_v60  ;;  %v883_v38 = vpop.f32.mrb[15].mxu0 }
 0x140   :  { %v7607_v50 = vpack.c.bf16 %v1145_v56, %v1144_v54  ;;  %v884_v47 = vadd.f32 %v7572_v60, %v883_v38 }
 0x141   :  { %v1147_v42 = vmax.f32 %v889_v58, 0.0 }
 0x142   :  { %v1146_v44 = vmax.f32 %v884_v47, 0.0  ;;  %v5394_v53 = vpop.f32.mrb[16].mxu0 }
 0x143   :  { %v899_v48 = vadd.f32 %v5394_v53, %v7572_v60  ;;  %v893_v34 = vpop.f32.mrb[17].mxu0 }
 0x144   :  { %v7611_v61 = vpack.c.bf16 %v1147_v42, %v1146_v44  ;;  %v894_v43 = vadd.f32 %v7572_v60, %v893_v34 }
 0x145   :  { %v1149_v62 = vmax.f32 %v899_v48, 0.0 }
 0x146   :  { %v1148_v59 = vmax.f32 %v894_v43, 0.0  ;;  %v5397_v57 = vpop.f32.mrb[18].mxu0 }
 0x147   :  { %v909_v51 = vadd.f32 %v5397_v57, %v7572_v60  ;;  %v903_v45 = vpop.f32.mrb[19].mxu0 }
 0x148   :  { %v5516_v56 = vpack.c.bf16 %v1149_v62, %v1148_v59  ;;  %v904_v54 = vadd.f32 %v7572_v60, %v903_v45 }
 0x149   :  { %v1151_v38 = vmax.f32 %v909_v51, 0.0 }
 0x14a   :  { %v1150_v58 = vmax.f32 %v904_v54, 0.0  ;;  %v5400_v47 = vpop.f32.mrb[20].mxu0  ;;  %5517 = vmatprep.subr.bf16.mxu0 %v5516_v56 }
 0x14b   :  { %v919_v53 = vadd.f32 %v5400_v47, %v7572_v60  ;;  %v913_v41 = vpop.f32.mrb[21].mxu0  ;;  %5519 = vmatpush3.bf16.msra.mxu0 %v7583_v55 }
 0x14c   :  { %v5520_v42 = vpack.c.bf16 %v1151_v38, %v1150_v58  ;;  %v914_v34 = vadd.f32 %v7572_v60, %v913_v41 }
 0x14d   :  { %v1153_v44 = vmax.f32 %v919_v53, 0.0 }
 0x14e   :  { %v1152_v48 = vmax.f32 %v914_v34, 0.0  ;;  %v5403_v43 = vpop.f32.mrb[22].mxu0  ;;  %5521 = vmatprep.subr.bf16.mxu0 %v5520_v42 }
 0x14f   :  { %v929_v62 = vadd.f32 %v5403_v43, %v7572_v60  ;;  %v923_v59 = vpop.f32.mrb[23].mxu0  ;;  %5523 = vmatpush3.bf16.msra.mxu0 %v7587_v46 }
 0x150   :  { %v5524_v45 = vpack.c.bf16 %v1153_v44, %v1152_v48  ;;  %v924_v57 = vadd.f32 %v7572_v60, %v923_v59 }
 0x151   :  { %v1155_v51 = vmax.f32 %v929_v62, 0.0 }
 0x152   :  { %v1154_v56 = vmax.f32 %v924_v57, 0.0  ;;  %v5406_v54 = vpop.f32.mrb[24].mxu0  ;;  %5525 = vmatprep.subr.bf16.mxu0 %v5524_v45 }
 0x153   :  { %v939_v55 = vadd.f32 %v5406_v54, %v7572_v60  ;;  %v933_v38 = vpop.f32.mrb[25].mxu0  ;;  %5527 = vmatpush3.bf16.msra.mxu0 %v7591_v40 }
 0x154   :  { %v5528_v41 = vpack.c.bf16 %v1155_v51, %v1154_v56  ;;  %v934_v58 = vadd.f32 %v7572_v60, %v933_v38 }
 0x155   :  { %v1157_v47 = vmax.f32 %v939_v55, 0.0 }
 0x156   :  { %v1156_v53 = vmax.f32 %v934_v58, 0.0  ;;  %v5409_v42 = vpop.f32.mrb[26].mxu0  ;;  %5529 = vmatprep.subr.bf16.mxu0 %v5528_v41 }
 0x157   :  { %v949_v46 = vadd.f32 %v5409_v42, %v7572_v60  ;;  %v943_v34 = vpop.f32.mrb[27].mxu0  ;;  %5531 = vmatpush3.bf16.msra.mxu0 %v7595_v63 }
 0x158   :  { %v5532_v44 = vpack.c.bf16 %v1157_v47, %v1156_v53  ;;  %v944_v48 = vadd.f32 %v7572_v60, %v943_v34 }
 0x159   :  { %v1159_v43 = vmax.f32 %v949_v46, 0.0 }
 0x15a   :  { %v1158_v62 = vmax.f32 %v944_v48, 0.0  ;;  %v5412_v59 = vpop.f32.mrb[28].mxu0  ;;  %5533 = vmatprep.subr.bf16.mxu0 %v5532_v44 }
 0x15b   :  { %v959_v40 = vadd.f32 %v5412_v59, %v7572_v60  ;;  %v953_v45 = vpop.f32.mrb[29].mxu0  ;;  %5535 = vmatpush3.bf16.msra.mxu0 %v7599_v49 }
 0x15c   :  { %v5536_v57 = vpack.c.bf16 %v1159_v43, %v1158_v62  ;;  %v954_v51 = vadd.f32 %v7572_v60, %v953_v45 }
 0x15d   :  { %v1161_v56 = vmax.f32 %v959_v40, 0.0  ;;  %v1260_v40 = vld [vmem:[%s8819_s4] sm:$0xff] }
 0x15e   :  { %v1160_v54 = vmax.f32 %v954_v51, 0.0  ;;  %v5415_v55 = vpop.f32.mrb[30].mxu0  ;;  %5537 = vmatprep.subr.bf16.mxu0 %v5536_v57 }
 0x15f   :  { %v969_v63 = vadd.f32 %v5415_v55, %v7572_v60  ;;  %v963_v38 = vpop.f32.mrb[31].mxu0  ;;  %5539 = vmatpush3.bf16.msra.mxu0 %v7603_v52 }
 0x160   :  { %v5540_v41 = vpack.c.bf16 %v1161_v56, %v1160_v54  ;;  %v964_v58 = vadd.f32 %v7572_v60, %v963_v38 }
 0x161   :  { %v1163_v47 = vmax.f32 %v969_v63, 0.0 }
 0x162   :  { %v1162_v53 = vmax.f32 %v964_v58, 0.0  ;;  %5541 = vmatprep.subr.bf16.mxu0 %v5540_v41  ;;  %v5418_v42 = vpop.f32.mrb[32].mxu0 }
 0x163   :  { %5543 = vmatpush3.bf16.msra.mxu0 %v7607_v50  ;;  %v979_v49 = vadd.f32 %v5418_v42, %v7572_v60  ;;  %v973_v46 = vpop.f32.mrb[33].mxu0 }
 0x164   :  { %v5544_v34 = vpack.c.bf16 %v1163_v47, %v1162_v53  ;;  %v974_v44 = vadd.f32 %v7572_v60, %v973_v46 }
 0x165   :  { %v1165_v48 = vmax.f32 %v979_v49, 0.0 }
 0x166   :  { %5545 = vmatprep.subr.bf16.mxu0 %v5544_v34  ;;  %v1164_v43 = vmax.f32 %v974_v44, 0.0  ;;  %v5421_v62 = vpop.f32.mrb[34].mxu0 }
 0x167   :  { %5547 = vmatpush3.bf16.msra.mxu0 %v7611_v61  ;;  %v989_v52 = vadd.f32 %v5421_v62, %v7572_v60  ;;  %v983_v59 = vpop.f32.mrb[35].mxu0 }
 0x168   :  { %v984_v50 = vadd.f32 %v7572_v60, %v983_v59  ;;  %v7643_v45 = vpack.c.bf16 %v1165_v48, %v1164_v43 }
 0x169   :  { %v1167_v57 = vmax.f32 %v989_v52, 0.0 }
 0x16a   :  { %v1166_v51 = vmax.f32 %v984_v50, 0.0  ;;  %v5424_v56 = vpop.f32.mrb[36].mxu0  ;;  %1393 = vmatmul.mubr.f32.vlgmr.msra.gmra.mrb[64].mxu0 %v1260_v40 }
 0x16b   :  { %v999_v54 = vadd.f32 %v5424_v56, %v7572_v60  ;;  %v993_v55 = vpop.f32.mrb[37].mxu0 }
 0x16c   :  { %v7646_v63 = vpack.c.bf16 %v1167_v57, %v1166_v51  ;;  %v994_v61 = vadd.f32 %v7572_v60, %v993_v55 }
 0x16d   :  { %v1169_v38 = vmax.f32 %v999_v54, 0.0 }
 0x16e   :  { %v1168_v41 = vmax.f32 %v994_v61, 0.0  ;;  %v5427_v58 = vpop.f32.mrb[38].mxu0 }
 0x16f   :  { %v1009_v47 = vadd.f32 %v5427_v58, %v7572_v60  ;;  %v1003_v53 = vpop.f32.mrb[39].mxu0 }
 0x170   :  { %v7650_v42 = vpack.c.bf16 %v1169_v38, %v1168_v41  ;;  %v1004_v49 = vadd.f32 %v7572_v60, %v1003_v53 }
 0x171   :  { %v1171_v46 = vmax.f32 %v1009_v47, 0.0 }
 0x172   :  { %v1170_v34 = vmax.f32 %v1004_v49, 0.0  ;;  %v5430_v44 = vpop.f32.mrb[40].mxu0 }
 0x173   :  { %v1019_v48 = vadd.f32 %v5430_v44, %v7572_v60  ;;  %v1013_v43 = vpop.f32.mrb[41].mxu0 }
 0x174   :  { %v7654_v62 = vpack.c.bf16 %v1171_v46, %v1170_v34  ;;  %v1014_v52 = vadd.f32 %v7572_v60, %v1013_v43 }
 0x175   :  { %v1173_v59 = vmax.f32 %v1019_v48, 0.0 }
 0x176   :  { %v1172_v40 = vmax.f32 %v1014_v52, 0.0  ;;  %v5433_v50 = vpop.f32.mrb[42].mxu0 }
 0x177   :  { %v1029_v57 = vadd.f32 %v5433_v50, %v7572_v60  ;;  %v1023_v51 = vpop.f32.mrb[43].mxu0 }
 0x178   :  { %v7658_v56 = vpack.c.bf16 %v1173_v59, %v1172_v40  ;;  %v1024_v54 = vadd.f32 %v7572_v60, %v1023_v51 }
 0x179   :  { %v1175_v55 = vmax.f32 %v1029_v57, 0.0 }
 0x17a   :  { %v1174_v61 = vmax.f32 %v1024_v54, 0.0  ;;  %v5436_v38 = vpop.f32.mrb[44].mxu0 }
 0x17b   :  { %v1039_v41 = vadd.f32 %v5436_v38, %v7572_v60  ;;  %v1033_v58 = vpop.f32.mrb[45].mxu0 }
 0x17c   :  { %v7662_v47 = vpack.c.bf16 %v1175_v55, %v1174_v61  ;;  %v1034_v53 = vadd.f32 %v7572_v60, %v1033_v58 }
 0x17d   :  { %v1177_v49 = vmax.f32 %v1039_v41, 0.0 }
 0x17e   :  { %v1176_v46 = vmax.f32 %v1034_v53, 0.0  ;;  %v5439_v34 = vpop.f32.mrb[46].mxu0 }
 0x17f   :  { %v1049_v44 = vadd.f32 %v5439_v34, %v7572_v60  ;;  %v1043_v48 = vpop.f32.mrb[47].mxu0 }
 0x180   :  { %v7666_v43 = vpack.c.bf16 %v1177_v49, %v1176_v46  ;;  %v1044_v52 = vadd.f32 %v7572_v60, %v1043_v48 }
 0x181   :  { %v1179_v59 = vmax.f32 %v1049_v44, 0.0 }
 0x182   :  { %v1178_v40 = vmax.f32 %v1044_v52, 0.0  ;;  %v5442_v50 = vpop.f32.mrb[48].mxu0 }
 0x183   :  { %v1059_v57 = vadd.f32 %v5442_v50, %v7572_v60  ;;  %v1053_v51 = vpop.f32.mrb[49].mxu0 }
 0x184   :  { %v7670_v54 = vpack.c.bf16 %v1179_v59, %v1178_v40  ;;  %v1054_v55 = vadd.f32 %v7572_v60, %v1053_v51 }
 0x185   :  { %v1181_v61 = vmax.f32 %v1059_v57, 0.0 }
 0x186   :  { %v1180_v38 = vmax.f32 %v1054_v55, 0.0  ;;  %v5445_v41 = vpop.f32.mrb[50].mxu0 }
 0x187   :  { %v1069_v58 = vadd.f32 %v5445_v41, %v7572_v60  ;;  %v1063_v53 = vpop.f32.mrb[51].mxu0 }
 0x188   :  { %v1064_v49 = vadd.f32 %v7572_v60, %v1063_v53  ;;  %v5548_v46 = vpack.c.bf16 %v1181_v61, %v1180_v38 }
 0x189   :  { %v1183_v34 = vmax.f32 %v1069_v58, 0.0 }
 0x18a   :  { %v1182_v44 = vmax.f32 %v1064_v49, 0.0  ;;  %v5448_v48 = vpop.f32.mrb[52].mxu0  ;;  %5549 = vmatprep.subr.bf16.mxu1 %v5548_v46 }
 0x18b   :  { %v1079_v52 = vadd.f32 %v5448_v48, %v7572_v60  ;;  %v1073_v50 = vpop.f32.mrb[53].mxu0  ;;  %5551 = vmatpush3.bf16.msra.mxu1 %v7643_v45 }
 0x18c   :  { %v5552_v59 = vpack.c.bf16 %v1183_v34, %v1182_v44  ;;  %v1074_v40 = vadd.f32 %v7572_v60, %v1073_v50 }
 0x18d   :  { %v1185_v57 = vmax.f32 %v1079_v52, 0.0 }
 0x18e   :  { %v1184_v51 = vmax.f32 %v1074_v40, 0.0  ;;  %v5451_v55 = vpop.f32.mrb[54].mxu0  ;;  %5553 = vmatprep.subr.bf16.mxu1 %v5552_v59 }
 0x18f   :  { %v1089_v41 = vadd.f32 %v5451_v55, %v7572_v60  ;;  %v1083_v53 = vpop.f32.mrb[55].mxu0  ;;  %5555 = vmatpush3.bf16.msra.mxu1 %v7646_v63 }
 0x190   :  { %v5556_v61 = vpack.c.bf16 %v1185_v57, %v1184_v51  ;;  %v1084_v38 = vadd.f32 %v7572_v60, %v1083_v53 }
 0x191   :  { %v1187_v58 = vmax.f32 %v1089_v41, 0.0 }
 0x192   :  { %v1186_v49 = vmax.f32 %v1084_v38, 0.0  ;;  %v5454_v46 = vpop.f32.mrb[56].mxu0  ;;  %5557 = vmatprep.subr.bf16.mxu1 %v5556_v61 }
 0x193   :  { %v1099_v45 = vadd.f32 %v5454_v46, %v7572_v60  ;;  %v1093_v34 = vpop.f32.mrb[57].mxu0  ;;  %5559 = vmatpush3.bf16.msra.mxu1 %v7650_v42 }
 0x194   :  { %v5560_v44 = vpack.c.bf16 %v1187_v58, %v1186_v49  ;;  %v1094_v48 = vadd.f32 %v7572_v60, %v1093_v34 }
 0x195   :  { %v1189_v52 = vmax.f32 %v1099_v45, 0.0 }
 0x196   :  { %v1188_v50 = vmax.f32 %v1094_v48, 0.0  ;;  %v5457_v59 = vpop.f32.mrb[58].mxu0  ;;  %5561 = vmatprep.subr.bf16.mxu1 %v5560_v44 }
 0x197   :  { %v1109_v63 = vadd.f32 %v5457_v59, %v7572_v60  ;;  %v1103_v40 = vpop.f32.mrb[59].mxu0  ;;  %5563 = vmatpush3.bf16.msra.mxu1 %v7654_v62  ;;  %v6574_v59 = vld [vmem:[%s8820_s5 + $0x4] ss:$16 sps:$4 sm:$0xff]  }
 0x198   :  { %v5564_v57 = vpack.c.bf16 %v1189_v52, %v1188_v50  ;;  %v1104_v51 = vadd.f32 %v7572_v60, %v1103_v40  ;;  %v6582_v40 = vld [vmem:[%s8820_s5 + $0x40] ss:$16 sps:$4 sm:$0xff]  }
 0x199   :  { %v1191_v55 = vmax.f32 %v1109_v63, 0.0  ;;  %v6579_v63 = vld [vmem:[%s8820_s5 + $0x20] ss:$16 sps:$4 sm:$0xff]  }
 0x19a   :  { %v1190_v41 = vmax.f32 %v1104_v51, 0.0  ;;  %v5460_v53 = vpop.f32.mrb[60].mxu0  ;;  %5565 = vmatprep.subr.bf16.mxu1 %v5564_v57  ;;  %v6583_v57 = vld [vmem:[%s8820_s5 + $0x64] ss:$16 sps:$4 sm:$0xff]   ;;  %v6585_v51 = vld [vmem:[%s8820_s5 + $0x60] ss:$16 sps:$4 sm:$0xff]  }
 0x19b   :  { %v1119_v42 = vadd.f32 %v5460_v53, %v7572_v60  ;;  %v1113_v61 = vpop.f32.mrb[61].mxu0  ;;  %5567 = vmatpush3.bf16.msra.mxu1 %v7658_v56  ;;  %v6589_v53 = vld [vmem:[%s8820_s5 + $0xa4] ss:$16 sps:$4 sm:$0xff]  }
 0x19c   :  { %v5568_v38 = vpack.c.bf16 %v1191_v55, %v1190_v41  ;;  %v1114_v58 = vadd.f32 %v7572_v60, %v1113_v61  ;;  %v6586_v55 = vld [vmem:[%s8820_s5 + $0x84] ss:$16 sps:$4 sm:$0xff]   ;;  %v6588_v41 = vld [vmem:[%s8820_s5 + $0x80] ss:$16 sps:$4 sm:$0xff]  }
 0x19d   :  { %v1193_v49 = vmax.f32 %v1119_v42, 0.0  ;;  %v6591_v42 = vld [vmem:[%s8820_s5 + $0xa0] ss:$16 sps:$4 sm:$0xff]   ;;  %v6592_v61 = vld [vmem:[%s8820_s5 + $0xc4] ss:$16 sps:$4 sm:$0xff]  }
 0x19e   :  { %v1192_v46 = vmax.f32 %v1114_v58, 0.0  ;;  %v5463_v45 = vpop.f32.mrb[62].mxu0  ;;  %5569 = vmatprep.subr.bf16.mxu1 %v5568_v38  ;;  %v6594_v38 = vld [vmem:[%s8820_s5 + $0xc0] ss:$16 sps:$4 sm:$0xff]   ;;  %v6595_v58 = vld [vmem:[%s8820_s5 + $0xe4] ss:$16 sps:$4 sm:$0xff]  }
 0x19f   :  { %v1129_v62 = vadd.f32 %v5463_v45, %v7572_v60  ;;  %v1123_v34 = vpop.f32.mrb[63].mxu0  ;;  %5571 = vmatpush3.bf16.msra.mxu1 %v7662_v47  ;;  %v1262_v47 = vld [vmem:[%s8819_s4 + $0x10] sm:$0xff]  ;;  %v8834_v45 = vmov 0.0   ;;  %s424_s4 = scalar_lea.vmem %s8822_s7, %s4848_s17 }
 0x1a0   :  { %v5572_v44 = vpack.c.bf16 %v1193_v49, %v1192_v46  ;;  %v1124_v48 = vadd.f32 %v7572_v60, %v1123_v34  ;;  %v6576_v60 = vld [vmem:[%s8820_s5] ss:$16 sps:$4 sm:$0xff]   ;;  %v6598_v46 = vld [vmem:[%s8820_s5 + $0xc] ss:$16 sps:$4 sm:$0xff]   ;;  %407 = vst [vmem:[#allocation2] sm:$0xff] %v8834_v45  ;;  %408 = vst [vmem:[#allocation2 + $0x8] sm:$0xff] %v8834_v45 }
 0x1a1   :  { %v1195_v52 = vmax.f32 %v1129_v62, 0.0  ;;  %v6597_v49 = vld [vmem:[%s8820_s5 + $0xe0] ss:$16 sps:$4 sm:$0xff]   ;;  %409 = vst [vmem:[#allocation2 + $0x10] sm:$0xff] %v8834_v45  ;;  %410 = vst [vmem:[#allocation2 + $0x18] sm:$0xff] %v8834_v45 }
 0x1a2   :  { %v1194_v50 = vmax.f32 %v1124_v48, 0.0  ;;  %5573 = vmatprep.subr.bf16.mxu1 %v5572_v44  ;;  %411 = vst [vmem:[#allocation2 + $0x20] sm:$0xff] %v8834_v45  ;;  %412 = vst [vmem:[#allocation2 + $0x28] sm:$0xff] %v8834_v45  ;;  %v5097_v62 = vld [vmem:[%s8823_s8 + $0x40] sm:$0xff]   ;;  %v5098_v44 = vld [vmem:[%s8823_s8 + $0x48] sm:$0xff]  }
 0x1a3   :  { %5575 = vmatpush3.bf16.msra.mxu1 %v7666_v43  ;;  %v6577_v43 = vld [vmem:[%s8820_s5 + $0x24] ss:$16 sps:$4 sm:$0xff]   ;;  %413 = vst [vmem:[#allocation2 + $0x30] sm:$0xff] %v8834_v45  ;;  %414 = vst [vmem:[#allocation2 + $0x38] sm:$0xff] %v8834_v45  ;;  %5645 = vmatprep.subr.bf16.mxu0 %v5097_v62  ;;  %v5090_v48 = vld [vmem:[%s8823_s8 + $0x8] sm:$0xff]  }
 0x1a4   :  { %v5576_v56 = vpack.c.bf16 %v1195_v52, %v1194_v50  ;;  %v4931_v34 = vld [vmem:[%s8823_s8] sm:$0xff]   ;;  %v5099_v52 = vld [vmem:[%s8823_s8 + $0x50] sm:$0xff]   ;;  %v6606_v62 = vld [vmem:[%s8820_s5 + $0x48] ss:$16 sps:$4 sm:$0xff]  }
 0x1a5   :  { %5647 = vmatpush3.bf16.msra.mxu0 %v4931_v34  ;;  %v5091_v50 = vld [vmem:[%s8823_s8 + $0x10] sm:$0xff]   ;;  %v6607_v34 = vld [vmem:[%s8820_s5 + $0x6c] ss:$16 sps:$4 sm:$0xff]  }
 0x1a6   :  { %5577 = vmatprep.subr.bf16.mxu1 %v5576_v56  ;;  %5649 = vmatprep.subr.bf16.mxu0 %v5098_v44  ;;  %v5100_v56 = vld [vmem:[%s8823_s8 + $0x58] sm:$0xff]  }
 0x1a7   :  { %5579 = vmatpush3.bf16.msra.mxu1 %v7670_v54  ;;  %v6580_v54 = vld [vmem:[%s8820_s5 + $0x44] ss:$16 sps:$4 sm:$0xff]   ;;  %v6609_v44 = vld [vmem:[%s8820_s5 + $0x68] ss:$16 sps:$4 sm:$0xff]  }
 0x1a8   :  { %5581 = vmatprep.subr.bf16.mxu1 %v6574_v59  ;;  %v5092_v59 = vld [vmem:[%s8823_s8 + $0x18] sm:$0xff]  }
 0x1a9   :  { %5651 = vmatpush3.bf16.msra.mxu0 %v5090_v48  ;;  %v6610_v48 = vld [vmem:[%s8820_s5 + $0x8c] ss:$16 sps:$4 sm:$0xff]  }
 0x1aa   :  { %1463 = vmatmul.mubr.f32.vlgmr.msra.gmra.mrb[0].mxu1 %v1262_v47  ;;  %5653 = vmatprep.subr.bf16.mxu0 %v5099_v52  ;;  %v5101_v47 = vld [vmem:[%s8823_s8 + $0x60] sm:$0xff]   ;;  %v6612_v52 = vld [vmem:[%s8820_s5 + $0x88] ss:$16 sps:$4 sm:$0xff]  }
 0x1ab   :  { %5583 = vmatpush1.bf16.msra.mxu1 %v6576_v60  ;;  %1650 = vmatprep.mubr.f32.mxu1 %v8834_v45  ;;  %v5093_v60 = vld [vmem:[%s8823_s8 + $0x20] sm:$0xff]  }
 0x1ac   :  { %5585 = vmatprep.subr.bf16.mxu1 %v6577_v43  ;;  %v5102_v43 = vld [vmem:[%s8823_s8 + $0x68] sm:$0xff]  }
 0x1ad   :  { %5655 = vmatpush3.bf16.msra.mxu0 %v5091_v50  ;;  %v6613_v50 = vld [vmem:[%s8820_s5 + $0xac] ss:$16 sps:$4 sm:$0xff]  }
 0x1ae   :  { %5657 = vmatprep.subr.bf16.mxu0 %v5100_v56  ;;  %v6615_v56 = vld [vmem:[%s8820_s5 + $0xa8] ss:$16 sps:$4 sm:$0xff]  }
 0x1af   :  { %5587 = vmatpush1.bf16.msra.mxu1 %v6579_v63  ;;  %v5094_v63 = vld [vmem:[%s8823_s8 + $0x28] sm:$0xff]  }
 0x1b0   :  { %5589 = vmatprep.subr.bf16.mxu1 %v6580_v54  ;;  %v5103_v54 = vld [vmem:[%s8823_s8 + $0x70] sm:$0xff]  }
 0x1b1   :  { %5659 = vmatpush3.bf16.msra.mxu0 %v5092_v59  ;;  %v6616_v59 = vld [vmem:[%s8820_s5 + $0xcc] ss:$16 sps:$4 sm:$0xff]  }
 0x1b2   :  { %5661 = vmatprep.subr.bf16.mxu0 %v5101_v47  ;;  %v6618_v47 = vld [vmem:[%s8820_s5 + $0xc8] ss:$16 sps:$4 sm:$0xff]  }
 0x1b3   :  { %5591 = vmatpush1.bf16.msra.mxu1 %v6582_v40  ;;  %v5095_v40 = vld [vmem:[%s8823_s8 + $0x30] sm:$0xff]  }
 0x1b4   :  { %5593 = vmatprep.subr.bf16.mxu1 %v6583_v57 }
 0x1b5   :  { %5663 = vmatpush3.bf16.msra.mxu0 %v5093_v60  ;;  %v6619_v60 = vld [vmem:[%s8820_s5 + $0xec] ss:$16 sps:$4 sm:$0xff]  }
 0x1b6   :  { %5665 = vmatprep.subr.bf16.mxu0 %v5102_v43  ;;  %v6621_v43 = vld [vmem:[%s8820_s5 + $0xe8] ss:$16 sps:$4 sm:$0xff]  }
 0x1b7   :  { %5595 = vmatpush1.bf16.msra.mxu1 %v6585_v51 }
 0x1b8   :  { %5597 = vmatprep.subr.bf16.mxu1 %v6586_v55 }
 0x1b9   :  { %5667 = vmatpush3.bf16.msra.mxu0 %v5094_v63  ;;  %v5104_v63 = vld [vmem:[%s8823_s8 + $0x78] sm:$0xff]  }
 0x1ba   :  { %5669 = vmatprep.subr.bf16.mxu0 %v5103_v54  ;;  %v5096_v54 = vld [vmem:[%s8823_s8 + $0x38] sm:$0xff]  }
 0x1bb   :  { %5599 = vmatpush1.bf16.msra.mxu1 %v6588_v41 }
 0x1bc   :  { %5601 = vmatprep.subr.bf16.mxu1 %v6589_v53 }
 0x1bd   :  { %5671 = vmatpush3.bf16.msra.mxu0 %v5095_v40  ;;  %v5113_v40 = vld [vmem:[%s8823_s8 + $0xc0] sm:$0xff]  }
 0x1be   :  { %5673 = vmatprep.subr.bf16.mxu0 %v5104_v63  ;;  %v441_v63 = vld [vmem:[%s440_s14] sm:$0x1]  ;;  %s4861_s14 = sld [smem:[#allocation9 + $0xf]] }
 0x1bf   :  { %5603 = vmatpush1.bf16.msra.mxu1 %v6591_v42  ;;  %442 = vst [vmem:[#allocation2 + $0x18] sm:$0x1] %v441_v63  ;;  %v5122_v63 = vld [vmem:[%s8824_s9 + $0x10] sm:$0xff]  }
 0x1c0   :  { %5605 = vmatprep.subr.bf16.mxu1 %v6592_v61  ;;  %v6600_v61 = vld [vmem:[%s8820_s5 + $0x8] ss:$16 sps:$4 sm:$0xff]  }
 0x1c1   :  { %5675 = vmatpush3.bf16.msra.mxu0 %v5096_v54 }
 0x1c3   :  { %5607 = vmatpush1.bf16.msra.mxu1 %v6594_v38 }
 0x1c4   :  { %5609 = vmatprep.subr.bf16.mxu1 %v6595_v58  ;;  %v6601_v58 = vld [vmem:[%s8820_s5 + $0x2c] ss:$16 sps:$4 sm:$0xff]   ;;  %s476_s18 = scalar_lea.vmem %s8822_s7, %s4861_s14 }
 0x1c7   :  { %5611 = vmatpush1.bf16.msra.mxu1 %v6597_v49  ;;  %v6603_v49 = vld [vmem:[%s8820_s5 + $0x28] ss:$16 sps:$4 sm:$0xff]  }
 0x1c8   :  { %5613 = vmatprep.subr.bf16.mxu1 %v6598_v46  ;;  %v6604_v46 = vld [vmem:[%s8820_s5 + $0x4c] ss:$16 sps:$4 sm:$0xff]   ;;  %s4855_s5 = sld [smem:[#allocation9 + $0xc]] }
 0x1ce   :  { %s452_s22 = scalar_lea.vmem %s8822_s7, %s4855_s5 }
 0x23d   :  { %v5228_v57 = vpop.f32.mrb[64].mxu0 }
 0x23e   :  { %v5229_v51 = vpop.f32.mrb[65].mxu0 }
 0x23f   :  { %v5230_v55 = vadd.f32 %v5229_v51, %v5228_v57  ;;  %v7858_v57 = vld [vmem:[%s8824_s9] sm:$0xff]  }
 0x240   :  { %5709 = vmatprep.subr.bf16.mxu0 %v7858_v57  ;;  %v5105_v51 = vld [vmem:[%s8823_s8 + $0x80] sm:$0xff]  }
 0x27d   :  { %v5263_v41 = vpop.f32.mrb[0].mxu1 }
 0x27e   :  { %v5264_v53 = vpop.f32.mrb[1].mxu1 }
 0x27f   :  { %v5265_v42 = vadd.f32 %v5264_v53, %v5263_v41  ;;  %v5106_v41 = vld [vmem:[%s8823_s8 + $0x88] sm:$0xff]   ;;  %v5115_v53 = vld [vmem:[%s8823_s8 + $0xd0] sm:$0xff]  }
 0x281   :  { %v1465_v38 = vadd.f32 %v5265_v42, %v5230_v55  ;;  %v5114_v55 = vld [vmem:[%s8823_s8 + $0xc8] sm:$0xff]   ;;  %v5107_v42 = vld [vmem:[%s8823_s8 + $0x90] sm:$0xff]  }
 0x283   :  { %1651 = vmatmul.mubr.f32.vlgmr.msra.gmra.mrb[2].mxu1 %v1465_v38 }
 0x284   :  { %5615 = vmatpush1.bf16.msra.mxu1 %v6600_v61  ;;  %1721 = vmatprep.mubr.f32.mxu1 %v8834_v45  ;;  %v5116_v61 = vld [vmem:[%s8823_s8 + $0xd8] sm:$0xff]  }
 0x285   :  { %5617 = vmatprep.subr.bf16.mxu1 %v6601_v58  ;;  %v5117_v58 = vld [vmem:[%s8823_s8 + $0xe0] sm:$0xff]  }
 0x288   :  { %5619 = vmatpush1.bf16.msra.mxu1 %v6603_v49  ;;  %v5109_v49 = vld [vmem:[%s8823_s8 + $0xa0] sm:$0xff]  }
 0x289   :  { %5621 = vmatprep.subr.bf16.mxu1 %v6604_v46  ;;  %v5118_v46 = vld [vmem:[%s8823_s8 + $0xe8] sm:$0xff]  }
 0x28c   :  { %5623 = vmatpush1.bf16.msra.mxu1 %v6606_v62  ;;  %v5110_v62 = vld [vmem:[%s8823_s8 + $0xa8] sm:$0xff]  }
 0x28d   :  { %5625 = vmatprep.subr.bf16.mxu1 %v6607_v34  ;;  %v5119_v34 = vld [vmem:[%s8823_s8 + $0xf0] sm:$0xff]  }
 0x290   :  { %5627 = vmatpush1.bf16.msra.mxu1 %v6609_v44  ;;  %v5111_v44 = vld [vmem:[%s8823_s8 + $0xb0] sm:$0xff]  }
 0x291   :  { %5629 = vmatprep.subr.bf16.mxu1 %v6610_v48  ;;  %v417_v48 = vld [vmem:[%s416_s24] sm:$0x1]  ;;  %s432_s24 = scalar_lea.vmem %s8822_s7, %s4850_s0  ;;  %s4857_s0 = sld [smem:[#allocation9 + $0xd]] }
 0x292   :  { %418 = vst [vmem:[#allocation2] sm:$0x1] %v417_v48 }
 0x294   :  { %5631 = vmatpush1.bf16.msra.mxu1 %v6612_v52  ;;  %v421_v52 = vld [vmem:[%s420_s27] sm:$0x1]  ;;  %s436_s27 = scalar_lea.vmem %s8822_s7, %s4851_s1  ;;  %s468_s1 = scalar_lea.vmem %s8822_s7, %s4859_s13 }
 0x295   :  { %5633 = vmatprep.subr.bf16.mxu1 %v6613_v50  ;;  %422 = vst [vmem:[#allocation2 + $0x1] sm:$0x1] %v421_v52  ;;  %v425_v50 = vld [vmem:[%s424_s4] sm:$0x1] }
 0x296   :  { %426 = vst [vmem:[#allocation2 + $0x8] sm:$0x1] %v425_v50 }
 0x297   :  { %s460_s26 = scalar_lea.vmem %s8822_s7, %s4857_s0 }
 0x298   :  { %5635 = vmatpush1.bf16.msra.mxu1 %v6615_v56  ;;  %v429_v56 = vld [vmem:[%s428_s2] sm:$0x1]  ;;  %s4856_s2 = sld [smem:[#allocation9 + $0x5]] }
 0x299   :  { %5637 = vmatprep.subr.bf16.mxu1 %v6616_v59  ;;  %430 = vst [vmem:[#allocation2 + $0x9] sm:$0x1] %v429_v56  ;;  %v5120_v59 = vld [vmem:[%s8823_s8 + $0xf8] sm:$0xff]  }
 0x29c   :  { %5639 = vmatpush1.bf16.msra.mxu1 %v6618_v47  ;;  %v5112_v47 = vld [vmem:[%s8823_s8 + $0xb8] sm:$0xff]  }
 0x29d   :  { %5641 = vmatprep.subr.bf16.mxu1 %v6619_v60  ;;  %v433_v60 = vld [vmem:[%s432_s24] sm:$0x1] }
 0x29e   :  { %434 = vst [vmem:[#allocation2 + $0x10] sm:$0x1] %v433_v60  ;;  %s456_s23 = scalar_lea.vmem %s8822_s7, %s4856_s2  ;;  %v2131_v60 = vld [vmem:[#allocation2] sm:$0xff] }
 0x2a0   :  { %5643 = vmatpush1.bf16.msra.mxu1 %v6621_v43  ;;  %v437_v43 = vld [vmem:[%s436_s27] sm:$0x1]  ;;  %s4858_s27 = sld [smem:[#allocation9 + $0x6]] }
 0x2a1   :  { %5677 = vmatprep.subr.bf16.mxu1 %v5113_v40  ;;  %438 = vst [vmem:[#allocation2 + $0x11] sm:$0x1] %v437_v43  ;;  %v449_v40 = vld [vmem:[%s448_s21] sm:$0x1]  ;;  %v5121_v43 = vld [vmem:[%s8824_s9 + $0x8] sm:$0xff]  }
 0x2a2   :  { %450 = vst [vmem:[#allocation2 + $0x20] sm:$0x1] %v449_v40  ;;  %v5124_v40 = vld [vmem:[%s8824_s9 + $0x20] sm:$0xff]  }
 0x2a3   :  { %1722 = vmatmul.mubr.f32.vlgmr.msra.gmra.mrb[4].mxu1 %v1465_v38  ;;  %v5108_v38 = vld [vmem:[%s8823_s8 + $0x98] sm:$0xff]   ;;  %s444_s8 = scalar_lea.vmem %s8822_s7, %s4853_s19 }
 0x2a4   :  { %5679 = vmatpush3.bf16.msra.mxu1 %v5105_v51  ;;  %v445_v54 = vld [vmem:[%s444_s8] sm:$0x1] }
 0x2a5   :  { %5681 = vmatprep.subr.bf16.mxu1 %v5114_v55  ;;  %446 = vst [vmem:[#allocation2 + $0x19] sm:$0x1] %v445_v54  ;;  %v453_v51 = vld [vmem:[%s452_s22] sm:$0x1]  ;;  %v5123_v54 = vld [vmem:[%s8824_s9 + $0x18] sm:$0xff]  }
 0x2a6   :  { %454 = vst [vmem:[#allocation2 + $0x21] sm:$0x1] %v453_v51  ;;  %v457_v55 = vld [vmem:[%s456_s23] sm:$0x1]  ;;  %s464_s5 = scalar_lea.vmem %s8822_s7, %s4858_s27  ;;  %v5126_v51 = vld [vmem:[%s8824_s9 + $0x30] sm:$0xff]  }
 0x2a7   :  { %458 = vst [vmem:[#allocation2 + $0x28] sm:$0x1] %v457_v55 }
 0x2a8   :  { %5683 = vmatpush3.bf16.msra.mxu1 %v5106_v41  ;;  %v461_v41 = vld [vmem:[%s460_s26] sm:$0x1] }
 0x2a9   :  { %5685 = vmatprep.subr.bf16.mxu1 %v5115_v53  ;;  %462 = vst [vmem:[#allocation2 + $0x29] sm:$0x1] %v461_v41  ;;  %v7945_v53 = vld [vmem:[%s8826_s11 + $0x4] ss:$16 sps:$4 sm:$0xff]  }
 0x2ac   :  { %5687 = vmatpush3.bf16.msra.mxu1 %v5107_v42  ;;  %v465_v42 = vld [vmem:[%s464_s5] sm:$0x1] }
 0x2ad   :  { %5689 = vmatprep.subr.bf16.mxu1 %v5116_v61  ;;  %v469_v61 = vld [vmem:[%s468_s1] sm:$0x1]  ;;  %466 = vst [vmem:[#allocation2 + $0x30] sm:$0x1] %v465_v42  ;;  %v5127_v42 = vld [vmem:[%s8824_s9 + $0x38] sm:$0xff]  }
 0x2ae   :  { %470 = vst [vmem:[#allocation2 + $0x31] sm:$0x1] %v469_v61 }
 0x2b0   :  { %5691 = vmatpush3.bf16.msra.mxu1 %v5108_v38  ;;  %v473_v38 = vld [vmem:[%s472_s3] sm:$0x1] }
 0x2b1   :  { %5693 = vmatprep.subr.bf16.mxu1 %v5117_v58  ;;  %v477_v58 = vld [vmem:[%s476_s18] sm:$0x1]  ;;  %474 = vst [vmem:[#allocation2 + $0x38] sm:$0x1] %v473_v38 }
 0x2b2   :  { %478 = vst [vmem:[#allocation2 + $0x39] sm:$0x1] %v477_v58  ;;  %v8004_v58 = vld [vmem:[%s8826_s11 + $0xc] ss:$16 sps:$4 sm:$0xff]  }
 0x2b4   :  { %5695 = vmatpush3.bf16.msra.mxu1 %v5109_v49  ;;  %v1566_v49 = vlaneseq }
 0x2b5   :  { %5697 = vmatprep.subr.bf16.mxu1 %v5118_v46 }
 0x2b6   :  { %v7960_v46 = vshrl.u32 %v1566_v49, 7 }
 0x2b8   :  { %5699 = vmatpush3.bf16.msra.mxu1 %v5110_v62  ;;  %v7963_v62 = vsub.s32 1, %v7960_v46  ;;  %v8832_v55 = vsub.s32 3, %v7960_v46  ;;  %v8833_v41 = vsub.s32 2, %v7960_v46 }
 0x2b9   :  { %5701 = vmatprep.subr.bf16.mxu1 %v5119_v34  ;;  %v1564_v34 = vld [vmem:[%s8821_s6] sm:$0xf] }
 0x2ba   :  { %v1573_v48 = vrot.slane %v1564_v34, %v7963_v62  ;;  %v1581_v61 = vrot.slane %v1564_v34, %v8832_v55  ;;  %v1577_v38 = vrot.slane %v1564_v34, %v8833_v41  ;;  %v8112_v55 = vld [vmem:[%s8826_s11 + $0x88] ss:$16 sps:$4 sm:$0xff]   ;;  %v8123_v41 = vld [vmem:[%s8826_s11 + $0xac] ss:$16 sps:$4 sm:$0xff]  }
 0x2bc   :  { %5703 = vmatpush3.bf16.msra.mxu1 %v5111_v44  ;;  %v7969_v44 = vsub.s32 0, %v7960_v46 }
 0x2bd   :  { %5705 = vmatprep.subr.bf16.mxu1 %v5120_v59 }
 0x2be   :  { %v1569_v52 = vrot.slane %v1564_v34, %v7969_v44  ;;  %v8015_v34 = vld [vmem:[%s8826_s11 + $0x8] ss:$16 sps:$4 sm:$0xff]  }
 0x2c0   :  { %5707 = vmatpush3.bf16.msra.mxu1 %v5112_v47 }
 0x2c1   :  { %5741 = vmatprep.subr.bf16.mxu1 %v7945_v53 }
 0x356   :  { %v1652_v50 = vpop.f32.mrb[2].mxu1 }
 0x357   :  { %v1654_v56 = vpop.f32.mrb[3].mxu1  ;;  %v1653_v47 = vadd.f32 %v1652_v50, %v1569_v52  ;;  %v2132_v50 = vld [vmem:[#allocation2 + $0x8] sm:$0xff] }
 0x358   :  { %v1655_v59 = vadd.f32 %v1654_v56, %v1573_v48  ;;  %v8009_v56 = vld [vmem:[%s8826_s11] ss:$16 sps:$4 sm:$0xff]  }
 0x35a   :  { %2055 = vmatprep.mubr.f32.mxu0 %v1655_v59 }
 0x35b   :  { %2056 = vmatmul.mubr.f32.vlgmr.msra.gmra.mrb[66].mxu0 %v1653_v47  ;;  %v2133_v47 = vld [vmem:[#allocation2 + $0x10] sm:$0xff] }
 0x35c   :  { %5711 = vmatpush3.bf16.msra.mxu0 %v7858_v57  ;;  %5496 = vmatprep.mubr.f32.mxu0 %v2131_v60  ;;  %v5125_v57 = vld [vmem:[%s8824_s9 + $0x28] sm:$0xff]   ;;  %v8020_v60 = vld [vmem:[%s8826_s11 + $0x24] ss:$16 sps:$4 sm:$0xff]  }
 0x35d   :  { %5713 = vmatprep.subr.bf16.mxu0 %v5121_v43 }
 0x360   :  { %5715 = vmatpush3.bf16.msra.mxu0 %v5121_v43  ;;  %v8025_v43 = vld [vmem:[%s8826_s11 + $0x2c] ss:$16 sps:$4 sm:$0xff]  }
 0x361   :  { %5717 = vmatprep.subr.bf16.mxu0 %v5122_v63 }
 0x364   :  { %5719 = vmatpush3.bf16.msra.mxu0 %v5122_v63  ;;  %v2134_v63 = vld [vmem:[#allocation2 + $0x18] sm:$0xff] }
 0x365   :  { %5721 = vmatprep.subr.bf16.mxu0 %v5123_v54 }
 0x368   :  { %5723 = vmatpush3.bf16.msra.mxu0 %v5123_v54  ;;  %v8031_v54 = vld [vmem:[%s8826_s11 + $0x20] ss:$16 sps:$4 sm:$0xff]  }
 0x369   :  { %5725 = vmatprep.subr.bf16.mxu0 %v5124_v40 }
 0x36c   :  { %5727 = vmatpush3.bf16.msra.mxu0 %v5124_v40  ;;  %v2135_v40 = vld [vmem:[#allocation2 + $0x20] sm:$0xff] }
 0x36d   :  { %5729 = vmatprep.subr.bf16.mxu0 %v5125_v57 }
 0x370   :  { %5731 = vmatpush3.bf16.msra.mxu0 %v5125_v57  ;;  %v8038_v57 = vld [vmem:[%s8826_s11 + $0x28] ss:$16 sps:$4 sm:$0xff]  }
 0x371   :  { %5733 = vmatprep.subr.bf16.mxu0 %v5126_v51 }
 0x374   :  { %5735 = vmatpush3.bf16.msra.mxu0 %v5126_v51  ;;  %v8043_v51 = vld [vmem:[%s8826_s11 + $0x44] ss:$16 sps:$4 sm:$0xff]  }
 0x375   :  { %5737 = vmatprep.subr.bf16.mxu0 %v5127_v42 }
 0x376   :  { %v1723_v49 = vpop.f32.mrb[4].mxu1 }
 0x377   :  { %v1725_v48 = vpop.f32.mrb[5].mxu1  ;;  %v1724_v59 = vadd.f32 %v1723_v49, %v1577_v38  ;;  %v8056_v38 = vld [vmem:[%s8826_s11 + $0x40] ss:$16 sps:$4 sm:$0xff]  }
 0x378   :  { %v1726_v52 = vadd.f32 %v1725_v48, %v1581_v61  ;;  %5739 = vmatpush3.bf16.msra.mxu0 %v5127_v42  ;;  %v8049_v42 = vld [vmem:[%s8826_s11 + $0x4c] ss:$16 sps:$4 sm:$0xff]   ;;  %v2137_v49 = vld [vmem:[#allocation2 + $0x30] sm:$0xff]  ;;  %v8063_v48 = vld [vmem:[%s8826_s11 + $0x48] ss:$16 sps:$4 sm:$0xff]  }
 0x379   :  { %5773 = vmatprep.subr.bf16.mxu0 %v8004_v58  ;;  %v2136_v61 = vld [vmem:[#allocation2 + $0x28] sm:$0xff] }
 0x37a   :  { %2125 = vmatprep.mubr.f32.mxu1 %v1726_v52  ;;  %v8068_v52 = vld [vmem:[%s8826_s11 + $0x64] ss:$16 sps:$4 sm:$0xff]  }
 0x37b   :  { %2126 = vmatmul.mubr.f32.vlgmr.msra.gmra.mrb[6].mxu1 %v1724_v59  ;;  %5497 = vmatmul.mubr.f32.vlgmr.msra.gmra.mrb[68].mxu0 %v2132_v50  ;;  %v8074_v50 = vld [vmem:[%s8826_s11 + $0x6c] ss:$16 sps:$4 sm:$0xff]  }
 0x37c   :  { %5499 = vmatprep.mubr.f32.mxu0 %v2133_v47  ;;  %5743 = vmatpush1.bf16.msra.mxu1 %v8009_v56  ;;  %v2138_v59 = vld [vmem:[#allocation2 + $0x38] sm:$0xff]  ;;  %v8080_v47 = vld [vmem:[%s8826_s11 + $0x60] ss:$16 sps:$4 sm:$0xff]  }
 0x37d   :  { %5775 = vmatpush1.bf16.msra.mxu0 %v8015_v34  ;;  %5745 = vmatprep.subr.bf16.mxu1 %v8020_v60 }
 0x37e   :  { %5777 = vmatprep.subr.bf16.mxu0 %v8025_v43  ;;  %2308 = vmatprep.mubr.f32.mxu1 %v8834_v45 }
 0x37f   :  { %5500 = vmatmul.mubr.f32.gmra.mrb[70].mxu0 %v2134_v63  ;;  %v8087_v63 = vld [vmem:[%s8826_s11 + $0x68] ss:$16 sps:$4 sm:$0xff]  }
 0x380   :  { %5502 = vmatprep.mubr.f32.mxu0 %v2135_v40  ;;  %5747 = vmatpush1.bf16.msra.mxu1 %v8031_v54  ;;  %v8092_v40 = vld [vmem:[%s8826_s11 + $0x84] ss:$16 sps:$4 sm:$0xff]  }
 0x381   :  { %5779 = vmatpush1.bf16.msra.mxu0 %v8038_v57  ;;  %5749 = vmatprep.subr.bf16.mxu1 %v8043_v51 }
 0x382   :  { %5781 = vmatprep.subr.bf16.mxu0 %v8049_v42 }
 0x383   :  { %5503 = vmatmul.mubr.f32.gmra.mrb[72].mxu0 %v2136_v61  ;;  %v8098_v61 = vld [vmem:[%s8826_s11 + $0x8c] ss:$16 sps:$4 sm:$0xff]  }
 0x384   :  { %5505 = vmatprep.mubr.f32.mxu0 %v2137_v49  ;;  %5751 = vmatpush1.bf16.msra.mxu1 %v8056_v38  ;;  %v8104_v49 = vld [vmem:[%s8826_s11 + $0x80] ss:$16 sps:$4 sm:$0xff]  }
 0x385   :  { %5783 = vmatpush1.bf16.msra.mxu0 %v8063_v48  ;;  %5753 = vmatprep.subr.bf16.mxu1 %v8068_v52 }
 0x386   :  { %5785 = vmatprep.subr.bf16.mxu0 %v8074_v50 }
 0x387   :  { %5506 = vmatmul.mubr.f32.gmra.mrb[74].mxu0 %v2138_v59  ;;  %v8117_v59 = vld [vmem:[%s8826_s11 + $0xa4] ss:$16 sps:$4 sm:$0xff]  }
 0x388   :  { %5755 = vmatpush1.bf16.msra.mxu1 %v8080_v47  ;;  %2421 = vmatprep.mubr.f32.mxu0 %v8834_v45  ;;  %v8129_v45 = vld [vmem:[%s8826_s11 + $0xa0] ss:$16 sps:$4 sm:$0xff]  }
 0x389   :  { %5787 = vmatpush1.bf16.msra.mxu0 %v8087_v63  ;;  %5757 = vmatprep.subr.bf16.mxu1 %v8092_v40 }
 0x38a   :  { %5789 = vmatprep.subr.bf16.mxu0 %v8098_v61 }
 0x38c   :  { %5759 = vmatpush1.bf16.msra.mxu1 %v8104_v49 }
 0x38d   :  { %5791 = vmatpush1.bf16.msra.mxu0 %v8112_v55  ;;  %5761 = vmatprep.subr.bf16.mxu1 %v8117_v59 }
 0x38e   :  { %5793 = vmatprep.subr.bf16.mxu0 %v8123_v41 }
 0x390   :  { %5763 = vmatpush1.bf16.msra.mxu1 %v8129_v45 }
 0x391   :  { %5795 = vmatpush1.bf16.msra.mxu0 %v8136_v36  ;;  %5765 = vmatprep.subr.bf16.mxu1 %v8141_v32 }
 0x392   :  { %5797 = vmatprep.subr.bf16.mxu0 %v8147_v39 }
 0x394   :  { %5767 = vmatpush1.bf16.msra.mxu1 %v8153_v35 }
 0x395   :  { %5799 = vmatpush1.bf16.msra.mxu0 %v8160_v30  ;;  %5769 = vmatprep.subr.bf16.mxu1 %v8168_v26 }
 0x396   :  { %5801 = vmatprep.subr.bf16.mxu0 %v8178_v33 }
 0x398   :  { %5771 = vmatpush1.bf16.msra.mxu1 %v8173_v37 }
 0x399   :  { %5803 = vmatpush1.bf16.msra.mxu0 %v8183_v28  ;;  %5805 = vmatprep.subr.bf16.mxu1 %v7945_v53 }
 0x39a   :  { %5837 = vmatprep.subr.bf16.mxu0 %v8004_v58  ;;  %v8883_v58 = vmov 0.0  }
 0x42e   :  { %v5298_v24 = vpop.f32.mrb[66].mxu0 }
 0x42f   :  { %v5299_v31 = vpop.f32.mrb[67].mxu0 }
 0x430   :  { %v5300_v27 = vadd.f32 %v5299_v31, %v5298_v24 }
 0x432   :  { %v2058_v16 = vadd.f32 %v5300_v27, %v4927_v22 }
 0x44e   :  { %v5333_v18 = vpop.f32.mrb[6].mxu1  ;;  %v5498_v29 = vpop.f32.mrb[68].mxu0 }
 0x44f   :  { %v5334_v25 = vpop.f32.mrb[7].mxu1  ;;  %v2205_v20 = vpop.f32.mrb[69].mxu0 }
 0x450   :  { %v5335_v23 = vadd.f32 %v5334_v25, %v5333_v18  ;;  %2309 = vmatmul.mubr.f32.vlgmr.msra.gmra.mrb[8].mxu1 %v2205_v20  ;;  %2422 = vmatmul.mubr.f32.vlgmr.msra.gmra.mrb[76].mxu0 %v2205_v20 }
 0x451   :  { %5807 = vmatpush1.bf16.msra.mxu1 %v8009_v56  ;;  %5839 = vmatpush1.bf16.msra.mxu0 %v8015_v34  ;;  %v8271_v56 = vpack.c.bf16 %v6974_v13, %v6954_v9 }
 0x452   :  { %v8196_v53 = vadd.f32 %v5335_v23, %v2058_v16  ;;  %2314 = vmatprep.mubr.f32.mxu1 %v8883_v58  ;;  %2427 = vmatprep.mubr.f32.mxu0 %v8883_v58  ;;  %v5501_v24 = vpop.f32.mrb[70].mxu0  ;;  %v2502_v23 = vld [vmem:[%s8827_s12] sm:$0xf] }
 0x453   :  { %5809 = vmatprep.subr.bf16.mxu1 %v8020_v60  ;;  %5841 = vmatprep.subr.bf16.mxu0 %v8025_v43  ;;  %v2215_v31 = vpop.f32.mrb[71].mxu0  ;;  %v2507_v25 = vrot.slane %v2502_v23, %v7969_v44 }
 0x454   :  { %2315 = vmatmul.mubr.f32.gmra.mrb[10].mxu1 %v5498_v29  ;;  %2428 = vmatmul.mubr.f32.gmra.mrb[78].mxu0 %v5498_v29  ;;  %v2511_v29 = vrot.slane %v2502_v23, %v7963_v62 }
 0x455   :  { %5811 = vmatpush1.bf16.msra.mxu1 %v8031_v54  ;;  %5843 = vmatpush1.bf16.msra.mxu0 %v8038_v57 }
 0x456   :  { %2320 = vmatprep.mubr.f32.mxu1 %v8883_v58  ;;  %2433 = vmatprep.mubr.f32.mxu0 %v8883_v58  ;;  %v5504_v16 = vpop.f32.mrb[72].mxu0 }
 0x457   :  { %5813 = vmatprep.subr.bf16.mxu1 %v8043_v51  ;;  %5845 = vmatprep.subr.bf16.mxu0 %v8049_v42  ;;  %v2225_v18 = vpop.f32.mrb[73].mxu0 }
 0x458   :  { %2321 = vmatmul.mubr.f32.gmra.mrb[12].mxu1 %v2215_v31  ;;  %2434 = vmatmul.mubr.f32.gmra.mrb[80].mxu0 %v2215_v31 }
 0x459   :  { %5815 = vmatpush1.bf16.msra.mxu1 %v8056_v38  ;;  %5847 = vmatpush1.bf16.msra.mxu0 %v8063_v48 }
 0x45a   :  { %2326 = vmatprep.mubr.f32.mxu1 %v8883_v58  ;;  %2439 = vmatprep.mubr.f32.mxu0 %v8883_v58  ;;  %v5507_v20 = vpop.f32.mrb[74].mxu0 }
 0x45b   :  { %5817 = vmatprep.subr.bf16.mxu1 %v8068_v52  ;;  %5849 = vmatprep.subr.bf16.mxu0 %v8074_v50  ;;  %v2235_v22 = vpop.f32.mrb[75].mxu0 }
 0x45c   :  { %2327 = vmatmul.mubr.f32.gmra.mrb[14].mxu1 %v5501_v24  ;;  %2440 = vmatmul.mubr.f32.gmra.mrb[82].mxu0 %v5501_v24 }
 0x45d   :  { %5819 = vmatpush1.bf16.msra.mxu1 %v8080_v47  ;;  %5851 = vmatpush1.bf16.msra.mxu0 %v8087_v63 }
 0x45e   :  { %2332 = vmatprep.mubr.f32.mxu1 %v8883_v58  ;;  %2445 = vmatprep.mubr.f32.mxu0 %v8883_v58 }
 0x45f   :  { %5821 = vmatprep.subr.bf16.mxu1 %v8092_v40  ;;  %5853 = vmatprep.subr.bf16.mxu0 %v8098_v61 }
 0x460   :  { %2333 = vmatmul.mubr.f32.gmra.mrb[16].mxu1 %v2225_v18  ;;  %2446 = vmatmul.mubr.f32.gmra.mrb[84].mxu0 %v2225_v18 }
 0x461   :  { %5823 = vmatpush1.bf16.msra.mxu1 %v8104_v49  ;;  %5855 = vmatpush1.bf16.msra.mxu0 %v8112_v55 }
 0x462   :  { %2338 = vmatprep.mubr.f32.mxu1 %v8883_v58  ;;  %2451 = vmatprep.mubr.f32.mxu0 %v8883_v58 }
 0x463   :  { %5825 = vmatprep.subr.bf16.mxu1 %v8117_v59  ;;  %5857 = vmatprep.subr.bf16.mxu0 %v8123_v41  ;;  %v8263_v41 = vpack.c.bf16 %v6934_v5, %v6914_v1 }
 0x464   :  { %2339 = vmatmul.mubr.f32.gmra.mrb[18].mxu1 %v5504_v16  ;;  %2452 = vmatmul.mubr.f32.gmra.mrb[86].mxu0 %v5504_v16 }
 0x465   :  { %5827 = vmatpush1.bf16.msra.mxu1 %v8129_v45  ;;  %5859 = vmatpush1.bf16.msra.mxu0 %v8136_v36 }
 0x466   :  { %2344 = vmatprep.mubr.f32.mxu1 %v8883_v58  ;;  %2457 = vmatprep.mubr.f32.mxu0 %v8883_v58 }
 0x467   :  { %5829 = vmatprep.subr.bf16.mxu1 %v8141_v32  ;;  %5861 = vmatprep.subr.bf16.mxu0 %v8147_v39 }
 0x468   :  { %2345 = vmatmul.mubr.f32.gmra.mrb[20].mxu1 %v2235_v22  ;;  %2458 = vmatmul.mubr.f32.gmra.mrb[88].mxu0 %v2235_v22 }
 0x469   :  { %5831 = vmatpush1.bf16.msra.mxu1 %v8153_v35  ;;  %5863 = vmatpush1.bf16.msra.mxu0 %v8160_v30 }
 0x46a   :  { %2350 = vmatprep.mubr.f32.mxu1 %v8883_v58  ;;  %2463 = vmatprep.mubr.f32.mxu0 %v8883_v58 }
 0x46b   :  { %5833 = vmatprep.subr.bf16.mxu1 %v8168_v26  ;;  %5865 = vmatprep.subr.bf16.mxu0 %v8178_v33  ;;  %v8884_v26 = vsub.s32 2, %v7960_v46 }
 0x46c   :  { %2351 = vmatmul.mubr.f32.gmra.mrb[22].mxu1 %v5507_v20  ;;  %2464 = vmatmul.mubr.f32.gmra.mrb[90].mxu0 %v5507_v20 }
 0x46d   :  { %5835 = vmatpush1.bf16.msra.mxu1 %v8173_v37  ;;  %5867 = vmatpush1.bf16.msra.mxu0 %v8183_v28  ;;  %v2515_v27 = vrot.slane %v2502_v23, %v8884_v26  ;;  %v8885_v28 = vsub.s32 3, %v7960_v46  ;;  %v8267_v46 = vpack.c.bf16 %v6929_v4, %v6909_v0 }
 0x46e   :  { %2588 = vmatprep.mubr.f32.mxu1 %v8883_v58  ;;  %2659 = vmatprep.mubr.f32.mxu0 %v8883_v58 }
 0x46f   :  { %v2519_v30 = vrot.slane %v2502_v23, %v8885_v28 }
 0x470   :  { %2589 = vmatmul.mubr.f32.vlgmr.msra.gmra.mrb[24].mxu1 %v8196_v53  ;;  %2660 = vmatmul.mubr.f32.vlgmr.msra.gmra.mrb[92].mxu0 %v8196_v53 }
 0x471   :  { %2806 = vmatprep.mubr.f32.mxu1 %v8883_v58 }
 0x543   :  { %v2590_v32 = vpop.f32.mrb[24].mxu1  ;;  %v2661_v33 = vpop.f32.mrb[92].mxu0 }
 0x544   :  { %v8253_v35 = vadd.f32 %v2590_v32, %v2507_v25  ;;  %v8255_v36 = vadd.f32 %v2661_v33, %v2515_v27  ;;  %v2592_v37 = vpop.f32.mrb[25].mxu1  ;;  %v2663_v39 = vpop.f32.mrb[93].mxu0 }
 0x545   :  { %v8257_v45 = vadd.f32 %v2592_v37, %v2511_v29  ;;  %v8259_v55 = vadd.f32 %v2663_v39, %v2519_v30 }
 0x546   :  { %6812 = dma.done.wait [#allocation8], 8192 }
 0x547   :  { %6813 = vsyncadd [#allocation8], 4294959104  ;;  %2877 = vmatprep.mubr.f32.mxu0 %v8883_v58  ;;  %5869 = vmatprep.subr.bf16.mxu1 %v8263_v41  ;;  %v8278_v1 = vpack.c.bf16 %v6944_v7, %v6924_v3  ;;  %v8282_v0 = vpack.c.bf16 %v6939_v6, %v6919_v2  ;;  %v8287_v4 = vpack.c.bf16 %v6969_v12, %v6949_v8  ;;  %v8886_v6 = vld [vmem:[#allocation20_spill] sm:$0xff]  ;;  %v8888_v9 = vld [vmem:[#allocation18_spill] sm:$0xff] }
 0x548   :  { %5871 = vmatpush1.bf16.msra.mxu1 %v8267_v46  ;;  %v8291_v5 = vpack.c.bf16 %v6984_v15, %v6964_v11  ;;  %v8296_v3 = vpack.c.bf16 %v7014_v21, %v6994_v17  ;;  %v8302_v2 = vpack.c.bf16 %v6979_v14, %v6959_v10  ;;  %v8307_v7 = vpack.c.bf16 %v8886_v6, %v7004_v19  ;;  %v8887_v8 = vld [vmem:[#allocation16_spill] sm:$0xff]  ;;  %v8889_v12 = vld [vmem:[#allocation22_spill] sm:$0xff]  ;;  %v8891_v10 = vld [vmem:[#allocation17_spill] sm:$0xff] }
 0x549   :  { %5873 = vmatprep.subr.bf16.mxu1 %v8271_v56  ;;  %5901 = vmatprep.subr.bf16.mxu0 %v8278_v1  ;;  %v8312_v11 = vpack.c.bf16 %v8888_v9, %v8887_v8  ;;  %v8890_v13 = vld [vmem:[#allocation26_spill] sm:$0xff]  ;;  %v8892_v14 = vld [vmem:[#allocation19_spill] sm:$0xff]  ;;  %v8893_v19 = vld [vmem:[#allocation24_spill] sm:$0xff] }
 0x54a   :  { %5903 = vmatpush1.bf16.msra.mxu0 %v8282_v0  ;;  %v8317_v15 = vpack.c.bf16 %v8890_v13, %v8889_v12  ;;  %v8322_v17 = vpack.c.bf16 %v8892_v14, %v8891_v10  ;;  %v8894_v21 = vld [vmem:[#allocation28_spill] sm:$0xff]  ;;  %v8895_v60 = vld [vmem:[#allocation21_spill] sm:$0xff]  ;;  %v8897_v57 = vld [vmem:[#allocation30_spill] sm:$0xff] }
 0x54b   :  { %5905 = vmatprep.subr.bf16.mxu0 %v8291_v5  ;;  %v8327_v34 = vpack.c.bf16 %v8894_v21, %v8893_v19  ;;  %v8896_v43 = vld [vmem:[#allocation25_spill] sm:$0xff]  ;;  %v8898_v51 = vld [vmem:[#allocation34_spill] sm:$0xff]  ;;  %v8899_v38 = vld [vmem:[#allocation23_spill] sm:$0xff] }
 0x54c   :  { %5875 = vmatpush1.bf16.msra.mxu1 %v8287_v4  ;;  %v8332_v54 = vpack.c.bf16 %v8896_v43, %v8895_v60  ;;  %v8337_v42 = vpack.c.bf16 %v8898_v51, %v8897_v57  ;;  %v8900_v48 = vld [vmem:[#allocation27_spill] sm:$0xff]  ;;  %v8901_v50 = vld [vmem:[#allocation32_spill] sm:$0xff]  ;;  %v8903_v40 = vld [vmem:[#allocation29_spill] sm:$0xff] }
 0x54d   :  { %5877 = vmatprep.subr.bf16.mxu1 %v8296_v3  ;;  %v8342_v52 = vpack.c.bf16 %v8900_v48, %v8899_v38  ;;  %v8902_v47 = vld [vmem:[#allocation36_spill] sm:$0xff]  ;;  %v8904_v61 = vld [vmem:[#allocation33_spill] sm:$0xff]  ;;  %v8905_v59 = vld [vmem:[#allocation38_spill] sm:$0xff] }
 0x54e   :  { %5907 = vmatpush1.bf16.msra.mxu0 %v8302_v2  ;;  %v8347_v63 = vpack.c.bf16 %v8902_v47, %v8901_v50  ;;  %v8352_v49 = vpack.c.bf16 %v8904_v61, %v8903_v40  ;;  %v8906_v53 = vld [vmem:[#allocation42_spill] sm:$0xff]  ;;  %v8907_v31 = vld [vmem:[#allocation31_spill] sm:$0xff]  ;;  %v8909_v20 = vld [vmem:[#allocation40_spill] sm:$0xff] }
 0x54f   :  { %5909 = vmatprep.subr.bf16.mxu0 %v8307_v7  ;;  %v8357_v24 = vpack.c.bf16 %v8906_v53, %v8905_v59  ;;  %v8908_v16 = vld [vmem:[#allocation35_spill] sm:$0xff]  ;;  %v8910_v22 = vld [vmem:[#allocation44_spill] sm:$0xff]  ;;  %v8911_v25 = vld [vmem:[#allocation37_spill] sm:$0xff] }
 0x550   :  { %5879 = vmatpush1.bf16.msra.mxu1 %v8312_v11  ;;  %v8362_v18 = vpack.c.bf16 %v8908_v16, %v8907_v31  ;;  %v8367_v23 = vpack.c.bf16 %v8910_v22, %v8909_v20  ;;  %v8912_v26 = vld [vmem:[#allocation41_spill] sm:$0xff]  ;;  %v8913_v29 = vld [vmem:[#allocation46_spill] sm:$0xff]  ;;  %v8915_v32 = vld [vmem:[#allocation39_spill] sm:$0xff] }
 0x551   :  { %5881 = vmatprep.subr.bf16.mxu1 %v8317_v15  ;;  %v8372_v27 = vpack.c.bf16 %v8912_v26, %v8911_v25  ;;  %v8914_v28 = vld [vmem:[#allocation50_spill] sm:$0xff]  ;;  %v8916_v33 = vld [vmem:[#allocation43_spill] sm:$0xff]  ;;  %v8917_v39 = vld [vmem:[#allocation48_spill] sm:$0xff] }
 0x552   :  { %5911 = vmatpush1.bf16.msra.mxu0 %v8322_v17  ;;  %v8377_v30 = vpack.c.bf16 %v8914_v28, %v8913_v29  ;;  %v8382_v37 = vpack.c.bf16 %v8916_v33, %v8915_v32  ;;  %v8918_v6 = vld [vmem:[#allocation52_spill] sm:$0xff]  ;;  %v8919_v9 = vld [vmem:[#allocation45_spill] sm:$0xff]  ;;  %v8921_v10 = vld [vmem:[#allocation54_spill] sm:$0xff] }
 0x553   :  { %5913 = vmatprep.subr.bf16.mxu0 %v8327_v34  ;;  %v8387_v8 = vpack.c.bf16 %v8918_v6, %v8917_v39  ;;  %v8920_v12 = vld [vmem:[#allocation49_spill] sm:$0xff]  ;;  %v8922_v14 = vld [vmem:[#allocation58_spill] sm:$0xff]  ;;  %v8923_v21 = vld [vmem:[#allocation47_spill] sm:$0xff] }
 0x554   :  { %5883 = vmatpush1.bf16.msra.mxu1 %v8332_v54  ;;  %v8392_v13 = vpack.c.bf16 %v8920_v12, %v8919_v9  ;;  %v8397_v19 = vpack.c.bf16 %v8922_v14, %v8921_v10  ;;  %v8924_v60 = vld [vmem:[#allocation51_spill] sm:$0xff]  ;;  %v8925_v57 = vld [vmem:[#allocation56_spill] sm:$0xff]  ;;  %v8927_v48 = vld [vmem:[#allocation53_spill] sm:$0xff] }
 0x555   :  { %5885 = vmatprep.subr.bf16.mxu1 %v8337_v42  ;;  %v8402_v43 = vpack.c.bf16 %v8924_v60, %v8923_v21  ;;  %v8926_v51 = vld [vmem:[#allocation60_spill] sm:$0xff]  ;;  %v8928_v50 = vld [vmem:[#allocation57_spill] sm:$0xff]  ;;  %v8929_v40 = vld [vmem:[#allocation55_spill] sm:$0xff] }
 0x556   :  { %5915 = vmatpush1.bf16.msra.mxu0 %v8342_v52  ;;  %v8407_v38 = vpack.c.bf16 %v8926_v51, %v8925_v57  ;;  %v8412_v47 = vpack.c.bf16 %v8928_v50, %v8927_v48  ;;  %v8930_v61 = vld [vmem:[#allocation59_spill] sm:$0xff] }
 0x557   :  { %5917 = vmatprep.subr.bf16.mxu0 %v8347_v63  ;;  %v8418_v59 = vpack.c.bf16 %v8930_v61, %v8929_v40 }
 0x558   :  { %5887 = vmatpush1.bf16.msra.mxu1 %v8352_v49 }
 0x559   :  { %5889 = vmatprep.subr.bf16.mxu1 %v8357_v24 }
 0x55a   :  { %5919 = vmatpush1.bf16.msra.mxu0 %v8362_v18 }
 0x55b   :  { %5921 = vmatprep.subr.bf16.mxu0 %v8367_v23 }
 0x55c   :  { %5891 = vmatpush1.bf16.msra.mxu1 %v8372_v27 }
 0x55d   :  { %5893 = vmatprep.subr.bf16.mxu1 %v8377_v30 }
 0x55e   :  { %5923 = vmatpush1.bf16.msra.mxu0 %v8382_v37 }
 0x55f   :  { %5925 = vmatprep.subr.bf16.mxu0 %v8387_v8 }
 0x560   :  { %5895 = vmatpush1.bf16.msra.mxu1 %v8392_v13 }
 0x561   :  { %5897 = vmatprep.subr.bf16.mxu1 %v8397_v19 }
 0x562   :  { %5927 = vmatpush1.bf16.msra.mxu0 %v8402_v43 }
 0x563   :  { %5929 = vmatprep.subr.bf16.mxu0 %v8407_v38 }
 0x564   :  { %5899 = vmatpush1.bf16.msra.mxu1 %v8412_v47 }
 0x565   :  { %5933 = vmatprep.subr.bf16.mxu1 %v8263_v41 }
 0x566   :  { %5931 = vmatpush1.bf16.msra.mxu0 %v8418_v59 }
 0x567   :  { %2807 = vmatmul.mubr.f32.vlgmr.msra.gmra.mrb[8].mxu1 %v8883_v58  ;;  %5965 = vmatprep.subr.bf16.mxu0 %v8278_v1 }
 0x568   :  { %5935 = vmatpush1.bf16.msra.mxu1 %v8267_v46  ;;  %3046 = vmatprep.mubr.f32.mxu1 %v8883_v58 }
 0x569   :  { %2878 = vmatmul.mubr.f32.vlgmr.msra.gmra.mrb[76].mxu0 %v8883_v58  ;;  %5937 = vmatprep.subr.bf16.mxu1 %v8271_v56 }
 0x56a   :  { %5967 = vmatpush1.bf16.msra.mxu0 %v8282_v0  ;;  %3117 = vmatprep.mubr.f32.mxu0 %v8883_v58 }
 0x56b   :  { %5969 = vmatprep.subr.bf16.mxu0 %v8291_v5 }
 0x56c   :  { %5939 = vmatpush1.bf16.msra.mxu1 %v8287_v4 }
 0x56d   :  { %5941 = vmatprep.subr.bf16.mxu1 %v8296_v3 }
 0x56e   :  { %5971 = vmatpush1.bf16.msra.mxu0 %v8302_v2 }
 0x56f   :  { %5973 = vmatprep.subr.bf16.mxu0 %v8307_v7 }
 0x570   :  { %5943 = vmatpush1.bf16.msra.mxu1 %v8312_v11 }
 0x571   :  { %5945 = vmatprep.subr.bf16.mxu1 %v8317_v15 }
 0x572   :  { %5975 = vmatpush1.bf16.msra.mxu0 %v8322_v17 }
 0x573   :  { %5977 = vmatprep.subr.bf16.mxu0 %v8327_v34 }
 0x574   :  { %5947 = vmatpush1.bf16.msra.mxu1 %v8332_v54 }
 0x575   :  { %5949 = vmatprep.subr.bf16.mxu1 %v8337_v42 }
 0x576   :  { %5979 = vmatpush1.bf16.msra.mxu0 %v8342_v52 }
 0x577   :  { %5981 = vmatprep.subr.bf16.mxu0 %v8347_v63 }
 0x578   :  { %5951 = vmatpush1.bf16.msra.mxu1 %v8352_v49 }
 0x579   :  { %5953 = vmatprep.subr.bf16.mxu1 %v8357_v24 }
 0x57a   :  { %5983 = vmatpush1.bf16.msra.mxu0 %v8362_v18 }
 0x57b   :  { %5985 = vmatprep.subr.bf16.mxu0 %v8367_v23 }
 0x57c   :  { %5955 = vmatpush1.bf16.msra.mxu1 %v8372_v27 }
 0x57d   :  { %5957 = vmatprep.subr.bf16.mxu1 %v8377_v30 }
 0x57e   :  { %5987 = vmatpush1.bf16.msra.mxu0 %v8382_v37 }
 0x57f   :  { %5989 = vmatprep.subr.bf16.mxu0 %v8387_v8 }
 0x580   :  { %5959 = vmatpush1.bf16.msra.mxu1 %v8392_v13 }
 0x581   :  { %5961 = vmatprep.subr.bf16.mxu1 %v8397_v19 }
 0x582   :  { %5991 = vmatpush1.bf16.msra.mxu0 %v8402_v43 }
 0x583   :  { %5993 = vmatprep.subr.bf16.mxu0 %v8407_v38 }
 0x584   :  { %5963 = vmatpush1.bf16.msra.mxu1 %v8412_v47 }
 0x585   :  { %5997 = vmatprep.subr.bf16.mxu1 %v8263_v41 }
 0x586   :  { %5995 = vmatpush1.bf16.msra.mxu0 %v8418_v59 }
 0x587   :  { %6029 = vmatprep.subr.bf16.mxu0 %v8278_v1 }
 0x63a   :  { %v2808_v53 = vpop.f32.mrb[8].mxu1 }
 0x63b   :  { %v6412_v31 = vadd.f32 %v2808_v53, %v8253_v35  ;;  %v2810_v16 = vpop.f32.mrb[9].mxu1 }
 0x63c   :  { %v6413_v20 = vadd.f32 %v2810_v16, %v8257_v45  ;;  %v2879_v22 = vpop.f32.mrb[76].mxu0 }
 0x63d   :  { %v2888_v25 = vsub.f32 0.0, %v6412_v31  ;;  %v2881_v26 = vpop.f32.mrb[77].mxu0  ;;  %v6428_v9 = vadd.f32 %v2879_v22, %v8255_v36 }
 0x63e   :  { %v2893_v29 = vsub.f32 0.0, %v6413_v20  ;;  %v6429_v32 = vadd.f32 %v2881_v26, %v8259_v55 }
 0x63f   :  { %v2889_v28 = vmul.f32 1.442695, %v2888_v25 }
 0x640   :  { %v2894_v33 = vmul.f32 1.442695, %v2893_v29  ;;  %v2899_v39 = vsub.f32 0.0, %v6429_v32 }
 0x641   :  { %6670 = vpow2.f32 %v2889_v28 }
 0x642   :  { %6672 = vpow2.f32 %v2894_v33  ;;  %v2900_v6 = vmul.f32 1.442695, %v2899_v39 }
 0x644   :  { %6674 = vpow2.f32 %v2900_v6 }
 0x645   :  { %6676 = vtanh.f32 %v6428_v9 }
 0x64b   :  { %v6671_v12 = vpop.eup %6670 }
 0x64c   :  { %v6673_v10 = vpop.eup %6672  ;;  %v2891_v14 = vadd.f32 1.0, %v6671_v12 }
 0x64d   :  { %v2896_v21 = vadd.f32 1.0, %v6673_v10 }
 0x64e   :  { %6678 = vrcp.f32 %v2891_v14  ;;  %v6675_v60 = vpop.eup %6674 }
 0x64f   :  { %6680 = vrcp.f32 %v2896_v21  ;;  %v6677_v57 = vpop.eup %6676  ;;  %v2902_v48 = vadd.f32 1.0, %v6675_v60 }
 0x651   :  { %6682 = vrcp.f32 %v2902_v48 }
 0x658   :  { %v6679_v51 = vpop.eup %6678 }
 0x659   :  { %v6681_v50 = vpop.eup %6680  ;;  %v2905_v40 = vmul.f32 %v6679_v51, %v6677_v57 }
 0x65a   :  { %v2904_v61 = vmul.f32 0.0, %v6681_v50 }
 0x65b   :  { %v6683_v31 = vpop.eup %6682 }
 0x65c   :  { %v8465_v53 = vadd.f32 %v2905_v40, %v2904_v61 }
 0x65e   :  { %6684 = vtanh.f32 %v8465_v53 }
 0x668   :  { %v6685_v16 = vpop.eup %6684 }
 0x669   :  { %v8468_v20 = vmul.f32 %v6685_v16, %v6683_v31 }
 0x66b   :  { %3047 = vmatmul.mubr.f32.vlgmr.msra.gmra.mrb[10].mxu1 %v8468_v20  ;;  %3118 = vmatmul.mubr.f32.vlgmr.msra.gmra.mrb[78].mxu0 %v8468_v20 }
 0x66c   :  { %5999 = vmatpush1.bf16.msra.mxu1 %v8267_v46  ;;  %6031 = vmatpush1.bf16.msra.mxu0 %v8282_v0 }
 0x66d   :  { %6001 = vmatprep.subr.bf16.mxu1 %v8271_v56  ;;  %6033 = vmatprep.subr.bf16.mxu0 %v8291_v5 }
 0x66e   :  { %3286 = vmatprep.mubr.f32.mxu1 %v8883_v58  ;;  %3357 = vmatprep.mubr.f32.mxu0 %v8883_v58 }
 0x670   :  { %6003 = vmatpush1.bf16.msra.mxu1 %v8287_v4  ;;  %6035 = vmatpush1.bf16.msra.mxu0 %v8302_v2 }
 0x671   :  { %6005 = vmatprep.subr.bf16.mxu1 %v8296_v3  ;;  %6037 = vmatprep.subr.bf16.mxu0 %v8307_v7 }
 0x674   :  { %6007 = vmatpush1.bf16.msra.mxu1 %v8312_v11  ;;  %6039 = vmatpush1.bf16.msra.mxu0 %v8322_v17 }
 0x675   :  { %6009 = vmatprep.subr.bf16.mxu1 %v8317_v15  ;;  %6041 = vmatprep.subr.bf16.mxu0 %v8327_v34 }
 0x678   :  { %6011 = vmatpush1.bf16.msra.mxu1 %v8332_v54  ;;  %6043 = vmatpush1.bf16.msra.mxu0 %v8342_v52 }
 0x679   :  { %6013 = vmatprep.subr.bf16.mxu1 %v8337_v42  ;;  %6045 = vmatprep.subr.bf16.mxu0 %v8347_v63 }
 0x67c   :  { %6015 = vmatpush1.bf16.msra.mxu1 %v8352_v49  ;;  %6047 = vmatpush1.bf16.msra.mxu0 %v8362_v18 }
 0x67d   :  { %6017 = vmatprep.subr.bf16.mxu1 %v8357_v24  ;;  %6049 = vmatprep.subr.bf16.mxu0 %v8367_v23 }
 0x680   :  { %6019 = vmatpush1.bf16.msra.mxu1 %v8372_v27  ;;  %6051 = vmatpush1.bf16.msra.mxu0 %v8382_v37 }
 0x681   :  { %6021 = vmatprep.subr.bf16.mxu1 %v8377_v30  ;;  %6053 = vmatprep.subr.bf16.mxu0 %v8387_v8 }
 0x684   :  { %6023 = vmatpush1.bf16.msra.mxu1 %v8392_v13  ;;  %6055 = vmatpush1.bf16.msra.mxu0 %v8402_v43 }
 0x685   :  { %6025 = vmatprep.subr.bf16.mxu1 %v8397_v19  ;;  %6057 = vmatprep.subr.bf16.mxu0 %v8407_v38 }
 0x688   :  { %6027 = vmatpush1.bf16.msra.mxu1 %v8412_v47  ;;  %6059 = vmatpush1.bf16.msra.mxu0 %v8418_v59 }
 0x689   :  { %6061 = vmatprep.subr.bf16.mxu1 %v8263_v41  ;;  %6093 = vmatprep.subr.bf16.mxu0 %v8278_v1 }
 0x73e   :  { %v3048_v22 = vpop.f32.mrb[10].mxu1  ;;  %v3119_v25 = vpop.f32.mrb[78].mxu0 }
 0x73f   :  { %v6414_v26 = vadd.f32 %v3048_v22, %v8253_v35  ;;  %v3050_v29 = vpop.f32.mrb[11].mxu1  ;;  %v3121_v28 = vpop.f32.mrb[79].mxu0  ;;  %v6430_v21 = vadd.f32 %v3119_v25, %v8255_v36 }
 0x740   :  { %v6415_v32 = vadd.f32 %v3050_v29, %v8257_v45  ;;  %v6431_v12 = vadd.f32 %v3121_v28, %v8259_v55 }
 0x741   :  { %v3128_v33 = vsub.f32 0.0, %v6414_v26 }
 0x742   :  { %v3133_v39 = vsub.f32 0.0, %v6415_v32  ;;  %v3139_v10 = vsub.f32 0.0, %v6431_v12 }
 0x743   :  { %v3129_v6 = vmul.f32 1.442695, %v3128_v33 }
 0x744   :  { %v3134_v9 = vmul.f32 1.442695, %v3133_v39  ;;  %v3140_v14 = vmul.f32 1.442695, %v3139_v10 }
 0x745   :  { %6686 = vpow2.f32 %v3129_v6 }
 0x746   :  { %6688 = vpow2.f32 %v3134_v9 }
 0x747   :  { %6690 = vpow2.f32 %v3140_v14 }
 0x748   :  { %6692 = vtanh.f32 %v6430_v21 }
 0x74f   :  { %v6687_v60 = vpop.eup %6686 }
 0x750   :  { %v6689_v57 = vpop.eup %6688  ;;  %v3131_v51 = vadd.f32 1.0, %v6687_v60 }
 0x751   :  { %v3136_v48 = vadd.f32 1.0, %v6689_v57  ;;  %v6691_v50 = vpop.eup %6690 }
 0x752   :  { %6694 = vrcp.f32 %v3131_v51  ;;  %v6693_v40 = vpop.eup %6692  ;;  %v3142_v22 = vadd.f32 1.0, %v6691_v50 }
 0x753   :  { %6696 = vrcp.f32 %v3136_v48 }
 0x754   :  { %6698 = vrcp.f32 %v3142_v22 }
 0x75c   :  { %v6695_v61 = vpop.eup %6694 }
 0x75d   :  { %v6697_v31 = vpop.eup %6696  ;;  %v3145_v16 = vmul.f32 %v6695_v61, %v6693_v40 }
 0x75e   :  { %v3144_v26 = vmul.f32 %v6697_v31, %v8465_v53  ;;  %v6699_v25 = vpop.eup %6698 }
 0x760   :  { %v8511_v29 = vadd.f32 %v3145_v16, %v3144_v26 }
 0x762   :  { %6700 = vtanh.f32 %v8511_v29 }
 0x76c   :  { %v6701_v28 = vpop.eup %6700 }
 0x76d   :  { %v8514_v32 = vmul.f32 %v6701_v28, %v6699_v25 }
 0x76f   :  { %3287 = vmatmul.mubr.f32.vlgmr.msra.gmra.mrb[12].mxu1 %v8514_v32  ;;  %3358 = vmatmul.mubr.f32.vlgmr.msra.gmra.mrb[80].mxu0 %v8514_v32 }
 0x770   :  { %6063 = vmatpush1.bf16.msra.mxu1 %v8267_v46  ;;  %6095 = vmatpush1.bf16.msra.mxu0 %v8282_v0 }
 0x771   :  { %6065 = vmatprep.subr.bf16.mxu1 %v8271_v56  ;;  %6097 = vmatprep.subr.bf16.mxu0 %v8291_v5 }
 0x772   :  { %3526 = vmatprep.mubr.f32.mxu1 %v8883_v58  ;;  %3597 = vmatprep.mubr.f32.mxu0 %v8883_v58 }
 0x774   :  { %6067 = vmatpush1.bf16.msra.mxu1 %v8287_v4  ;;  %6099 = vmatpush1.bf16.msra.mxu0 %v8302_v2 }
 0x775   :  { %6069 = vmatprep.subr.bf16.mxu1 %v8296_v3  ;;  %6101 = vmatprep.subr.bf16.mxu0 %v8307_v7 }
 0x778   :  { %6071 = vmatpush1.bf16.msra.mxu1 %v8312_v11  ;;  %6103 = vmatpush1.bf16.msra.mxu0 %v8322_v17 }
 0x779   :  { %6073 = vmatprep.subr.bf16.mxu1 %v8317_v15  ;;  %6105 = vmatprep.subr.bf16.mxu0 %v8327_v34 }
 0x77c   :  { %6075 = vmatpush1.bf16.msra.mxu1 %v8332_v54  ;;  %6107 = vmatpush1.bf16.msra.mxu0 %v8342_v52 }
 0x77d   :  { %6077 = vmatprep.subr.bf16.mxu1 %v8337_v42  ;;  %6109 = vmatprep.subr.bf16.mxu0 %v8347_v63 }
 0x780   :  { %6079 = vmatpush1.bf16.msra.mxu1 %v8352_v49  ;;  %6111 = vmatpush1.bf16.msra.mxu0 %v8362_v18 }
 0x781   :  { %6081 = vmatprep.subr.bf16.mxu1 %v8357_v24  ;;  %6113 = vmatprep.subr.bf16.mxu0 %v8367_v23 }
 0x784   :  { %6083 = vmatpush1.bf16.msra.mxu1 %v8372_v27  ;;  %6115 = vmatpush1.bf16.msra.mxu0 %v8382_v37 }
 0x785   :  { %6085 = vmatprep.subr.bf16.mxu1 %v8377_v30  ;;  %6117 = vmatprep.subr.bf16.mxu0 %v8387_v8 }
 0x788   :  { %6087 = vmatpush1.bf16.msra.mxu1 %v8392_v13  ;;  %6119 = vmatpush1.bf16.msra.mxu0 %v8402_v43 }
 0x789   :  { %6089 = vmatprep.subr.bf16.mxu1 %v8397_v19  ;;  %6121 = vmatprep.subr.bf16.mxu0 %v8407_v38 }
 0x78c   :  { %6091 = vmatpush1.bf16.msra.mxu1 %v8412_v47  ;;  %6123 = vmatpush1.bf16.msra.mxu0 %v8418_v59 }
 0x78d   :  { %6125 = vmatprep.subr.bf16.mxu1 %v8263_v41  ;;  %6157 = vmatprep.subr.bf16.mxu0 %v8278_v1 }
 0x842   :  { %v3288_v53 = vpop.f32.mrb[12].mxu1  ;;  %v3359_v33 = vpop.f32.mrb[80].mxu0 }
 0x843   :  { %v6416_v39 = vadd.f32 %v3288_v53, %v8253_v35  ;;  %v3290_v6 = vpop.f32.mrb[13].mxu1  ;;  %v3361_v9 = vpop.f32.mrb[81].mxu0  ;;  %v6432_v50 = vadd.f32 %v3359_v33, %v8255_v36 }
 0x844   :  { %v6417_v12 = vadd.f32 %v3290_v6, %v8257_v45  ;;  %v6433_v57 = vadd.f32 %v3361_v9, %v8259_v55 }
 0x845   :  { %v3368_v10 = vsub.f32 0.0, %v6416_v39 }
 0x846   :  { %v3373_v14 = vsub.f32 0.0, %v6417_v12  ;;  %v3379_v51 = vsub.f32 0.0, %v6433_v57 }
 0x847   :  { %v3369_v21 = vmul.f32 1.442695, %v3368_v10 }
 0x848   :  { %v3374_v60 = vmul.f32 1.442695, %v3373_v14  ;;  %v3380_v48 = vmul.f32 1.442695, %v3379_v51 }
 0x849   :  { %6702 = vpow2.f32 %v3369_v21 }
 0x84a   :  { %6704 = vpow2.f32 %v3374_v60 }
 0x84b   :  { %6706 = vpow2.f32 %v3380_v48 }
 0x84c   :  { %6708 = vtanh.f32 %v6432_v50 }
 0x853   :  { %v6703_v40 = vpop.eup %6702 }
 0x854   :  { %v6705_v61 = vpop.eup %6704  ;;  %v3371_v31 = vadd.f32 1.0, %v6703_v40 }
 0x855   :  { %v3376_v16 = vadd.f32 1.0, %v6705_v61  ;;  %v6707_v22 = vpop.eup %6706 }
 0x856   :  { %6710 = vrcp.f32 %v3371_v31  ;;  %v6709_v26 = vpop.eup %6708  ;;  %v3382_v39 = vadd.f32 1.0, %v6707_v22 }
 0x857   :  { %6712 = vrcp.f32 %v3376_v16 }
 0x858   :  { %6714 = vrcp.f32 %v3382_v39 }
 0x860   :  { %v6711_v25 = vpop.eup %6710 }
 0x861   :  { %v6713_v28 = vpop.eup %6712  ;;  %v3385_v53 = vmul.f32 %v6711_v25, %v6709_v26 }
 0x862   :  { %v3384_v6 = vmul.f32 %v6713_v28, %v8511_v29  ;;  %v6715_v33 = vpop.eup %6714 }
 0x864   :  { %v8557_v9 = vadd.f32 %v3385_v53, %v3384_v6 }
 0x866   :  { %6716 = vtanh.f32 %v8557_v9 }
 0x870   :  { %v6717_v12 = vpop.eup %6716 }
 0x871   :  { %v8560_v10 = vmul.f32 %v6717_v12, %v6715_v33 }
 0x873   :  { %3527 = vmatmul.mubr.f32.vlgmr.msra.gmra.mrb[14].mxu1 %v8560_v10  ;;  %3598 = vmatmul.mubr.f32.vlgmr.msra.gmra.mrb[82].mxu0 %v8560_v10 }
 0x874   :  { %6127 = vmatpush1.bf16.msra.mxu1 %v8267_v46  ;;  %6159 = vmatpush1.bf16.msra.mxu0 %v8282_v0 }
 0x875   :  { %6129 = vmatprep.subr.bf16.mxu1 %v8271_v56  ;;  %6161 = vmatprep.subr.bf16.mxu0 %v8291_v5 }
 0x876   :  { %3766 = vmatprep.mubr.f32.mxu1 %v8883_v58  ;;  %3837 = vmatprep.mubr.f32.mxu0 %v8883_v58 }
 0x878   :  { %6131 = vmatpush1.bf16.msra.mxu1 %v8287_v4  ;;  %6163 = vmatpush1.bf16.msra.mxu0 %v8302_v2 }
 0x879   :  { %6133 = vmatprep.subr.bf16.mxu1 %v8296_v3  ;;  %6165 = vmatprep.subr.bf16.mxu0 %v8307_v7 }
 0x87c   :  { %6135 = vmatpush1.bf16.msra.mxu1 %v8312_v11  ;;  %6167 = vmatpush1.bf16.msra.mxu0 %v8322_v17 }
 0x87d   :  { %6137 = vmatprep.subr.bf16.mxu1 %v8317_v15  ;;  %6169 = vmatprep.subr.bf16.mxu0 %v8327_v34 }
 0x880   :  { %6139 = vmatpush1.bf16.msra.mxu1 %v8332_v54  ;;  %6171 = vmatpush1.bf16.msra.mxu0 %v8342_v52 }
 0x881   :  { %6141 = vmatprep.subr.bf16.mxu1 %v8337_v42  ;;  %6173 = vmatprep.subr.bf16.mxu0 %v8347_v63 }
 0x884   :  { %6143 = vmatpush1.bf16.msra.mxu1 %v8352_v49  ;;  %6175 = vmatpush1.bf16.msra.mxu0 %v8362_v18 }
 0x885   :  { %6145 = vmatprep.subr.bf16.mxu1 %v8357_v24  ;;  %6177 = vmatprep.subr.bf16.mxu0 %v8367_v23 }
 0x888   :  { %6147 = vmatpush1.bf16.msra.mxu1 %v8372_v27  ;;  %6179 = vmatpush1.bf16.msra.mxu0 %v8382_v37 }
 0x889   :  { %6149 = vmatprep.subr.bf16.mxu1 %v8377_v30  ;;  %6181 = vmatprep.subr.bf16.mxu0 %v8387_v8 }
 0x88c   :  { %6151 = vmatpush1.bf16.msra.mxu1 %v8392_v13  ;;  %6183 = vmatpush1.bf16.msra.mxu0 %v8402_v43 }
 0x88d   :  { %6153 = vmatprep.subr.bf16.mxu1 %v8397_v19  ;;  %6185 = vmatprep.subr.bf16.mxu0 %v8407_v38 }
 0x890   :  { %6155 = vmatpush1.bf16.msra.mxu1 %v8412_v47  ;;  %6187 = vmatpush1.bf16.msra.mxu0 %v8418_v59 }
 0x891   :  { %6189 = vmatprep.subr.bf16.mxu1 %v8263_v41  ;;  %6221 = vmatprep.subr.bf16.mxu0 %v8278_v1 }
 0x946   :  { %v3528_v29 = vpop.f32.mrb[14].mxu1  ;;  %v3599_v14 = vpop.f32.mrb[82].mxu0 }
 0x947   :  { %v6418_v21 = vadd.f32 %v3528_v29, %v8253_v35  ;;  %v3530_v60 = vpop.f32.mrb[15].mxu1  ;;  %v3601_v57 = vpop.f32.mrb[83].mxu0  ;;  %v6434_v26 = vadd.f32 %v3599_v14, %v8255_v36 }
 0x948   :  { %v6419_v51 = vadd.f32 %v3530_v60, %v8257_v45  ;;  %v6435_v31 = vadd.f32 %v3601_v57, %v8259_v55 }
 0x949   :  { %v3608_v48 = vsub.f32 0.0, %v6418_v21 }
 0x94a   :  { %v3613_v50 = vsub.f32 0.0, %v6419_v51  ;;  %v3619_v16 = vsub.f32 0.0, %v6435_v31 }
 0x94b   :  { %v3609_v40 = vmul.f32 1.442695, %v3608_v48 }
 0x94c   :  { %v3614_v61 = vmul.f32 1.442695, %v3613_v50  ;;  %v3620_v22 = vmul.f32 1.442695, %v3619_v16 }
 0x94d   :  { %6718 = vpow2.f32 %v3609_v40 }
 0x94e   :  { %6720 = vpow2.f32 %v3614_v61 }
 0x94f   :  { %6722 = vpow2.f32 %v3620_v22 }
 0x950   :  { %6724 = vtanh.f32 %v6434_v26 }
 0x957   :  { %v6719_v25 = vpop.eup %6718 }
 0x958   :  { %v6721_v28 = vpop.eup %6720  ;;  %v3611_v53 = vadd.f32 1.0, %v6719_v25 }
 0x959   :  { %v3616_v39 = vadd.f32 1.0, %v6721_v28  ;;  %v6723_v6 = vpop.eup %6722 }
 0x95a   :  { %6726 = vrcp.f32 %v3611_v53  ;;  %v6725_v33 = vpop.eup %6724  ;;  %v3622_v60 = vadd.f32 1.0, %v6723_v6 }
 0x95b   :  { %6728 = vrcp.f32 %v3616_v39 }
 0x95c   :  { %6730 = vrcp.f32 %v3622_v60 }
 0x964   :  { %v6727_v12 = vpop.eup %6726 }
 0x965   :  { %v6729_v29 = vpop.eup %6728  ;;  %v3625_v21 = vmul.f32 %v6727_v12, %v6725_v33 }
 0x966   :  { %v3624_v57 = vmul.f32 %v6729_v29, %v8557_v9  ;;  %v6731_v14 = vpop.eup %6730 }
 0x968   :  { %v8603_v51 = vadd.f32 %v3625_v21, %v3624_v57 }
 0x96a   :  { %6732 = vtanh.f32 %v8603_v51 }
 0x974   :  { %v6733_v48 = vpop.eup %6732 }
 0x975   :  { %v8606_v50 = vmul.f32 %v6733_v48, %v6731_v14 }
 0x977   :  { %3767 = vmatmul.mubr.f32.vlgmr.msra.gmra.mrb[16].mxu1 %v8606_v50  ;;  %3838 = vmatmul.mubr.f32.vlgmr.msra.gmra.mrb[84].mxu0 %v8606_v50 }
 0x978   :  { %6191 = vmatpush1.bf16.msra.mxu1 %v8267_v46  ;;  %6223 = vmatpush1.bf16.msra.mxu0 %v8282_v0 }
 0x979   :  { %6193 = vmatprep.subr.bf16.mxu1 %v8271_v56  ;;  %6225 = vmatprep.subr.bf16.mxu0 %v8291_v5 }
 0x97a   :  { %4006 = vmatprep.mubr.f32.mxu1 %v8883_v58  ;;  %4077 = vmatprep.mubr.f32.mxu0 %v8883_v58 }
 0x97c   :  { %6195 = vmatpush1.bf16.msra.mxu1 %v8287_v4  ;;  %6227 = vmatpush1.bf16.msra.mxu0 %v8302_v2 }
 0x97d   :  { %6197 = vmatprep.subr.bf16.mxu1 %v8296_v3  ;;  %6229 = vmatprep.subr.bf16.mxu0 %v8307_v7 }
 0x980   :  { %6199 = vmatpush1.bf16.msra.mxu1 %v8312_v11  ;;  %6231 = vmatpush1.bf16.msra.mxu0 %v8322_v17 }
 0x981   :  { %6201 = vmatprep.subr.bf16.mxu1 %v8317_v15  ;;  %6233 = vmatprep.subr.bf16.mxu0 %v8327_v34 }
 0x984   :  { %6203 = vmatpush1.bf16.msra.mxu1 %v8332_v54  ;;  %6235 = vmatpush1.bf16.msra.mxu0 %v8342_v52 }
 0x985   :  { %6205 = vmatprep.subr.bf16.mxu1 %v8337_v42  ;;  %6237 = vmatprep.subr.bf16.mxu0 %v8347_v63 }
 0x988   :  { %6207 = vmatpush1.bf16.msra.mxu1 %v8352_v49  ;;  %6239 = vmatpush1.bf16.msra.mxu0 %v8362_v18 }
 0x989   :  { %6209 = vmatprep.subr.bf16.mxu1 %v8357_v24  ;;  %6241 = vmatprep.subr.bf16.mxu0 %v8367_v23 }
 0x98c   :  { %6211 = vmatpush1.bf16.msra.mxu1 %v8372_v27  ;;  %6243 = vmatpush1.bf16.msra.mxu0 %v8382_v37 }
 0x98d   :  { %6213 = vmatprep.subr.bf16.mxu1 %v8377_v30  ;;  %6245 = vmatprep.subr.bf16.mxu0 %v8387_v8 }
 0x990   :  { %6215 = vmatpush1.bf16.msra.mxu1 %v8392_v13  ;;  %6247 = vmatpush1.bf16.msra.mxu0 %v8402_v43 }
 0x991   :  { %6217 = vmatprep.subr.bf16.mxu1 %v8397_v19  ;;  %6249 = vmatprep.subr.bf16.mxu0 %v8407_v38 }
 0x994   :  { %6219 = vmatpush1.bf16.msra.mxu1 %v8412_v47  ;;  %6251 = vmatpush1.bf16.msra.mxu0 %v8418_v59 }
 0x995   :  { %6253 = vmatprep.subr.bf16.mxu1 %v8263_v41  ;;  %6285 = vmatprep.subr.bf16.mxu0 %v8278_v1 }
 0xa4a   :  { %v3768_v9 = vpop.f32.mrb[16].mxu1  ;;  %v3839_v40 = vpop.f32.mrb[84].mxu0 }
 0xa4b   :  { %v6420_v61 = vadd.f32 %v3768_v9, %v8253_v35  ;;  %v3770_v31 = vpop.f32.mrb[17].mxu1  ;;  %v3841_v16 = vpop.f32.mrb[85].mxu0  ;;  %v6436_v12 = vadd.f32 %v3839_v40, %v8255_v36 }
 0xa4c   :  { %v6421_v22 = vadd.f32 %v3770_v31, %v8257_v45  ;;  %v6437_v39 = vadd.f32 %v3841_v16, %v8259_v55 }
 0xa4d   :  { %v3848_v26 = vsub.f32 0.0, %v6420_v61 }
 0xa4e   :  { %v3853_v25 = vsub.f32 0.0, %v6421_v22  ;;  %v3859_v6 = vsub.f32 0.0, %v6437_v39 }
 0xa4f   :  { %v3849_v28 = vmul.f32 1.442695, %v3848_v26 }
 0xa50   :  { %v3854_v53 = vmul.f32 1.442695, %v3853_v25  ;;  %v3860_v33 = vmul.f32 1.442695, %v3859_v6 }
 0xa51   :  { %6734 = vpow2.f32 %v3849_v28 }
 0xa52   :  { %6736 = vpow2.f32 %v3854_v53 }
 0xa53   :  { %6738 = vpow2.f32 %v3860_v33 }
 0xa54   :  { %6740 = vtanh.f32 %v6436_v12 }
 0xa5b   :  { %v6735_v29 = vpop.eup %6734 }
 0xa5c   :  { %v6737_v21 = vpop.eup %6736  ;;  %v3851_v60 = vadd.f32 1.0, %v6735_v29 }
 0xa5d   :  { %v3856_v57 = vadd.f32 1.0, %v6737_v21  ;;  %v6739_v14 = vpop.eup %6738 }
 0xa5e   :  { %6742 = vrcp.f32 %v3851_v60  ;;  %v6741_v48 = vpop.eup %6740  ;;  %v3862_v16 = vadd.f32 1.0, %v6739_v14 }
 0xa5f   :  { %6744 = vrcp.f32 %v3856_v57 }
 0xa60   :  { %6746 = vrcp.f32 %v3862_v16 }
 0xa68   :  { %v6743_v9 = vpop.eup %6742 }
 0xa69   :  { %v6745_v61 = vpop.eup %6744  ;;  %v3865_v31 = vmul.f32 %v6743_v9, %v6741_v48 }
 0xa6a   :  { %v3864_v22 = vmul.f32 %v6745_v61, %v8603_v51  ;;  %v6747_v40 = vpop.eup %6746 }
 0xa6c   :  { %v8649_v26 = vadd.f32 %v3865_v31, %v3864_v22 }
 0xa6e   :  { %6748 = vtanh.f32 %v8649_v26 }
 0xa78   :  { %v6749_v25 = vpop.eup %6748 }
 0xa79   :  { %v8652_v28 = vmul.f32 %v6749_v25, %v6747_v40 }
 0xa7b   :  { %4007 = vmatmul.mubr.f32.vlgmr.msra.gmra.mrb[18].mxu1 %v8652_v28  ;;  %4078 = vmatmul.mubr.f32.vlgmr.msra.gmra.mrb[86].mxu0 %v8652_v28 }
 0xa7c   :  { %6255 = vmatpush1.bf16.msra.mxu1 %v8267_v46  ;;  %6287 = vmatpush1.bf16.msra.mxu0 %v8282_v0 }
 0xa7d   :  { %6257 = vmatprep.subr.bf16.mxu1 %v8271_v56  ;;  %6289 = vmatprep.subr.bf16.mxu0 %v8291_v5 }
 0xa7e   :  { %4246 = vmatprep.mubr.f32.mxu1 %v8883_v58  ;;  %4317 = vmatprep.mubr.f32.mxu0 %v8883_v58 }
 0xa80   :  { %6259 = vmatpush1.bf16.msra.mxu1 %v8287_v4  ;;  %6291 = vmatpush1.bf16.msra.mxu0 %v8302_v2 }
 0xa81   :  { %6261 = vmatprep.subr.bf16.mxu1 %v8296_v3  ;;  %6293 = vmatprep.subr.bf16.mxu0 %v8307_v7 }
 0xa84   :  { %6263 = vmatpush1.bf16.msra.mxu1 %v8312_v11  ;;  %6295 = vmatpush1.bf16.msra.mxu0 %v8322_v17 }
 0xa85   :  { %6265 = vmatprep.subr.bf16.mxu1 %v8317_v15  ;;  %6297 = vmatprep.subr.bf16.mxu0 %v8327_v34 }
 0xa88   :  { %6267 = vmatpush1.bf16.msra.mxu1 %v8332_v54  ;;  %6299 = vmatpush1.bf16.msra.mxu0 %v8342_v52 }
 0xa89   :  { %6269 = vmatprep.subr.bf16.mxu1 %v8337_v42  ;;  %6301 = vmatprep.subr.bf16.mxu0 %v8347_v63 }
 0xa8c   :  { %6271 = vmatpush1.bf16.msra.mxu1 %v8352_v49  ;;  %6303 = vmatpush1.bf16.msra.mxu0 %v8362_v18 }
 0xa8d   :  { %6273 = vmatprep.subr.bf16.mxu1 %v8357_v24  ;;  %6305 = vmatprep.subr.bf16.mxu0 %v8367_v23 }
 0xa90   :  { %6275 = vmatpush1.bf16.msra.mxu1 %v8372_v27  ;;  %6307 = vmatpush1.bf16.msra.mxu0 %v8382_v37 }
 0xa91   :  { %6277 = vmatprep.subr.bf16.mxu1 %v8377_v30  ;;  %6309 = vmatprep.subr.bf16.mxu0 %v8387_v8 }
 0xa94   :  { %6279 = vmatpush1.bf16.msra.mxu1 %v8392_v13  ;;  %6311 = vmatpush1.bf16.msra.mxu0 %v8402_v43 }
 0xa95   :  { %6281 = vmatprep.subr.bf16.mxu1 %v8397_v19  ;;  %6313 = vmatprep.subr.bf16.mxu0 %v8407_v38 }
 0xa98   :  { %6283 = vmatpush1.bf16.msra.mxu1 %v8412_v47  ;;  %6315 = vmatpush1.bf16.msra.mxu0 %v8418_v59 }
 0xa99   :  { %6317 = vmatprep.subr.bf16.mxu1 %v8263_v41  ;;  %6349 = vmatprep.subr.bf16.mxu0 %v8278_v1 }
 0xb4e   :  { %v4008_v51 = vpop.f32.mrb[18].mxu1  ;;  %v4079_v53 = vpop.f32.mrb[86].mxu0 }
 0xb4f   :  { %v6422_v39 = vadd.f32 %v4008_v51, %v8253_v35  ;;  %v4010_v6 = vpop.f32.mrb[19].mxu1  ;;  %v4081_v33 = vpop.f32.mrb[87].mxu0  ;;  %v6438_v1 = vadd.f32 %v4079_v53, %v8255_v36 }
 0xb50   :  { %v6423_v12 = vadd.f32 %v4010_v6, %v8257_v45  ;;  %v6439_v14 = vadd.f32 %v4081_v33, %v8259_v55 }
 0xb51   :  { %v4088_v29 = vsub.f32 0.0, %v6422_v39 }
 0xb52   :  { %v4093_v21 = vsub.f32 0.0, %v6423_v12  ;;  %v4099_v48 = vsub.f32 0.0, %v6439_v14 }
 0xb53   :  { %v4089_v60 = vmul.f32 1.442695, %v4088_v29 }
 0xb54   :  { %v4094_v57 = vmul.f32 1.442695, %v4093_v21  ;;  %v4100_v41 = vmul.f32 1.442695, %v4099_v48 }
 0xb55   :  { %6750 = vpow2.f32 %v4089_v60 }
 0xb56   :  { %6752 = vpow2.f32 %v4094_v57 }
 0xb57   :  { %6754 = vpow2.f32 %v4100_v41 }
 0xb58   :  { %6756 = vtanh.f32 %v6438_v1 }
 0xb5f   :  { %v6751_v9 = vpop.eup %6750 }
 0xb60   :  { %v6753_v61 = vpop.eup %6752  ;;  %v4091_v31 = vadd.f32 1.0, %v6751_v9 }
 0xb61   :  { %v4096_v16 = vadd.f32 1.0, %v6753_v61  ;;  %v6755_v22 = vpop.eup %6754 }
 0xb62   :  { %6758 = vrcp.f32 %v4091_v31  ;;  %v6757_v40 = vpop.eup %6756  ;;  %v4102_v6 = vadd.f32 1.0, %v6755_v22 }
 0xb63   :  { %6760 = vrcp.f32 %v4096_v16 }
 0xb64   :  { %6762 = vrcp.f32 %v4102_v6 }
 0xb6c   :  { %v6759_v25 = vpop.eup %6758 }
 0xb6d   :  { %v6761_v51 = vpop.eup %6760  ;;  %v4105_v39 = vmul.f32 %v6759_v25, %v6757_v40 }
 0xb6e   :  { %v4104_v33 = vmul.f32 %v6761_v51, %v8649_v26  ;;  %v6763_v53 = vpop.eup %6762 }
 0xb70   :  { %v8695_v12 = vadd.f32 %v4105_v39, %v4104_v33 }
 0xb72   :  { %6764 = vtanh.f32 %v8695_v12 }
 0xb7c   :  { %v6765_v29 = vpop.eup %6764 }
 0xb7d   :  { %v8698_v21 = vmul.f32 %v6765_v29, %v6763_v53 }
 0xb7f   :  { %4247 = vmatmul.mubr.f32.vlgmr.msra.gmra.mrb[20].mxu1 %v8698_v21  ;;  %4318 = vmatmul.mubr.f32.vlgmr.msra.gmra.mrb[88].mxu0 %v8698_v21 }
 0xb80   :  { %6319 = vmatpush1.bf16.msra.mxu1 %v8267_v46  ;;  %6351 = vmatpush1.bf16.msra.mxu0 %v8282_v0 }
 0xb81   :  { %6321 = vmatprep.subr.bf16.mxu1 %v8271_v56  ;;  %6353 = vmatprep.subr.bf16.mxu0 %v8291_v5 }
 0xb82   :  { %4486 = vmatprep.mubr.f32.mxu1 %v8883_v58  ;;  %4557 = vmatprep.mubr.f32.mxu0 %v8883_v58 }
 0xb84   :  { %6323 = vmatpush1.bf16.msra.mxu1 %v8287_v4  ;;  %6355 = vmatpush1.bf16.msra.mxu0 %v8302_v2 }
 0xb85   :  { %6325 = vmatprep.subr.bf16.mxu1 %v8296_v3  ;;  %6357 = vmatprep.subr.bf16.mxu0 %v8307_v7 }
 0xb88   :  { %6327 = vmatpush1.bf16.msra.mxu1 %v8312_v11  ;;  %6359 = vmatpush1.bf16.msra.mxu0 %v8322_v17 }
 0xb89   :  { %6329 = vmatprep.subr.bf16.mxu1 %v8317_v15  ;;  %6361 = vmatprep.subr.bf16.mxu0 %v8327_v34 }
 0xb8c   :  { %6331 = vmatpush1.bf16.msra.mxu1 %v8332_v54  ;;  %6363 = vmatpush1.bf16.msra.mxu0 %v8342_v52 }
 0xb8d   :  { %6333 = vmatprep.subr.bf16.mxu1 %v8337_v42  ;;  %6365 = vmatprep.subr.bf16.mxu0 %v8347_v63 }
 0xb90   :  { %6335 = vmatpush1.bf16.msra.mxu1 %v8352_v49  ;;  %6367 = vmatpush1.bf16.msra.mxu0 %v8362_v18 }
 0xb91   :  { %6337 = vmatprep.subr.bf16.mxu1 %v8357_v24  ;;  %6369 = vmatprep.subr.bf16.mxu0 %v8367_v23 }
 0xb94   :  { %6339 = vmatpush1.bf16.msra.mxu1 %v8372_v27  ;;  %6371 = vmatpush1.bf16.msra.mxu0 %v8382_v37 }
 0xb95   :  { %6341 = vmatprep.subr.bf16.mxu1 %v8377_v30  ;;  %6373 = vmatprep.subr.bf16.mxu0 %v8387_v8 }
 0xb98   :  { %6343 = vmatpush1.bf16.msra.mxu1 %v8392_v13  ;;  %6375 = vmatpush1.bf16.msra.mxu0 %v8402_v43 }
 0xb99   :  { %6345 = vmatprep.subr.bf16.mxu1 %v8397_v19  ;;  %6377 = vmatprep.subr.bf16.mxu0 %v8407_v38 }
 0xb9c   :  { %6347 = vmatpush1.bf16.msra.mxu1 %v8412_v47  ;;  %6379 = vmatpush1.bf16.msra.mxu0 %v8418_v59 }
 0xc52   :  { %v4248_v46 = vpop.f32.mrb[20].mxu1  ;;  %v4319_v56 = vpop.f32.mrb[88].mxu0 }
 0xc53   :  { %v6424_v0 = vadd.f32 %v4248_v46, %v8253_v35  ;;  %v4250_v4 = vpop.f32.mrb[21].mxu1  ;;  %v4321_v5 = vpop.f32.mrb[89].mxu0  ;;  %v6440_v42 = vadd.f32 %v4319_v56, %v8255_v36 }
 0xc54   :  { %v6425_v3 = vadd.f32 %v4250_v4, %v8257_v45  ;;  %v6441_v17 = vadd.f32 %v4321_v5, %v8259_v55 }
 0xc55   :  { %v4328_v2 = vsub.f32 0.0, %v6424_v0 }
 0xc56   :  { %v4333_v7 = vsub.f32 0.0, %v6425_v3  ;;  %v4339_v34 = vsub.f32 0.0, %v6441_v17 }
 0xc57   :  { %v4329_v11 = vmul.f32 1.442695, %v4328_v2 }
 0xc58   :  { %v4334_v15 = vmul.f32 1.442695, %v4333_v7  ;;  %v4340_v54 = vmul.f32 1.442695, %v4339_v34 }
 0xc59   :  { %6766 = vpow2.f32 %v4329_v11 }
 0xc5a   :  { %6768 = vpow2.f32 %v4334_v15 }
 0xc5b   :  { %6770 = vpow2.f32 %v4340_v54 }
 0xc5c   :  { %6772 = vtanh.f32 %v6440_v42 }
 0xc63   :  { %v6767_v52 = vpop.eup %6766 }
 0xc64   :  { %v6769_v63 = vpop.eup %6768  ;;  %v4331_v49 = vadd.f32 1.0, %v6767_v52 }
 0xc65   :  { %v4336_v24 = vadd.f32 1.0, %v6769_v63  ;;  %v6771_v18 = vpop.eup %6770 }
 0xc66   :  { %6774 = vrcp.f32 %v4331_v49  ;;  %v6773_v23 = vpop.eup %6772  ;;  %v4342_v8 = vadd.f32 1.0, %v6771_v18 }
 0xc67   :  { %6776 = vrcp.f32 %v4336_v24 }
 0xc68   :  { %6778 = vrcp.f32 %v4342_v8 }
 0xc70   :  { %v6775_v27 = vpop.eup %6774 }
 0xc71   :  { %v6777_v30 = vpop.eup %6776  ;;  %v4345_v37 = vmul.f32 %v6775_v27, %v6773_v23 }
 0xc72   :  { %v4344_v13 = vmul.f32 %v6777_v30, %v8695_v12  ;;  %v6779_v43 = vpop.eup %6778 }
 0xc74   :  { %v4346_v19 = vadd.f32 %v4345_v37, %v4344_v13 }
 0xc76   :  { %6780 = vtanh.f32 %v4346_v19 }
 0xc80   :  { %v6781_v38 = vpop.eup %6780 }
 0xc81   :  { %v8739_v47 = vmul.f32 %v6781_v38, %v6779_v43 }
 0xc83   :  { %4487 = vmatmul.mubr.f32.vlgmr.msra.gmra.mrb[22].mxu1 %v8739_v47  ;;  %4558 = vmatmul.mubr.f32.vlgmr.msra.gmra.mrb[90].mxu0 %v8739_v47 }
 0xd56   :  { %v4488_v59 = vpop.f32.mrb[22].mxu1  ;;  %v4559_v26 = vpop.f32.mrb[90].mxu0 }
 0xd57   :  { %v6426_v60 = vadd.f32 %v4488_v59, %v8253_v35  ;;  %v4490_v57 = vpop.f32.mrb[23].mxu1  ;;  %v4561_v14 = vpop.f32.mrb[91].mxu0  ;;  %v6442_v40 = vadd.f32 %v4559_v26, %v8255_v36 }
 0xd58   :  { %v6427_v48 = vadd.f32 %v4490_v57, %v8257_v45  ;;  %v6443_v31 = vadd.f32 %v4561_v14, %v8259_v55 }
 0xd59   :  { %v4568_v41 = vsub.f32 0.0, %v6426_v60 }
 0xd5a   :  { %v4573_v1 = vsub.f32 0.0, %v6427_v48  ;;  %v4579_v16 = vsub.f32 0.0, %v6443_v31 }
 0xd5b   :  { %v4569_v9 = vmul.f32 1.442695, %v4568_v41 }
 0xd5c   :  { %v4574_v61 = vmul.f32 1.442695, %v4573_v1  ;;  %v4580_v22 = vmul.f32 1.442695, %v4579_v16 }
 0xd5d   :  { %6782 = vpow2.f32 %v4569_v9 }
 0xd5e   :  { %6784 = vpow2.f32 %v4574_v61 }
 0xd5f   :  { %6786 = vpow2.f32 %v4580_v22 }
 0xd60   :  { %6788 = vtanh.f32 %v6442_v40 }
 0xd67   :  { %v6783_v25 = vpop.eup %6782 }
 0xd68   :  { %v6785_v51 = vpop.eup %6784  ;;  %v4571_v39 = vadd.f32 1.0, %v6783_v25 }
 0xd69   :  { %v4576_v35 = vadd.f32 1.0, %v6785_v51  ;;  %v6787_v45 = vpop.eup %6786 }
 0xd6a   :  { %6790 = vrcp.f32 %v4571_v39  ;;  %v6789_v6 = vpop.eup %6788  ;;  %v4582_v55 = vadd.f32 1.0, %v6787_v45 }
 0xd6b   :  { %6792 = vrcp.f32 %v4576_v35 }
 0xd6c   :  { %6794 = vrcp.f32 %v4582_v55 }
 0xd74   :  { %v6791_v33 = vpop.eup %6790 }
 0xd75   :  { %v6793_v12 = vpop.eup %6792  ;;  %v4585_v53 = vmul.f32 %v6791_v33, %v6789_v6 }
 0xd76   :  { %v4584_v29 = vmul.f32 %v6793_v12, %v4346_v19  ;;  %v6795_v56 = vpop.eup %6794 }
 0xd78   :  { %v4586_v46 = vadd.f32 %v4585_v53, %v4584_v29 }
 0xd7a   :  { %6796 = vtanh.f32 %v4586_v46 }
 0xd84   :  { %v6797_v36 = vpop.eup %6796 }
 0xd85   :  { %v4588_v0 = vmul.f32 %v6797_v36, %v6795_v56 }
 0xd86   :  { %6814 = dma.done.wait [#allocation8 + $0x1], 2048 }
 0xd87   :  { %6815 = vsyncadd [#allocation8 + $0x1], 4294965248  ;;  %4726 = vmatprep.mubr.f32.mxu1 %v8883_v58  ;;  %v4595_v4 = vld [vmem:[#allocation7 + $0x8] sm:$0xff]  ;;  %v4594_v5 = vld [vmem:[#allocation7] sm:$0xff] }
 0xd88   :  { %v4597_v3 = vld [vmem:[#allocation7 + $0x18] sm:$0xff]  ;;  %6381 = vmatprep.subr.bf16.mxu1 %v4595_v4  ;;  %v4596_v2 = vld [vmem:[#allocation7 + $0x10] sm:$0xff]  ;;  %v4599_v7 = vld [vmem:[#allocation7 + $0x28] sm:$0xff] }
 0xd89   :  { %6383 = vmatpush1.bf16.msra.mxu1 %v4594_v5  ;;  %v4598_v11 = vld [vmem:[#allocation7 + $0x20] sm:$0xff]  ;;  %v4601_v15 = vld [vmem:[#allocation7 + $0x38] sm:$0xff]  ;;  %v4600_v17 = vld [vmem:[#allocation7 + $0x30] sm:$0xff] }
 0xd8a   :  { %6385 = vmatprep.subr.bf16.mxu1 %v4597_v3  ;;  %v4603_v34 = vld [vmem:[#allocation7 + $0x48] sm:$0xff]  ;;  %v4602_v54 = vld [vmem:[#allocation7 + $0x40] sm:$0xff]  ;;  %v4605_v42 = vld [vmem:[#allocation7 + $0x58] sm:$0xff] }
 0xd8b   :  { %v4604_v52 = vld [vmem:[#allocation7 + $0x50] sm:$0xff]  ;;  %v4607_v63 = vld [vmem:[#allocation7 + $0x68] sm:$0xff]  ;;  %v4606_v49 = vld [vmem:[#allocation7 + $0x60] sm:$0xff] }
 0xd8c   :  { %v4609_v24 = vld [vmem:[#allocation7 + $0x78] sm:$0xff]  ;;  %v4608_v18 = vld [vmem:[#allocation7 + $0x70] sm:$0xff] }
 0xd8d   :  { %6387 = vmatpush1.bf16.msra.mxu1 %v4596_v2 }
 0xd8e   :  { %6389 = vmatprep.subr.bf16.mxu1 %v4599_v7 }
 0xd91   :  { %6391 = vmatpush1.bf16.msra.mxu1 %v4598_v11 }
 0xd92   :  { %6393 = vmatprep.subr.bf16.mxu1 %v4601_v15 }
 0xd95   :  { %6395 = vmatpush1.bf16.msra.mxu1 %v4600_v17 }
 0xd96   :  { %6397 = vmatprep.subr.bf16.mxu1 %v4603_v34 }
 0xd99   :  { %6399 = vmatpush1.bf16.msra.mxu1 %v4602_v54 }
 0xd9a   :  { %6401 = vmatprep.subr.bf16.mxu1 %v4605_v42 }
 0xd9d   :  { %6403 = vmatpush1.bf16.msra.mxu1 %v4604_v52 }
 0xd9e   :  { %6405 = vmatprep.subr.bf16.mxu1 %v4607_v63 }
 0xda1   :  { %6407 = vmatpush1.bf16.msra.mxu1 %v4606_v49 }
 0xda2   :  { %6409 = vmatprep.subr.bf16.mxu1 %v4609_v24 }
 0xda5   :  { %6411 = vmatpush1.bf16.msra.mxu1 %v4608_v18 }
 0xda8   :  { %4727 = vmatmul.mubr.f32.vlgmr.msra.gmra.mrb[26].mxu1 %v8468_v20  ;;  %v4650_v20 = vld [vmem:[%s8830_s15] sm:$0x3] }
 0xda9   :  { %4732 = vmatprep.mubr.f32.mxu1 %v8883_v58 }
 0xdac   :  { %4733 = vmatmul.mubr.f32.gmra.mrb[28].mxu1 %v8514_v32  ;;  %v4655_v32 = vrot.slane %v4650_v20, %v7969_v44 }
 0xdad   :  { %4738 = vmatprep.mubr.f32.mxu1 %v8883_v58 }
 0xdb0   :  { %4739 = vmatmul.mubr.f32.gmra.mrb[30].mxu1 %v8560_v10  ;;  %v4659_v10 = vrot.slane %v4650_v20, %v7963_v62 }
 0xdb1   :  { %4744 = vmatprep.mubr.f32.mxu1 %v8883_v58 }
 0xdb4   :  { %4745 = vmatmul.mubr.f32.gmra.mrb[32].mxu1 %v8606_v50 }
 0xdb5   :  { %4750 = vmatprep.mubr.f32.mxu1 %v8883_v58 }
 0xdb8   :  { %4751 = vmatmul.mubr.f32.gmra.mrb[34].mxu1 %v8652_v28 }
 0xdb9   :  { %4756 = vmatprep.mubr.f32.mxu1 %v8883_v58 }
 0xdbc   :  { %4757 = vmatmul.mubr.f32.gmra.mrb[36].mxu1 %v8698_v21 }
 0xdbd   :  { %4762 = vmatprep.mubr.f32.mxu1 %v8883_v58 }
 0xdc0   :  { %4763 = vmatmul.mubr.f32.gmra.mrb[38].mxu1 %v8739_v47 }
 0xdc1   :  { %4768 = vmatprep.mubr.f32.mxu1 %v8883_v58 }
 0xdc4   :  { %4769 = vmatmul.mubr.f32.gmra.mrb[40].mxu1 %v4588_v0 }
 0xe7b   :  { %v4728_v50 = vpop.f32.mrb[26].mxu1 }
 0xe7c   :  { %v4729_v28 = vadd.f32 %v4728_v50, %v4655_v32  ;;  %v4730_v23 = vpop.f32.mrb[27].mxu1 }
 0xe7d   :  { %v4731_v27 = vadd.f32 %v4730_v23, %v4659_v10 }
 0xe7e   :  { %4775 = vst [vmem:[%s8831_s16] sm:$0xff] %v4729_v28 }
 0xe7f   :  { %4776 = vst [vmem:[%s8831_s16 + $0x8] sm:$0xff] %v4731_v27  ;;  %v4734_v58 = vpop.f32.mrb[28].mxu1 }
 0xe80   :  { %v4735_v21 = vadd.f32 %v4734_v58, %v4655_v32  ;;  %v4736_v30 = vpop.f32.mrb[29].mxu1 }
 0xe81   :  { %v4737_v37 = vadd.f32 %v4736_v30, %v4659_v10 }
 0xe82   :  { %4777 = vst [vmem:[%s8831_s16 + $0x10] sm:$0xff] %v4735_v21 }
 0xe83   :  { %4778 = vst [vmem:[%s8831_s16 + $0x18] sm:$0xff] %v4737_v37  ;;  %v4740_v62 = vpop.f32.mrb[30].mxu1 }
 0xe84   :  { %v4741_v44 = vadd.f32 %v4740_v62, %v4655_v32  ;;  %v4742_v8 = vpop.f32.mrb[31].mxu1 }
 0xe85   :  { %v4743_v13 = vadd.f32 %v4742_v8, %v4659_v10 }
 0xe86   :  { %4779 = vst [vmem:[%s8831_s16 + $0x20] sm:$0xff] %v4741_v44 }
 0xe87   :  { %4780 = vst [vmem:[%s8831_s16 + $0x28] sm:$0xff] %v4743_v13  ;;  %v4746_v19 = vpop.f32.mrb[32].mxu1 }
 0xe88   :  { %v4747_v43 = vadd.f32 %v4746_v19, %v4655_v32  ;;  %v4748_v38 = vpop.f32.mrb[33].mxu1 }
 0xe89   :  { %v4749_v47 = vadd.f32 %v4748_v38, %v4659_v10 }
 0xe8a   :  { %4781 = vst [vmem:[%s8831_s16 + $0x30] sm:$0xff] %v4747_v43 }
 0xe8b   :  { %4782 = vst [vmem:[%s8831_s16 + $0x38] sm:$0xff] %v4749_v47  ;;  %v4752_v59 = vpop.f32.mrb[34].mxu1 }
 0xe8c   :  { %v4753_v26 = vadd.f32 %v4752_v59, %v4655_v32  ;;  %v4754_v60 = vpop.f32.mrb[35].mxu1 }
 0xe8d   :  { %v4755_v57 = vadd.f32 %v4754_v60, %v4659_v10 }
 0xe8e   :  { %4783 = vst [vmem:[%s8831_s16 + $0x40] sm:$0xff] %v4753_v26 }
 0xe8f   :  { %4784 = vst [vmem:[%s8831_s16 + $0x48] sm:$0xff] %v4755_v57  ;;  %v4758_v14 = vpop.f32.mrb[36].mxu1 }
 0xe90   :  { %v4759_v48 = vadd.f32 %v4758_v14, %v4655_v32  ;;  %v4760_v41 = vpop.f32.mrb[37].mxu1 }
 0xe91   :  { %v4761_v1 = vadd.f32 %v4760_v41, %v4659_v10 }
 0xe92   :  { %4785 = vst [vmem:[%s8831_s16 + $0x50] sm:$0xff] %v4759_v48 }
 0xe93   :  { %4786 = vst [vmem:[%s8831_s16 + $0x58] sm:$0xff] %v4761_v1  ;;  %v4764_v9 = vpop.f32.mrb[38].mxu1 }
 0xe94   :  { %v4765_v61 = vadd.f32 %v4764_v9, %v4655_v32  ;;  %v4766_v31 = vpop.f32.mrb[39].mxu1 }
 0xe95   :  { %v4767_v16 = vadd.f32 %v4766_v31, %v4659_v10 }
 0xe96   :  { %4787 = vst [vmem:[%s8831_s16 + $0x60] sm:$0xff] %v4765_v61 }
 0xe97   :  { %4788 = vst [vmem:[%s8831_s16 + $0x68] sm:$0xff] %v4767_v16  ;;  %v4770_v22 = vpop.f32.mrb[40].mxu1 }
 0xe98   :  { %v4771_v40 = vadd.f32 %v4770_v22, %v4655_v32  ;;  %v4772_v25 = vpop.f32.mrb[41].mxu1 }
 0xe99   :  { %v4773_v51 = vadd.f32 %v4772_v25, %v4659_v10 }
 0xe9a   :  { %4789 = vst [vmem:[%s8831_s16 + $0x70] sm:$0xff] %v4771_v40 }
 0xe9b   :  { %4790 = vst [vmem:[%s8831_s16 + $0x78] sm:$0xff] %v4773_v51 }
 0xe9c   :  { %4795 = vsyncpa [#allocation10], 1 }
 0xe9d   :  { %4796 = vsyncmov [#allocation8] }
 0xea0   :  { %s4797_s25 = vpop.sfrf %4796 }
 0xea1   :  { %p4928_p5 = scmp.ne.s32.totalorder %s4797_s25, 0 }
 0xea3   :  { %4801 = shalt.err (%p4928_p5)  }
 0xea4   :  { %4803 = vsyncmov [#allocation8 + $0x1] }
 0xea7   :  { %s4804_s26 = vpop.sfrf %4803 }
 0xea8   :  { %p4929_p6 = scmp.ne.s32.totalorder %s4804_s26, 0 }
 0xeaa   :  { %4808 = shalt.err (%p4929_p6)  }

</bundles_post_ra>
